<compile_context>
chip_gen: v7x
topology: tpu7x:2x2x1
jax: 0.10.0
libtpu: 0.0.40
codegen_flags: <defaults>
</compile_context>

<pallas_src>
import functools

import jax
import jax.numpy as jnp
from jax.experimental import pallas as pl
from jax.experimental.pallas import tpu as pltpu


def _leaky(x, slope=0.2):
    return jnp.where(x > 0, x, slope * x)


# ----------------------------------------------------------------------------
# Fused kernel: GCN surrogate + GRU (unrolled recurrence) + head.
# ----------------------------------------------------------------------------
def fused_kernel(featl_ref, adj_ref, st_ref, s_ref,
                 wr_ref, br_ref, wf_ref, bf_ref,
                 wih_ref, bih_ref, whh_ref, bhh_ref,
                 w1_hbm, b1_ref, w2_hbm, b2_ref,
                 x_ref, h_ref,
                 tf_ref, w1_vmem, w2_vmem, dma_sem,
                 *, seq_len, n_graphs, regions, n_rows, feat_dim, u_size,
                 hidden):
    f32 = jnp.float32

    # ---- Prefetch the (large, bf16) head weights behind the GCN+GRU --------
    w1_cp = pltpu.make_async_copy(w1_hbm, w1_vmem, dma_sem.at[0])
    w2_cp = pltpu.make_async_copy(w2_hbm, w2_vmem, dma_sem.at[1])
    w1_cp.start()
    w2_cp.start()

    # ---------------- GCN stage ----------------------------------------------
    # Lane-dense region mixing / functional pooling over ALL T*B graphs at once
    # (lanes hold (t, b, d); no kron, no inflated operators).
    agg_all = jnp.dot(adj_ref[...], featl_ref[...],
                      preferred_element_type=f32)          # (R, T*B*D)
    pool_all = jnp.dot(st_ref[...], agg_all,
                       preferred_element_type=f32)         # (F, T*B*D)

    w_r = wr_ref[...]
    b_r = br_ref[...]
    w_f = wf_ref[...]
    b_f = bf_ref[...]
    s_mat = s_ref[...]

    D = feat_dim
    R = regions
    U = u_size

    # Per-graph feature transforms; writes the GRU input features (region part
    # in lanes [:U], functional part in lanes [U:2U]) in (t, b, r) row order so
    # downstream time slicing is a contiguous, tile-aligned row slice.
    for n in range(n_graphs):
        lo = n * D
        agg_n = agg_all[:, lo:lo + D]                      # (R, D)
        pool_n = pool_all[:, lo:lo + D]                    # (F, D)
        rh = _leaky(jnp.dot(agg_n, w_r, preferred_element_type=f32) + b_r)
        fh = _leaky(jnp.dot(pool_n, w_f, preferred_element_type=f32) + b_f)
        fo = jnp.dot(s_mat, fh, preferred_element_type=f32)  # (R, U)
        ro = n * R
        tf_ref[ro:ro + R, :U] = rh
        tf_ref[ro:ro + R, U:] = fo

    # ---------------- GRU ----------------------------------------------------
    # Single fused input projection (2U -> 3H) hoisted over all time steps.
    gi = jnp.dot(tf_ref[...], wih_ref[...],
                 preferred_element_type=f32) + bih_ref[...]    # (T*BR, 3H)

    whh = whh_ref[...]                                          # (H, 3H)
    b_hh = bhh_ref[...]
    H = hidden
    h = jnp.zeros((n_rows, H), f32)

    # Serial recurrence, fully unrolled (T is small and static).
    # NOTE: switch to lax.fori_loop(..., unroll=True) if seq_len grows past ~8.
    for t in range(seq_len):
        gi_t = gi[t * n_rows:(t + 1) * n_rows]             # (BR, 3H)
        gh = jnp.dot(h, whh, preferred_element_type=f32) + b_hh   # one matmul
        r = jax.nn.sigmoid(gi_t[:, :H] + gh[:, :H])
        z = jax.nn.sigmoid(gi_t[:, H:2 * H] + gh[:, H:2 * H])
        n_g = jnp.tanh(gi_t[:, 2 * H:] + r * gh[:, 2 * H:])
        h = (1.0 - z) * n_g + z * h

    h_ref[...] = h

    # ---------------- Head: linear1 -> LeakyReLU(0.2) -> linear2 -------------
    w1_cp.wait()
    w2_cp.wait()
    x1 = _leaky(jnp.dot(h.astype(jnp.bfloat16), w1_vmem[...],
                        preferred_element_type=f32) + b1_ref[...])
    x_ref[...] = jnp.dot(x1.astype(jnp.bfloat16), w2_vmem[...],
                         preferred_element_type=f32) + b2_ref[...]


# ----------------------------------------------------------------------------
# Parameters
# ----------------------------------------------------------------------------
def init_params(key, regions, u_size, mete_size, ctx_size, func_num,
                hidden_size, out_size, forecast_time):
    D = u_size + mete_size + ctx_size
    ks = jax.random.split(key, 12)
    scale = 0.1
    p = {
        # GCN surrogates
        'W_r': scale * jax.random.normal(ks[0], (D, u_size), jnp.float32),
        'b_r': scale * jax.random.normal(ks[1], (1, u_size), jnp.float32),
        'S':   jax.nn.softmax(
            jax.random.normal(ks[2], (regions, func_num), jnp.float32), axis=-1),
        'W_f': scale * jax.random.normal(ks[3], (D, u_size), jnp.float32),
        'b_f': scale * jax.random.normal(ks[4], (1, u_size), jnp.float32),
        # GRU (input size u_size*2), PyTorch gate order [r | z | n]
        'W_ih_T': scale * jax.random.normal(ks[5], (2 * u_size, 3 * hidden_size), jnp.float32),
        'W_hh_T': scale * jax.random.normal(ks[6], (hidden_size, 3 * hidden_size), jnp.float32),
        'b_ih':   scale * jax.random.normal(ks[7], (1, 3 * hidden_size), jnp.float32),
        'b_hh':   scale * jax.random.normal(ks[8], (1, 3 * hidden_size), jnp.float32),
        # Head linears
        'W1_T': scale * jax.random.normal(ks[9], (hidden_size, hidden_size * forecast_time), jnp.float32),
        'b1':   scale * jax.random.normal(ks[10], (1, hidden_size * forecast_time), jnp.float32),
        'W2_T': scale * jax.random.normal(ks[11], (hidden_size * forecast_time, out_size * forecast_time), jnp.float32),
        'b2':   jnp.zeros((1, out_size * forecast_time), jnp.float32),
    }
    return p


# ----------------------------------------------------------------------------
# Full model (wrapper: cheap XLA layout glue + one fused pallas_call)
# ----------------------------------------------------------------------------
def hierarchical_graph_model(u_val, mete_val, ctx_val, adj_mat, params, *,
                             hidden_size, out_size, forecast_time, func_num):
    T, B, R, U = u_val.shape
    BR = B * R
    TB = T * B
    H = hidden_size
    F = func_num
    OUT = out_size * forecast_time
    OUT_PAD = ((OUT + 127) // 128) * 128          # lane-dense head output
    HFT = H * forecast_time

    # Pre-concatenate features and lay them out lane-dense for the region ops:
    # (R, T*B*D) with lanes ordered (t, b, d).  Layout work done once, in XLA.
    feat = jnp.concatenate([u_val, mete_val, ctx_val], axis=-1)   # (T,B,R,D)
    D = feat.shape[-1]
    featL = jnp.transpose(feat, (2, 0, 1, 3)).reshape(R, TB * D)

    S = params['S']                    # (R, F)
    St = S.T                           # (F, R)

    # bf16 head weights (halved DMA, native bf16 MXU path); f32 accumulation
    # is requested inside the kernel.  Pad linear2 output to 256 lanes.
    pad = OUT_PAD - OUT
    W1_bf16 = params['W1_T'].astype(jnp.bfloat16)
    W2p_bf16 = jnp.pad(params['W2_T'], ((0, 0), (0, pad))).astype(jnp.bfloat16)
    b2p = jnp.pad(params['b2'], ((0, 0), (0, pad)))

    # Advisory cost estimate so XLA schedules around the custom call.
    flops = (
        2 * R * R * (TB * D)
        + 2 * F * R * (TB * D)
        + TB * (2 * R * D * U + 2 * F * D * U + 2 * R * F * U)
        + 2 * (TB * R) * (2 * U) * (3 * H)
        + T * 2 * BR * H * (3 * H)
        + 2 * BR * H * HFT
        + 2 * BR * HFT * OUT_PAD
    )
    transcendentals = T * BR * 3 * H

    def _nbytes(a):
        return int(a.size) * jnp.dtype(a.dtype).itemsize

    args = (featL, adj_mat, St, S,
            params['W_r'], params['b_r'], params['W_f'], params['b_f'],
            params['W_ih_T'], params['b_ih'], params['W_hh_T'], params['b_hh'],
            W1_bf16, params['b1'], W2p_bf16, b2p)
    bytes_accessed = sum(_nbytes(a) for a in args) + BR * OUT_PAD * 4 + BR * H * 4
    cost = pl.CostEstimate(flops=flops, transcendentals=transcendentals,
                           bytes_accessed=bytes_accessed)

    kernel_fn = functools.partial(
        fused_kernel, seq_len=T, n_graphs=TB, regions=R, n_rows=BR,
        feat_dim=D, u_size=U, hidden=H)

    vmem = pl.BlockSpec(memory_space=pltpu.MemorySpace.VMEM)
    hbm = pl.BlockSpec(memory_space=pl.ANY)       # manual DMA inside kernel

    x2, h_last = pl.pallas_call(
        kernel_fn,
        out_shape=(
            jax.ShapeDtypeStruct((BR, OUT_PAD), jnp.float32),
            jax.ShapeDtypeStruct((BR, H), jnp.float32),
        ),
        in_specs=[
            vmem, vmem, vmem, vmem,          # featL, adj, S.T, S
            vmem, vmem, vmem, vmem,          # W_r, b_r, W_f, b_f
            vmem, vmem, vmem, vmem,          # W_ih, b_ih, W_hh, b_hh
            hbm, vmem, hbm, vmem,            # W1 (bf16, HBM), b1, W2 (bf16, HBM), b2
        ],
        out_specs=(vmem, vmem),
        scratch_shapes=[
            pltpu.VMEM((TB * R, 2 * U), jnp.float32),        # GRU input features
            pltpu.VMEM((H, HFT), jnp.bfloat16),              # prefetched W1
            pltpu.VMEM((HFT, OUT_PAD), jnp.bfloat16),        # prefetched W2 (padded)
            pltpu.SemaphoreType.DMA((2,)),
        ],
        cost_estimate=cost,
    )(*args)

    # Strip lane padding; same row-major reinterpretation as torch reshape/permute.
    x = x2[:, :OUT]
    output = x.reshape(B, R, forecast_time, out_size)
    output = jnp.transpose(output, (2, 0, 1, 3))             # (Ft, B, R, out)
    h = h_last[None]                                         # (1, B*R, H)
    return output, h


if __name__ == "__main__":
    # small shapes consistent with the module
    T, B, R = 8, 2, 4
    u_size, mete_size, ctx_size = 8, 4, 4
    func_num, hidden_size, out_size, forecast_time = 12, 32, 7, 24

    key = jax.random.PRNGKey(0)
    k_u, k_m, k_c, k_a, k_p = jax.random.split(key, 5)

    u_val = jax.random.normal(k_u, (T, B, R, u_size), jnp.float32)
    mete_val = jax.random.normal(k_m, (T, B, R, mete_size), jnp.float32)
    ctx_val = jax.random.normal(k_c, (T, B, R, ctx_size), jnp.float32)
    adj_raw = jax.random.uniform(k_a, (R, R), jnp.float32)
    adj_mat = adj_raw / jnp.sum(adj_raw, axis=-1, keepdims=True)   # row-normalized

    params = init_params(k_p, R, u_size, mete_size, ctx_size, func_num,
                         hidden_size, out_size, forecast_time)

    fwd = jax.jit(functools.partial(
        hierarchical_graph_model,
        hidden_size=hidden_size, out_size=out_size,
        forecast_time=forecast_time, func_num=func_num))

    output, h = fwd(u_val, mete_val, ctx_val, adj_mat, params)
    jax.block_until_ready((output, h))

    assert output.shape == (forecast_time, B, R, out_size), output.shape
    assert h.shape == (1, B * R, hidden_size), h.shape
    print("KERNEL_OK")
</pallas_src>

<mosaic_0001>
module attributes {stable_mosaic.version = 11 : i64} {
  func.func @fused_kernel(%arg0: memref<4x256xf32, #tpu.memory_space<vmem>>, %arg1: memref<4x4xf32, #tpu.memory_space<vmem>>, %arg2: memref<12x4xf32, #tpu.memory_space<vmem>>, %arg3: memref<4x12xf32, #tpu.memory_space<vmem>>, %arg4: memref<16x8xf32, #tpu.memory_space<vmem>>, %arg5: memref<1x8xf32, #tpu.memory_space<vmem>>, %arg6: memref<16x8xf32, #tpu.memory_space<vmem>>, %arg7: memref<1x8xf32, #tpu.memory_space<vmem>>, %arg8: memref<16x96xf32, #tpu.memory_space<vmem>>, %arg9: memref<1x96xf32, #tpu.memory_space<vmem>>, %arg10: memref<32x96xf32, #tpu.memory_space<vmem>>, %arg11: memref<1x96xf32, #tpu.memory_space<vmem>>, %arg12: memref<32x768xbf16, #tpu.memory_space<any>>, %arg13: memref<1x768xf32, #tpu.memory_space<vmem>>, %arg14: memref<768x256xbf16, #tpu.memory_space<any>>, %arg15: memref<1x256xf32, #tpu.memory_space<vmem>>, %arg16: memref<8x256xf32, #tpu.memory_space<vmem>>, %arg17: memref<8x32xf32, #tpu.memory_space<vmem>>, %arg18: memref<64x16xf32, #tpu.memory_space<vmem>>, %arg19: memref<32x768xbf16, #tpu.memory_space<vmem>>, %arg20: memref<768x256xbf16, #tpu.memory_space<vmem>>, %arg21: memref<2x!tpu.dma_semaphore, #tpu.memory_space<semaphore_mem>>) attributes {dimension_semantics = [], scalar_prefetch = 0 : i64, scratch_operands = 4 : i64, tpu.core_type = #tpu.core_type<tc>} {
    %c0_i32 = arith.constant 0 : i32
    %0 = tpu.memref_slice %arg21[%c0_i32] : memref<2x!tpu.dma_semaphore, #tpu.memory_space<semaphore_mem>> -> memref<1x!tpu.dma_semaphore, #tpu.memory_space<semaphore_mem>>
    %1 = tpu.memref_squeeze %0 : memref<1x!tpu.dma_semaphore, #tpu.memory_space<semaphore_mem>> -> memref<!tpu.dma_semaphore, #tpu.memory_space<semaphore_mem>>
    tpu.enqueue_dma source(%arg12 : memref<32x768xbf16, #tpu.memory_space<any>>) target(%arg19 : memref<32x768xbf16, #tpu.memory_space<vmem>>) target_semaphore(%1 : memref<!tpu.dma_semaphore, #tpu.memory_space<semaphore_mem>>)
    %c1_i32 = arith.constant 1 : i32
    %2 = tpu.memref_slice %arg21[%c1_i32] : memref<2x!tpu.dma_semaphore, #tpu.memory_space<semaphore_mem>> -> memref<1x!tpu.dma_semaphore, #tpu.memory_space<semaphore_mem>>
    %3 = tpu.memref_squeeze %2 : memref<1x!tpu.dma_semaphore, #tpu.memory_space<semaphore_mem>> -> memref<!tpu.dma_semaphore, #tpu.memory_space<semaphore_mem>>
    tpu.enqueue_dma source(%arg14 : memref<768x256xbf16, #tpu.memory_space<any>>) target(%arg20 : memref<768x256xbf16, #tpu.memory_space<vmem>>) target_semaphore(%3 : memref<!tpu.dma_semaphore, #tpu.memory_space<semaphore_mem>>)
    %c0 = arith.constant 0 : index
    %c0_0 = arith.constant 0 : index
    %4 = vector.load %arg1[%c0, %c0_0] : memref<4x4xf32, #tpu.memory_space<vmem>>, vector<4x4xf32>
    %c0_1 = arith.constant 0 : index
    %c0_2 = arith.constant 0 : index
    %5 = vector.load %arg0[%c0_1, %c0_2] : memref<4x256xf32, #tpu.memory_space<vmem>>, vector<4x256xf32>
    %cst = arith.constant dense<0.000000e+00> : vector<4x256xf32>
    %6 = tpu.matmul %4, %5, %cst {dimension_numbers = #tpu.dot_dimension_numbers<[1], [0], [0], [1], [0, 0, 1, 1], [], []>} : vector<4x4xf32>, vector<4x256xf32>, vector<4x256xf32> -> vector<4x256xf32>
    %c0_3 = arith.constant 0 : index
    %c0_4 = arith.constant 0 : index
    %7 = vector.load %arg2[%c0_3, %c0_4] : memref<12x4xf32, #tpu.memory_space<vmem>>, vector<12x4xf32>
    %cst_5 = arith.constant dense<0.000000e+00> : vector<12x256xf32>
    %8 = tpu.matmul %7, %6, %cst_5 {dimension_numbers = #tpu.dot_dimension_numbers<[1], [0], [0], [1], [0, 0, 1, 1], [], []>} : vector<12x4xf32>, vector<4x256xf32>, vector<12x256xf32> -> vector<12x256xf32>
    %c0_6 = arith.constant 0 : index
    %c0_7 = arith.constant 0 : index
    %9 = vector.load %arg4[%c0_6, %c0_7] : memref<16x8xf32, #tpu.memory_space<vmem>>, vector<16x8xf32>
    %c0_8 = arith.constant 0 : index
    %c0_9 = arith.constant 0 : index
    %10 = vector.load %arg5[%c0_8, %c0_9] : memref<1x8xf32, #tpu.memory_space<vmem>>, vector<1x8xf32>
    %c0_10 = arith.constant 0 : index
    %c0_11 = arith.constant 0 : index
    %11 = vector.load %arg6[%c0_10, %c0_11] : memref<16x8xf32, #tpu.memory_space<vmem>>, vector<16x8xf32>
    %c0_12 = arith.constant 0 : index
    %c0_13 = arith.constant 0 : index
    %12 = vector.load %arg7[%c0_12, %c0_13] : memref<1x8xf32, #tpu.memory_space<vmem>>, vector<1x8xf32>
    %c0_14 = arith.constant 0 : index
    %c0_15 = arith.constant 0 : index
    %13 = vector.load %arg3[%c0_14, %c0_15] : memref<4x12xf32, #tpu.memory_space<vmem>>, vector<4x12xf32>
    %14 = vector.extract_strided_slice %6 {offsets = [0, 0], sizes = [4, 16], strides = [1, 1]} : vector<4x256xf32> to vector<4x16xf32>
    %15 = vector.extract_strided_slice %8 {offsets = [0, 0], sizes = [12, 16], strides = [1, 1]} : vector<12x256xf32> to vector<12x16xf32>
    %cst_16 = arith.constant dense<0.000000e+00> : vector<4x8xf32>
    %16 = tpu.matmul %14, %9, %cst_16 {dimension_numbers = #tpu.dot_dimension_numbers<[1], [0], [0], [1], [0, 0, 1, 1], [], []>} : vector<4x16xf32>, vector<16x8xf32>, vector<4x8xf32> -> vector<4x8xf32>
    %17 = vector.broadcast %10 : vector<1x8xf32> to vector<4x8xf32>
    %18 = arith.addf %16, %17 : vector<4x8xf32>
    %cst_17 = arith.constant 0.000000e+00 : f32
    %19 = vector.broadcast %cst_17 : f32 to vector<4x8xf32>
    %20 = arith.cmpf ogt, %18, %19 : vector<4x8xf32>
    %cst_18 = arith.constant 2.000000e-01 : f32
    %21 = vector.broadcast %cst_18 : f32 to vector<4x8xf32>
    %22 = arith.mulf %21, %18 : vector<4x8xf32>
    %23 = arith.select %20, %18, %22 : vector<4x8xi1>, vector<4x8xf32>
    %cst_19 = arith.constant dense<0.000000e+00> : vector<12x8xf32>
    %24 = tpu.matmul %15, %11, %cst_19 {dimension_numbers = #tpu.dot_dimension_numbers<[1], [0], [0], [1], [0, 0, 1, 1], [], []>} : vector<12x16xf32>, vector<16x8xf32>, vector<12x8xf32> -> vector<12x8xf32>
    %25 = vector.broadcast %12 : vector<1x8xf32> to vector<12x8xf32>
    %26 = arith.addf %24, %25 : vector<12x8xf32>
    %cst_20 = arith.constant 0.000000e+00 : f32
    %27 = vector.broadcast %cst_20 : f32 to vector<12x8xf32>
    %28 = arith.cmpf ogt, %26, %27 : vector<12x8xf32>
    %cst_21 = arith.constant 2.000000e-01 : f32
    %29 = vector.broadcast %cst_21 : f32 to vector<12x8xf32>
    %30 = arith.mulf %29, %26 : vector<12x8xf32>
    %31 = arith.select %28, %26, %30 : vector<12x8xi1>, vector<12x8xf32>
    %cst_22 = arith.constant dense<0.000000e+00> : vector<4x8xf32>
    %32 = tpu.matmul %13, %31, %cst_22 {dimension_numbers = #tpu.dot_dimension_numbers<[1], [0], [0], [1], [0, 0, 1, 1], [], []>} : vector<4x12xf32>, vector<12x8xf32>, vector<4x8xf32> -> vector<4x8xf32>
    %c0_23 = arith.constant 0 : index
    %c0_24 = arith.constant 0 : index
    %33 = vector.load %arg18[%c0_23, %c0_24] : memref<64x16xf32, #tpu.memory_space<vmem>>, vector<4x8xf32>
    tpu.vector_store %arg18[%c0_23, %c0_24], %23 {strides = array<i32>} : memref<64x16xf32, #tpu.memory_space<vmem>>, vector<4x8xf32>,
    %c0_25 = arith.constant 0 : index
    %c8 = arith.constant 8 : index
    %34 = vector.load %arg18[%c0_25, %c8] : memref<64x16xf32, #tpu.memory_space<vmem>>, vector<4x8xf32>
    tpu.vector_store %arg18[%c0_25, %c8], %32 {strides = array<i32>} : memref<64x16xf32, #tpu.memory_space<vmem>>, vector<4x8xf32>,
    %35 = vector.extract_strided_slice %6 {offsets = [0, 16], sizes = [4, 16], strides = [1, 1]} : vector<4x256xf32> to vector<4x16xf32>
    %36 = vector.extract_strided_slice %8 {offsets = [0, 16], sizes = [12, 16], strides = [1, 1]} : vector<12x256xf32> to vector<12x16xf32>
    %cst_26 = arith.constant dense<0.000000e+00> : vector<4x8xf32>
    %37 = tpu.matmul %35, %9, %cst_26 {dimension_numbers = #tpu.dot_dimension_numbers<[1], [0], [0], [1], [0, 0, 1, 1], [], []>} : vector<4x16xf32>, vector<16x8xf32>, vector<4x8xf32> -> vector<4x8xf32>
    %38 = vector.broadcast %10 : vector<1x8xf32> to vector<4x8xf32>
    %39 = arith.addf %37, %38 : vector<4x8xf32>
    %cst_27 = arith.constant 0.000000e+00 : f32
    %40 = vector.broadcast %cst_27 : f32 to vector<4x8xf32>
    %41 = arith.cmpf ogt, %39, %40 : vector<4x8xf32>
    %cst_28 = arith.constant 2.000000e-01 : f32
    %42 = vector.broadcast %cst_28 : f32 to vector<4x8xf32>
    %43 = arith.mulf %42, %39 : vector<4x8xf32>
    %44 = arith.select %41, %39, %43 : vector<4x8xi1>, vector<4x8xf32>
    %cst_29 = arith.constant dense<0.000000e+00> : vector<12x8xf32>
    %45 = tpu.matmul %36, %11, %cst_29 {dimension_numbers = #tpu.dot_dimension_numbers<[1], [0], [0], [1], [0, 0, 1, 1], [], []>} : vector<12x16xf32>, vector<16x8xf32>, vector<12x8xf32> -> vector<12x8xf32>
    %46 = vector.broadcast %12 : vector<1x8xf32> to vector<12x8xf32>
    %47 = arith.addf %45, %46 : vector<12x8xf32>
    %cst_30 = arith.constant 0.000000e+00 : f32
    %48 = vector.broadcast %cst_30 : f32 to vector<12x8xf32>
    %49 = arith.cmpf ogt, %47, %48 : vector<12x8xf32>
    %cst_31 = arith.constant 2.000000e-01 : f32
    %50 = vector.broadcast %cst_31 : f32 to vector<12x8xf32>
    %51 = arith.mulf %50, %47 : vector<12x8xf32>
    %52 = arith.select %49, %47, %51 : vector<12x8xi1>, vector<12x8xf32>
    %cst_32 = arith.constant dense<0.000000e+00> : vector<4x8xf32>
    %53 = tpu.matmul %13, %52, %cst_32 {dimension_numbers = #tpu.dot_dimension_numbers<[1], [0], [0], [1], [0, 0, 1, 1], [], []>} : vector<4x12xf32>, vector<12x8xf32>, vector<4x8xf32> -> vector<4x8xf32>
    %c4 = arith.constant 4 : index
    %c0_33 = arith.constant 0 : index
    %54 = vector.load %arg18[%c4, %c0_33] : memref<64x16xf32, #tpu.memory_space<vmem>>, vector<4x8xf32>
    tpu.vector_store %arg18[%c4, %c0_33], %44 {strides = array<i32>} : memref<64x16xf32, #tpu.memory_space<vmem>>, vector<4x8xf32>,
    %c4_34 = arith.constant 4 : index
    %c8_35 = arith.constant 8 : index
    %55 = vector.load %arg18[%c4_34, %c8_35] : memref<64x16xf32, #tpu.memory_space<vmem>>, vector<4x8xf32>
    tpu.vector_store %arg18[%c4_34, %c8_35], %53 {strides = array<i32>} : memref<64x16xf32, #tpu.memory_space<vmem>>, vector<4x8xf32>,
    %56 = vector.extract_strided_slice %6 {offsets = [0, 32], sizes = [4, 16], strides = [1, 1]} : vector<4x256xf32> to vector<4x16xf32>
    %57 = vector.extract_strided_slice %8 {offsets = [0, 32], sizes = [12, 16], strides = [1, 1]} : vector<12x256xf32> to vector<12x16xf32>
    %cst_36 = arith.constant dense<0.000000e+00> : vector<4x8xf32>
    %58 = tpu.matmul %56, %9, %cst_36 {dimension_numbers = #tpu.dot_dimension_numbers<[1], [0], [0], [1], [0, 0, 1, 1], [], []>} : vector<4x16xf32>, vector<16x8xf32>, vector<4x8xf32> -> vector<4x8xf32>
    %59 = vector.broadcast %10 : vector<1x8xf32> to vector<4x8xf32>
    %60 = arith.addf %58, %59 : vector<4x8xf32>
    %cst_37 = arith.constant 0.000000e+00 : f32
    %61 = vector.broadcast %cst_37 : f32 to vector<4x8xf32>
    %62 = arith.cmpf ogt, %60, %61 : vector<4x8xf32>
    %cst_38 = arith.constant 2.000000e-01 : f32
    %63 = vector.broadcast %cst_38 : f32 to vector<4x8xf32>
    %64 = arith.mulf %63, %60 : vector<4x8xf32>
    %65 = arith.select %62, %60, %64 : vector<4x8xi1>, vector<4x8xf32>
    %cst_39 = arith.constant dense<0.000000e+00> : vector<12x8xf32>
    %66 = tpu.matmul %57, %11, %cst_39 {dimension_numbers = #tpu.dot_dimension_numbers<[1], [0], [0], [1], [0, 0, 1, 1], [], []>} : vector<12x16xf32>, vector<16x8xf32>, vector<12x8xf32> -> vector<12x8xf32>
    %67 = vector.broadcast %12 : vector<1x8xf32> to vector<12x8xf32>
    %68 = arith.addf %66, %67 : vector<12x8xf32>
    %cst_40 = arith.constant 0.000000e+00 : f32
    %69 = vector.broadcast %cst_40 : f32 to vector<12x8xf32>
    %70 = arith.cmpf ogt, %68, %69 : vector<12x8xf32>
    %cst_41 = arith.constant 2.000000e-01 : f32
    %71 = vector.broadcast %cst_41 : f32 to vector<12x8xf32>
    %72 = arith.mulf %71, %68 : vector<12x8xf32>
    %73 = arith.select %70, %68, %72 : vector<12x8xi1>, vector<12x8xf32>
    %cst_42 = arith.constant dense<0.000000e+00> : vector<4x8xf32>
    %74 = tpu.matmul %13, %73, %cst_42 {dimension_numbers = #tpu.dot_dimension_numbers<[1], [0], [0], [1], [0, 0, 1, 1], [], []>} : vector<4x12xf32>, vector<12x8xf32>, vector<4x8xf32> -> vector<4x8xf32>
    %c8_43 = arith.constant 8 : index
    %c0_44 = arith.constant 0 : index
    %75 = vector.load %arg18[%c8_43, %c0_44] : memref<64x16xf32, #tpu.memory_space<vmem>>, vector<4x8xf32>
    tpu.vector_store %arg18[%c8_43, %c0_44], %65 {strides = array<i32>} : memref<64x16xf32, #tpu.memory_space<vmem>>, vector<4x8xf32>,
    %c8_45 = arith.constant 8 : index
    %c8_46 = arith.constant 8 : index
    %76 = vector.load %arg18[%c8_45, %c8_46] : memref<64x16xf32, #tpu.memory_space<vmem>>, vector<4x8xf32>
    tpu.vector_store %arg18[%c8_45, %c8_46], %74 {strides = array<i32>} : memref<64x16xf32, #tpu.memory_space<vmem>>, vector<4x8xf32>,
    %77 = vector.extract_strided_slice %6 {offsets = [0, 48], sizes = [4, 16], strides = [1, 1]} : vector<4x256xf32> to vector<4x16xf32>
    %78 = vector.extract_strided_slice %8 {offsets = [0, 48], sizes = [12, 16], strides = [1, 1]} : vector<12x256xf32> to vector<12x16xf32>
    %cst_47 = arith.constant dense<0.000000e+00> : vector<4x8xf32>
    %79 = tpu.matmul %77, %9, %cst_47 {dimension_numbers = #tpu.dot_dimension_numbers<[1], [0], [0], [1], [0, 0, 1, 1], [], []>} : vector<4x16xf32>, vector<16x8xf32>, vector<4x8xf32> -> vector<4x8xf32>
    %80 = vector.broadcast %10 : vector<1x8xf32> to vector<4x8xf32>
    %81 = arith.addf %79, %80 : vector<4x8xf32>
    %cst_48 = arith.constant 0.000000e+00 : f32
    %82 = vector.broadcast %cst_48 : f32 to vector<4x8xf32>
    %83 = arith.cmpf ogt, %81, %82 : vector<4x8xf32>
    %cst_49 = arith.constant 2.000000e-01 : f32
    %84 = vector.broadcast %cst_49 : f32 to vector<4x8xf32>
    %85 = arith.mulf %84, %81 : vector<4x8xf32>
    %86 = arith.select %83, %81, %85 : vector<4x8xi1>, vector<4x8xf32>
    %cst_50 = arith.constant dense<0.000000e+00> : vector<12x8xf32>
    %87 = tpu.matmul %78, %11, %cst_50 {dimension_numbers = #tpu.dot_dimension_numbers<[1], [0], [0], [1], [0, 0, 1, 1], [], []>} : vector<12x16xf32>, vector<16x8xf32>, vector<12x8xf32> -> vector<12x8xf32>
    %88 = vector.broadcast %12 : vector<1x8xf32> to vector<12x8xf32>
    %89 = arith.addf %87, %88 : vector<12x8xf32>
    %cst_51 = arith.constant 0.000000e+00 : f32
    %90 = vector.broadcast %cst_51 : f32 to vector<12x8xf32>
    %91 = arith.cmpf ogt, %89, %90 : vector<12x8xf32>
    %cst_52 = arith.constant 2.000000e-01 : f32
    %92 = vector.broadcast %cst_52 : f32 to vector<12x8xf32>
    %93 = arith.mulf %92, %89 : vector<12x8xf32>
    %94 = arith.select %91, %89, %93 : vector<12x8xi1>, vector<12x8xf32>
    %cst_53 = arith.constant dense<0.000000e+00> : vector<4x8xf32>
    %95 = tpu.matmul %13, %94, %cst_53 {dimension_numbers = #tpu.dot_dimension_numbers<[1], [0], [0], [1], [0, 0, 1, 1], [], []>} : vector<4x12xf32>, vector<12x8xf32>, vector<4x8xf32> -> vector<4x8xf32>
    %c12 = arith.constant 12 : index
    %c0_54 = arith.constant 0 : index
    %96 = vector.load %arg18[%c12, %c0_54] : memref<64x16xf32, #tpu.memory_space<vmem>>, vector<4x8xf32>
    tpu.vector_store %arg18[%c12, %c0_54], %86 {strides = array<i32>} : memref<64x16xf32, #tpu.memory_space<vmem>>, vector<4x8xf32>,
    %c12_55 = arith.constant 12 : index
    %c8_56 = arith.constant 8 : index
    %97 = vector.load %arg18[%c12_55, %c8_56] : memref<64x16xf32, #tpu.memory_space<vmem>>, vector<4x8xf32>
    tpu.vector_store %arg18[%c12_55, %c8_56], %95 {strides = array<i32>} : memref<64x16xf32, #tpu.memory_space<vmem>>, vector<4x8xf32>,
    %98 = vector.extract_strided_slice %6 {offsets = [0, 64], sizes = [4, 16], strides = [1, 1]} : vector<4x256xf32> to vector<4x16xf32>
    %99 = vector.extract_strided_slice %8 {offsets = [0, 64], sizes = [12, 16], strides = [1, 1]} : vector<12x256xf32> to vector<12x16xf32>
    %cst_57 = arith.constant dense<0.000000e+00> : vector<4x8xf32>
    %100 = tpu.matmul %98, %9, %cst_57 {dimension_numbers = #tpu.dot_dimension_numbers<[1], [0], [0], [1], [0, 0, 1, 1], [], []>} : vector<4x16xf32>, vector<16x8xf32>, vector<4x8xf32> -> vector<4x8xf32>
    %101 = vector.broadcast %10 : vector<1x8xf32> to vector<4x8xf32>
    %102 = arith.addf %100, %101 : vector<4x8xf32>
    %cst_58 = arith.constant 0.000000e+00 : f32
    %103 = vector.broadcast %cst_58 : f32 to vector<4x8xf32>
    %104 = arith.cmpf ogt, %102, %103 : vector<4x8xf32>
    %cst_59 = arith.constant 2.000000e-01 : f32
    %105 = vector.broadcast %cst_59 : f32 to vector<4x8xf32>
    %106 = arith.mulf %105, %102 : vector<4x8xf32>
    %107 = arith.select %104, %102, %106 : vector<4x8xi1>, vector<4x8xf32>
    %cst_60 = arith.constant dense<0.000000e+00> : vector<12x8xf32>
    %108 = tpu.matmul %99, %11, %cst_60 {dimension_numbers = #tpu.dot_dimension_numbers<[1], [0], [0], [1], [0, 0, 1, 1], [], []>} : vector<12x16xf32>, vector<16x8xf32>, vector<12x8xf32> -> vector<12x8xf32>
    %109 = vector.broadcast %12 : vector<1x8xf32> to vector<12x8xf32>
    %110 = arith.addf %108, %109 : vector<12x8xf32>
    %cst_61 = arith.constant 0.000000e+00 : f32
    %111 = vector.broadcast %cst_61 : f32 to vector<12x8xf32>
    %112 = arith.cmpf ogt, %110, %111 : vector<12x8xf32>
    %cst_62 = arith.constant 2.000000e-01 : f32
    %113 = vector.broadcast %cst_62 : f32 to vector<12x8xf32>
    %114 = arith.mulf %113, %110 : vector<12x8xf32>
    %115 = arith.select %112, %110, %114 : vector<12x8xi1>, vector<12x8xf32>
    %cst_63 = arith.constant dense<0.000000e+00> : vector<4x8xf32>
    %116 = tpu.matmul %13, %115, %cst_63 {dimension_numbers = #tpu.dot_dimension_numbers<[1], [0], [0], [1], [0, 0, 1, 1], [], []>} : vector<4x12xf32>, vector<12x8xf32>, vector<4x8xf32> -> vector<4x8xf32>
    %c16 = arith.constant 16 : index
    %c0_64 = arith.constant 0 : index
    %117 = vector.load %arg18[%c16, %c0_64] : memref<64x16xf32, #tpu.memory_space<vmem>>, vector<4x8xf32>
    tpu.vector_store %arg18[%c16, %c0_64], %107 {strides = array<i32>} : memref<64x16xf32, #tpu.memory_space<vmem>>, vector<4x8xf32>,
    %c16_65 = arith.constant 16 : index
    %c8_66 = arith.constant 8 : index
    %118 = vector.load %arg18[%c16_65, %c8_66] : memref<64x16xf32, #tpu.memory_space<vmem>>, vector<4x8xf32>
    tpu.vector_store %arg18[%c16_65, %c8_66], %116 {strides = array<i32>} : memref<64x16xf32, #tpu.memory_space<vmem>>, vector<4x8xf32>,
    %119 = vector.extract_strided_slice %6 {offsets = [0, 80], sizes = [4, 16], strides = [1, 1]} : vector<4x256xf32> to vector<4x16xf32>
    %120 = vector.extract_strided_slice %8 {offsets = [0, 80], sizes = [12, 16], strides = [1, 1]} : vector<12x256xf32> to vector<12x16xf32>
    %cst_67 = arith.constant dense<0.000000e+00> : vector<4x8xf32>
    %121 = tpu.matmul %119, %9, %cst_67 {dimension_numbers = #tpu.dot_dimension_numbers<[1], [0], [0], [1], [0, 0, 1, 1], [], []>} : vector<4x16xf32>, vector<16x8xf32>, vector<4x8xf32> -> vector<4x8xf32>
    %122 = vector.broadcast %10 : vector<1x8xf32> to vector<4x8xf32>
    %123 = arith.addf %121, %122 : vector<4x8xf32>
    %cst_68 = arith.constant 0.000000e+00 : f32
    %124 = vector.broadcast %cst_68 : f32 to vector<4x8xf32>
    %125 = arith.cmpf ogt, %123, %124 : vector<4x8xf32>
    %cst_69 = arith.constant 2.000000e-01 : f32
    %126 = vector.broadcast %cst_69 : f32 to vector<4x8xf32>
    %127 = arith.mulf %126, %123 : vector<4x8xf32>
    %128 = arith.select %125, %123, %127 : vector<4x8xi1>, vector<4x8xf32>
    %cst_70 = arith.constant dense<0.000000e+00> : vector<12x8xf32>
    %129 = tpu.matmul %120, %11, %cst_70 {dimension_numbers = #tpu.dot_dimension_numbers<[1], [0], [0], [1], [0, 0, 1, 1], [], []>} : vector<12x16xf32>, vector<16x8xf32>, vector<12x8xf32> -> vector<12x8xf32>
    %130 = vector.broadcast %12 : vector<1x8xf32> to vector<12x8xf32>
    %131 = arith.addf %129, %130 : vector<12x8xf32>
    %cst_71 = arith.constant 0.000000e+00 : f32
    %132 = vector.broadcast %cst_71 : f32 to vector<12x8xf32>
    %133 = arith.cmpf ogt, %131, %132 : vector<12x8xf32>
    %cst_72 = arith.constant 2.000000e-01 : f32
    %134 = vector.broadcast %cst_72 : f32 to vector<12x8xf32>
    %135 = arith.mulf %134, %131 : vector<12x8xf32>
    %136 = arith.select %133, %131, %135 : vector<12x8xi1>, vector<12x8xf32>
    %cst_73 = arith.constant dense<0.000000e+00> : vector<4x8xf32>
    %137 = tpu.matmul %13, %136, %cst_73 {dimension_numbers = #tpu.dot_dimension_numbers<[1], [0], [0], [1], [0, 0, 1, 1], [], []>} : vector<4x12xf32>, vector<12x8xf32>, vector<4x8xf32> -> vector<4x8xf32>
    %c20 = arith.constant 20 : index
    %c0_74 = arith.constant 0 : index
    %138 = vector.load %arg18[%c20, %c0_74] : memref<64x16xf32, #tpu.memory_space<vmem>>, vector<4x8xf32>
    tpu.vector_store %arg18[%c20, %c0_74], %128 {strides = array<i32>} : memref<64x16xf32, #tpu.memory_space<vmem>>, vector<4x8xf32>,
    %c20_75 = arith.constant 20 : index
    %c8_76 = arith.constant 8 : index
    %139 = vector.load %arg18[%c20_75, %c8_76] : memref<64x16xf32, #tpu.memory_space<vmem>>, vector<4x8xf32>
    tpu.vector_store %arg18[%c20_75, %c8_76], %137 {strides = array<i32>} : memref<64x16xf32, #tpu.memory_space<vmem>>, vector<4x8xf32>,
    %140 = vector.extract_strided_slice %6 {offsets = [0, 96], sizes = [4, 16], strides = [1, 1]} : vector<4x256xf32> to vector<4x16xf32>
    %141 = vector.extract_strided_slice %8 {offsets = [0, 96], sizes = [12, 16], strides = [1, 1]} : vector<12x256xf32> to vector<12x16xf32>
    %cst_77 = arith.constant dense<0.000000e+00> : vector<4x8xf32>
    %142 = tpu.matmul %140, %9, %cst_77 {dimension_numbers = #tpu.dot_dimension_numbers<[1], [0], [0], [1], [0, 0, 1, 1], [], []>} : vector<4x16xf32>, vector<16x8xf32>, vector<4x8xf32> -> vector<4x8xf32>
    %143 = vector.broadcast %10 : vector<1x8xf32> to vector<4x8xf32>
    %144 = arith.addf %142, %143 : vector<4x8xf32>
    %cst_78 = arith.constant 0.000000e+00 : f32
    %145 = vector.broadcast %cst_78 : f32 to vector<4x8xf32>
    %146 = arith.cmpf ogt, %144, %145 : vector<4x8xf32>
    %cst_79 = arith.constant 2.000000e-01 : f32
    %147 = vector.broadcast %cst_79 : f32 to vector<4x8xf32>
    %148 = arith.mulf %147, %144 : vector<4x8xf32>
    %149 = arith.select %146, %144, %148 : vector<4x8xi1>, vector<4x8xf32>
    %cst_80 = arith.constant dense<0.000000e+00> : vector<12x8xf32>
    %150 = tpu.matmul %141, %11, %cst_80 {dimension_numbers = #tpu.dot_dimension_numbers<[1], [0], [0], [1], [0, 0, 1, 1], [], []>} : vector<12x16xf32>, vector<16x8xf32>, vector<12x8xf32> -> vector<12x8xf32>
    %151 = vector.broadcast %12 : vector<1x8xf32> to vector<12x8xf32>
    %152 = arith.addf %150, %151 : vector<12x8xf32>
    %cst_81 = arith.constant 0.000000e+00 : f32
    %153 = vector.broadcast %cst_81 : f32 to vector<12x8xf32>
    %154 = arith.cmpf ogt, %152, %153 : vector<12x8xf32>
    %cst_82 = arith.constant 2.000000e-01 : f32
    %155 = vector.broadcast %cst_82 : f32 to vector<12x8xf32>
    %156 = arith.mulf %155, %152 : vector<12x8xf32>
    %157 = arith.select %154, %152, %156 : vector<12x8xi1>, vector<12x8xf32>
    %cst_83 = arith.constant dense<0.000000e+00> : vector<4x8xf32>
    %158 = tpu.matmul %13, %157, %cst_83 {dimension_numbers = #tpu.dot_dimension_numbers<[1], [0], [0], [1], [0, 0, 1, 1], [], []>} : vector<4x12xf32>, vector<12x8xf32>, vector<4x8xf32> -> vector<4x8xf32>
    %c24 = arith.constant 24 : index
    %c0_84 = arith.constant 0 : index
    %159 = vector.load %arg18[%c24, %c0_84] : memref<64x16xf32, #tpu.memory_space<vmem>>, vector<4x8xf32>
    tpu.vector_store %arg18[%c24, %c0_84], %149 {strides = array<i32>} : memref<64x16xf32, #tpu.memory_space<vmem>>, vector<4x8xf32>,
    %c24_85 = arith.constant 24 : index
    %c8_86 = arith.constant 8 : index
    %160 = vector.load %arg18[%c24_85, %c8_86] : memref<64x16xf32, #tpu.memory_space<vmem>>, vector<4x8xf32>
    tpu.vector_store %arg18[%c24_85, %c8_86], %158 {strides = array<i32>} : memref<64x16xf32, #tpu.memory_space<vmem>>, vector<4x8xf32>,
    %161 = vector.extract_strided_slice %6 {offsets = [0, 112], sizes = [4, 16], strides = [1, 1]} : vector<4x256xf32> to vector<4x16xf32>
    %162 = vector.extract_strided_slice %8 {offsets = [0, 112], sizes = [12, 16], strides = [1, 1]} : vector<12x256xf32> to vector<12x16xf32>
    %cst_87 = arith.constant dense<0.000000e+00> : vector<4x8xf32>
    %163 = tpu.matmul %161, %9, %cst_87 {dimension_numbers = #tpu.dot_dimension_numbers<[1], [0], [0], [1], [0, 0, 1, 1], [], []>} : vector<4x16xf32>, vector<16x8xf32>, vector<4x8xf32> -> vector<4x8xf32>
    %164 = vector.broadcast %10 : vector<1x8xf32> to vector<4x8xf32>
    %165 = arith.addf %163, %164 : vector<4x8xf32>
    %cst_88 = arith.constant 0.000000e+00 : f32
    %166 = vector.broadcast %cst_88 : f32 to vector<4x8xf32>
    %167 = arith.cmpf ogt, %165, %166 : vector<4x8xf32>
    %cst_89 = arith.constant 2.000000e-01 : f32
    %168 = vector.broadcast %cst_89 : f32 to vector<4x8xf32>
    %169 = arith.mulf %168, %165 : vector<4x8xf32>
    %170 = arith.select %167, %165, %169 : vector<4x8xi1>, vector<4x8xf32>
    %cst_90 = arith.constant dense<0.000000e+00> : vector<12x8xf32>
    %171 = tpu.matmul %162, %11, %cst_90 {dimension_numbers = #tpu.dot_dimension_numbers<[1], [0], [0], [1], [0, 0, 1, 1], [], []>} : vector<12x16xf32>, vector<16x8xf32>, vector<12x8xf32> -> vector<12x8xf32>
    %172 = vector.broadcast %12 : vector<1x8xf32> to vector<12x8xf32>
    %173 = arith.addf %171, %172 : vector<12x8xf32>
    %cst_91 = arith.constant 0.000000e+00 : f32
    %174 = vector.broadcast %cst_91 : f32 to vector<12x8xf32>
    %175 = arith.cmpf ogt, %173, %174 : vector<12x8xf32>
    %cst_92 = arith.constant 2.000000e-01 : f32
    %176 = vector.broadcast %cst_92 : f32 to vector<12x8xf32>
    %177 = arith.mulf %176, %173 : vector<12x8xf32>
    %178 = arith.select %175, %173, %177 : vector<12x8xi1>, vector<12x8xf32>
    %cst_93 = arith.constant dense<0.000000e+00> : vector<4x8xf32>
    %179 = tpu.matmul %13, %178, %cst_93 {dimension_numbers = #tpu.dot_dimension_numbers<[1], [0], [0], [1], [0, 0, 1, 1], [], []>} : vector<4x12xf32>, vector<12x8xf32>, vector<4x8xf32> -> vector<4x8xf32>
    %c28 = arith.constant 28 : index
    %c0_94 = arith.constant 0 : index
    %180 = vector.load %arg18[%c28, %c0_94] : memref<64x16xf32, #tpu.memory_space<vmem>>, vector<4x8xf32>
    tpu.vector_store %arg18[%c28, %c0_94], %170 {strides = array<i32>} : memref<64x16xf32, #tpu.memory_space<vmem>>, vector<4x8xf32>,
    %c28_95 = arith.constant 28 : index
    %c8_96 = arith.constant 8 : index
    %181 = vector.load %arg18[%c28_95, %c8_96] : memref<64x16xf32, #tpu.memory_space<vmem>>, vector<4x8xf32>
    tpu.vector_store %arg18[%c28_95, %c8_96], %179 {strides = array<i32>} : memref<64x16xf32, #tpu.memory_space<vmem>>, vector<4x8xf32>,
    %182 = vector.extract_strided_slice %6 {offsets = [0, 128], sizes = [4, 16], strides = [1, 1]} : vector<4x256xf32> to vector<4x16xf32>
    %183 = vector.extract_strided_slice %8 {offsets = [0, 128], sizes = [12, 16], strides = [1, 1]} : vector<12x256xf32> to vector<12x16xf32>
    %cst_97 = arith.constant dense<0.000000e+00> : vector<4x8xf32>
    %184 = tpu.matmul %182, %9, %cst_97 {dimension_numbers = #tpu.dot_dimension_numbers<[1], [0], [0], [1], [0, 0, 1, 1], [], []>} : vector<4x16xf32>, vector<16x8xf32>, vector<4x8xf32> -> vector<4x8xf32>
    %185 = vector.broadcast %10 : vector<1x8xf32> to vector<4x8xf32>
    %186 = arith.addf %184, %185 : vector<4x8xf32>
    %cst_98 = arith.constant 0.000000e+00 : f32
    %187 = vector.broadcast %cst_98 : f32 to vector<4x8xf32>
    %188 = arith.cmpf ogt, %186, %187 : vector<4x8xf32>
    %cst_99 = arith.constant 2.000000e-01 : f32
    %189 = vector.broadcast %cst_99 : f32 to vector<4x8xf32>
    %190 = arith.mulf %189, %186 : vector<4x8xf32>
    %191 = arith.select %188, %186, %190 : vector<4x8xi1>, vector<4x8xf32>
    %cst_100 = arith.constant dense<0.000000e+00> : vector<12x8xf32>
    %192 = tpu.matmul %183, %11, %cst_100 {dimension_numbers = #tpu.dot_dimension_numbers<[1], [0], [0], [1], [0, 0, 1, 1], [], []>} : vector<12x16xf32>, vector<16x8xf32>, vector<12x8xf32> -> vector<12x8xf32>
    %193 = vector.broadcast %12 : vector<1x8xf32> to vector<12x8xf32>
    %194 = arith.addf %192, %193 : vector<12x8xf32>
    %cst_101 = arith.constant 0.000000e+00 : f32
    %195 = vector.broadcast %cst_101 : f32 to vector<12x8xf32>
    %196 = arith.cmpf ogt, %194, %195 : vector<12x8xf32>
    %cst_102 = arith.constant 2.000000e-01 : f32
    %197 = vector.broadcast %cst_102 : f32 to vector<12x8xf32>
    %198 = arith.mulf %197, %194 : vector<12x8xf32>
    %199 = arith.select %196, %194, %198 : vector<12x8xi1>, vector<12x8xf32>
    %cst_103 = arith.constant dense<0.000000e+00> : vector<4x8xf32>
    %200 = tpu.matmul %13, %199, %cst_103 {dimension_numbers = #tpu.dot_dimension_numbers<[1], [0], [0], [1], [0, 0, 1, 1], [], []>} : vector<4x12xf32>, vector<12x8xf32>, vector<4x8xf32> -> vector<4x8xf32>
    %c32 = arith.constant 32 : index
    %c0_104 = arith.constant 0 : index
    %201 = vector.load %arg18[%c32, %c0_104] : memref<64x16xf32, #tpu.memory_space<vmem>>, vector<4x8xf32>
    tpu.vector_store %arg18[%c32, %c0_104], %191 {strides = array<i32>} : memref<64x16xf32, #tpu.memory_space<vmem>>, vector<4x8xf32>,
    %c32_105 = arith.constant 32 : index
    %c8_106 = arith.constant 8 : index
    %202 = vector.load %arg18[%c32_105, %c8_106] : memref<64x16xf32, #tpu.memory_space<vmem>>, vector<4x8xf32>
    tpu.vector_store %arg18[%c32_105, %c8_106], %200 {strides = array<i32>} : memref<64x16xf32, #tpu.memory_space<vmem>>, vector<4x8xf32>,
    %203 = vector.extract_strided_slice %6 {offsets = [0, 144], sizes = [4, 16], strides = [1, 1]} : vector<4x256xf32> to vector<4x16xf32>
    %204 = vector.extract_strided_slice %8 {offsets = [0, 144], sizes = [12, 16], strides = [1, 1]} : vector<12x256xf32> to vector<12x16xf32>
    %cst_107 = arith.constant dense<0.000000e+00> : vector<4x8xf32>
    %205 = tpu.matmul %203, %9, %cst_107 {dimension_numbers = #tpu.dot_dimension_numbers<[1], [0], [0], [1], [0, 0, 1, 1], [], []>} : vector<4x16xf32>, vector<16x8xf32>, vector<4x8xf32> -> vector<4x8xf32>
    %206 = vector.broadcast %10 : vector<1x8xf32> to vector<4x8xf32>
    %207 = arith.addf %205, %206 : vector<4x8xf32>
    %cst_108 = arith.constant 0.000000e+00 : f32
    %208 = vector.broadcast %cst_108 : f32 to vector<4x8xf32>
    %209 = arith.cmpf ogt, %207, %208 : vector<4x8xf32>
    %cst_109 = arith.constant 2.000000e-01 : f32
    %210 = vector.broadcast %cst_109 : f32 to vector<4x8xf32>
    %211 = arith.mulf %210, %207 : vector<4x8xf32>
    %212 = arith.select %209, %207, %211 : vector<4x8xi1>, vector<4x8xf32>
    %cst_110 = arith.constant dense<0.000000e+00> : vector<12x8xf32>
    %213 = tpu.matmul %204, %11, %cst_110 {dimension_numbers = #tpu.dot_dimension_numbers<[1], [0], [0], [1], [0, 0, 1, 1], [], []>} : vector<12x16xf32>, vector<16x8xf32>, vector<12x8xf32> -> vector<12x8xf32>
    %214 = vector.broadcast %12 : vector<1x8xf32> to vector<12x8xf32>
    %215 = arith.addf %213, %214 : vector<12x8xf32>
    %cst_111 = arith.constant 0.000000e+00 : f32
    %216 = vector.broadcast %cst_111 : f32 to vector<12x8xf32>
    %217 = arith.cmpf ogt, %215, %216 : vector<12x8xf32>
    %cst_112 = arith.constant 2.000000e-01 : f32
    %218 = vector.broadcast %cst_112 : f32 to vector<12x8xf32>
    %219 = arith.mulf %218, %215 : vector<12x8xf32>
    %220 = arith.select %217, %215, %219 : vector<12x8xi1>, vector<12x8xf32>
    %cst_113 = arith.constant dense<0.000000e+00> : vector<4x8xf32>
    %221 = tpu.matmul %13, %220, %cst_113 {dimension_numbers = #tpu.dot_dimension_numbers<[1], [0], [0], [1], [0, 0, 1, 1], [], []>} : vector<4x12xf32>, vector<12x8xf32>, vector<4x8xf32> -> vector<4x8xf32>
    %c36 = arith.constant 36 : index
    %c0_114 = arith.constant 0 : index
    %222 = vector.load %arg18[%c36, %c0_114] : memref<64x16xf32, #tpu.memory_space<vmem>>, vector<4x8xf32>
    tpu.vector_store %arg18[%c36, %c0_114], %212 {strides = array<i32>} : memref<64x16xf32, #tpu.memory_space<vmem>>, vector<4x8xf32>,
    %c36_115 = arith.constant 36 : index
    %c8_116 = arith.constant 8 : index
    %223 = vector.load %arg18[%c36_115, %c8_116] : memref<64x16xf32, #tpu.memory_space<vmem>>, vector<4x8xf32>
    tpu.vector_store %arg18[%c36_115, %c8_116], %221 {strides = array<i32>} : memref<64x16xf32, #tpu.memory_space<vmem>>, vector<4x8xf32>,
    %224 = vector.extract_strided_slice %6 {offsets = [0, 160], sizes = [4, 16], strides = [1, 1]} : vector<4x256xf32> to vector<4x16xf32>
    %225 = vector.extract_strided_slice %8 {offsets = [0, 160], sizes = [12, 16], strides = [1, 1]} : vector<12x256xf32> to vector<12x16xf32>
    %cst_117 = arith.constant dense<0.000000e+00> : vector<4x8xf32>
    %226 = tpu.matmul %224, %9, %cst_117 {dimension_numbers = #tpu.dot_dimension_numbers<[1], [0], [0], [1], [0, 0, 1, 1], [], []>} : vector<4x16xf32>, vector<16x8xf32>, vector<4x8xf32> -> vector<4x8xf32>
    %227 = vector.broadcast %10 : vector<1x8xf32> to vector<4x8xf32>
    %228 = arith.addf %226, %227 : vector<4x8xf32>
    %cst_118 = arith.constant 0.000000e+00 : f32
    %229 = vector.broadcast %cst_118 : f32 to vector<4x8xf32>
    %230 = arith.cmpf ogt, %228, %229 : vector<4x8xf32>
    %cst_119 = arith.constant 2.000000e-01 : f32
    %231 = vector.broadcast %cst_119 : f32 to vector<4x8xf32>
    %232 = arith.mulf %231, %228 : vector<4x8xf32>
    %233 = arith.select %230, %228, %232 : vector<4x8xi1>, vector<4x8xf32>
    %cst_120 = arith.constant dense<0.000000e+00> : vector<12x8xf32>
    %234 = tpu.matmul %225, %11, %cst_120 {dimension_numbers = #tpu.dot_dimension_numbers<[1], [0], [0], [1], [0, 0, 1, 1], [], []>} : vector<12x16xf32>, vector<16x8xf32>, vector<12x8xf32> -> vector<12x8xf32>
    %235 = vector.broadcast %12 : vector<1x8xf32> to vector<12x8xf32>
    %236 = arith.addf %234, %235 : vector<12x8xf32>
    %cst_121 = arith.constant 0.000000e+00 : f32
    %237 = vector.broadcast %cst_121 : f32 to vector<12x8xf32>
    %238 = arith.cmpf ogt, %236, %237 : vector<12x8xf32>
    %cst_122 = arith.constant 2.000000e-01 : f32
    %239 = vector.broadcast %cst_122 : f32 to vector<12x8xf32>
    %240 = arith.mulf %239, %236 : vector<12x8xf32>
    %241 = arith.select %238, %236, %240 : vector<12x8xi1>, vector<12x8xf32>
    %cst_123 = arith.constant dense<0.000000e+00> : vector<4x8xf32>
    %242 = tpu.matmul %13, %241, %cst_123 {dimension_numbers = #tpu.dot_dimension_numbers<[1], [0], [0], [1], [0, 0, 1, 1], [], []>} : vector<4x12xf32>, vector<12x8xf32>, vector<4x8xf32> -> vector<4x8xf32>
    %c40 = arith.constant 40 : index
    %c0_124 = arith.constant 0 : index
    %243 = vector.load %arg18[%c40, %c0_124] : memref<64x16xf32, #tpu.memory_space<vmem>>, vector<4x8xf32>
    tpu.vector_store %arg18[%c40, %c0_124], %233 {strides = array<i32>} : memref<64x16xf32, #tpu.memory_space<vmem>>, vector<4x8xf32>,
    %c40_125 = arith.constant 40 : index
    %c8_126 = arith.constant 8 : index
    %244 = vector.load %arg18[%c40_125, %c8_126] : memref<64x16xf32, #tpu.memory_space<vmem>>, vector<4x8xf32>
    tpu.vector_store %arg18[%c40_125, %c8_126], %242 {strides = array<i32>} : memref<64x16xf32, #tpu.memory_space<vmem>>, vector<4x8xf32>,
    %245 = vector.extract_strided_slice %6 {offsets = [0, 176], sizes = [4, 16], strides = [1, 1]} : vector<4x256xf32> to vector<4x16xf32>
    %246 = vector.extract_strided_slice %8 {offsets = [0, 176], sizes = [12, 16], strides = [1, 1]} : vector<12x256xf32> to vector<12x16xf32>
    %cst_127 = arith.constant dense<0.000000e+00> : vector<4x8xf32>
    %247 = tpu.matmul %245, %9, %cst_127 {dimension_numbers = #tpu.dot_dimension_numbers<[1], [0], [0], [1], [0, 0, 1, 1], [], []>} : vector<4x16xf32>, vector<16x8xf32>, vector<4x8xf32> -> vector<4x8xf32>
    %248 = vector.broadcast %10 : vector<1x8xf32> to vector<4x8xf32>
    %249 = arith.addf %247, %248 : vector<4x8xf32>
    %cst_128 = arith.constant 0.000000e+00 : f32
    %250 = vector.broadcast %cst_128 : f32 to vector<4x8xf32>
    %251 = arith.cmpf ogt, %249, %250 : vector<4x8xf32>
    %cst_129 = arith.constant 2.000000e-01 : f32
    %252 = vector.broadcast %cst_129 : f32 to vector<4x8xf32>
    %253 = arith.mulf %252, %249 : vector<4x8xf32>
    %254 = arith.select %251, %249, %253 : vector<4x8xi1>, vector<4x8xf32>
    %cst_130 = arith.constant dense<0.000000e+00> : vector<12x8xf32>
    %255 = tpu.matmul %246, %11, %cst_130 {dimension_numbers = #tpu.dot_dimension_numbers<[1], [0], [0], [1], [0, 0, 1, 1], [], []>} : vector<12x16xf32>, vector<16x8xf32>, vector<12x8xf32> -> vector<12x8xf32>
    %256 = vector.broadcast %12 : vector<1x8xf32> to vector<12x8xf32>
    %257 = arith.addf %255, %256 : vector<12x8xf32>
    %cst_131 = arith.constant 0.000000e+00 : f32
    %258 = vector.broadcast %cst_131 : f32 to vector<12x8xf32>
    %259 = arith.cmpf ogt, %257, %258 : vector<12x8xf32>
    %cst_132 = arith.constant 2.000000e-01 : f32
    %260 = vector.broadcast %cst_132 : f32 to vector<12x8xf32>
    %261 = arith.mulf %260, %257 : vector<12x8xf32>
    %262 = arith.select %259, %257, %261 : vector<12x8xi1>, vector<12x8xf32>
    %cst_133 = arith.constant dense<0.000000e+00> : vector<4x8xf32>
    %263 = tpu.matmul %13, %262, %cst_133 {dimension_numbers = #tpu.dot_dimension_numbers<[1], [0], [0], [1], [0, 0, 1, 1], [], []>} : vector<4x12xf32>, vector<12x8xf32>, vector<4x8xf32> -> vector<4x8xf32>
    %c44 = arith.constant 44 : index
    %c0_134 = arith.constant 0 : index
    %264 = vector.load %arg18[%c44, %c0_134] : memref<64x16xf32, #tpu.memory_space<vmem>>, vector<4x8xf32>
    tpu.vector_store %arg18[%c44, %c0_134], %254 {strides = array<i32>} : memref<64x16xf32, #tpu.memory_space<vmem>>, vector<4x8xf32>,
    %c44_135 = arith.constant 44 : index
    %c8_136 = arith.constant 8 : index
    %265 = vector.load %arg18[%c44_135, %c8_136] : memref<64x16xf32, #tpu.memory_space<vmem>>, vector<4x8xf32>
    tpu.vector_store %arg18[%c44_135, %c8_136], %263 {strides = array<i32>} : memref<64x16xf32, #tpu.memory_space<vmem>>, vector<4x8xf32>,
    %266 = vector.extract_strided_slice %6 {offsets = [0, 192], sizes = [4, 16], strides = [1, 1]} : vector<4x256xf32> to vector<4x16xf32>
    %267 = vector.extract_strided_slice %8 {offsets = [0, 192], sizes = [12, 16], strides = [1, 1]} : vector<12x256xf32> to vector<12x16xf32>
    %cst_137 = arith.constant dense<0.000000e+00> : vector<4x8xf32>
    %268 = tpu.matmul %266, %9, %cst_137 {dimension_numbers = #tpu.dot_dimension_numbers<[1], [0], [0], [1], [0, 0, 1, 1], [], []>} : vector<4x16xf32>, vector<16x8xf32>, vector<4x8xf32> -> vector<4x8xf32>
    %269 = vector.broadcast %10 : vector<1x8xf32> to vector<4x8xf32>
    %270 = arith.addf %268, %269 : vector<4x8xf32>
    %cst_138 = arith.constant 0.000000e+00 : f32
    %271 = vector.broadcast %cst_138 : f32 to vector<4x8xf32>
    %272 = arith.cmpf ogt, %270, %271 : vector<4x8xf32>
    %cst_139 = arith.constant 2.000000e-01 : f32
    %273 = vector.broadcast %cst_139 : f32 to vector<4x8xf32>
    %274 = arith.mulf %273, %270 : vector<4x8xf32>
    %275 = arith.select %272, %270, %274 : vector<4x8xi1>, vector<4x8xf32>
    %cst_140 = arith.constant dense<0.000000e+00> : vector<12x8xf32>
    %276 = tpu.matmul %267, %11, %cst_140 {dimension_numbers = #tpu.dot_dimension_numbers<[1], [0], [0], [1], [0, 0, 1, 1], [], []>} : vector<12x16xf32>, vector<16x8xf32>, vector<12x8xf32> -> vector<12x8xf32>
    %277 = vector.broadcast %12 : vector<1x8xf32> to vector<12x8xf32>
    %278 = arith.addf %276, %277 : vector<12x8xf32>
    %cst_141 = arith.constant 0.000000e+00 : f32
    %279 = vector.broadcast %cst_141 : f32 to vector<12x8xf32>
    %280 = arith.cmpf ogt, %278, %279 : vector<12x8xf32>
    %cst_142 = arith.constant 2.000000e-01 : f32
    %281 = vector.broadcast %cst_142 : f32 to vector<12x8xf32>
    %282 = arith.mulf %281, %278 : vector<12x8xf32>
    %283 = arith.select %280, %278, %282 : vector<12x8xi1>, vector<12x8xf32>
    %cst_143 = arith.constant dense<0.000000e+00> : vector<4x8xf32>
    %284 = tpu.matmul %13, %283, %cst_143 {dimension_numbers = #tpu.dot_dimension_numbers<[1], [0], [0], [1], [0, 0, 1, 1], [], []>} : vector<4x12xf32>, vector<12x8xf32>, vector<4x8xf32> -> vector<4x8xf32>
    %c48 = arith.constant 48 : index
    %c0_144 = arith.constant 0 : index
    %285 = vector.load %arg18[%c48, %c0_144] : memref<64x16xf32, #tpu.memory_space<vmem>>, vector<4x8xf32>
    tpu.vector_store %arg18[%c48, %c0_144], %275 {strides = array<i32>} : memref<64x16xf32, #tpu.memory_space<vmem>>, vector<4x8xf32>,
    %c48_145 = arith.constant 48 : index
    %c8_146 = arith.constant 8 : index
    %286 = vector.load %arg18[%c48_145, %c8_146] : memref<64x16xf32, #tpu.memory_space<vmem>>, vector<4x8xf32>
    tpu.vector_store %arg18[%c48_145, %c8_146], %284 {strides = array<i32>} : memref<64x16xf32, #tpu.memory_space<vmem>>, vector<4x8xf32>,
    %287 = vector.extract_strided_slice %6 {offsets = [0, 208], sizes = [4, 16], strides = [1, 1]} : vector<4x256xf32> to vector<4x16xf32>
    %288 = vector.extract_strided_slice %8 {offsets = [0, 208], sizes = [12, 16], strides = [1, 1]} : vector<12x256xf32> to vector<12x16xf32>
    %cst_147 = arith.constant dense<0.000000e+00> : vector<4x8xf32>
    %289 = tpu.matmul %287, %9, %cst_147 {dimension_numbers = #tpu.dot_dimension_numbers<[1], [0], [0], [1], [0, 0, 1, 1], [], []>} : vector<4x16xf32>, vector<16x8xf32>, vector<4x8xf32> -> vector<4x8xf32>
    %290 = vector.broadcast %10 : vector<1x8xf32> to vector<4x8xf32>
    %291 = arith.addf %289, %290 : vector<4x8xf32>
    %cst_148 = arith.constant 0.000000e+00 : f32
    %292 = vector.broadcast %cst_148 : f32 to vector<4x8xf32>
    %293 = arith.cmpf ogt, %291, %292 : vector<4x8xf32>
    %cst_149 = arith.constant 2.000000e-01 : f32
    %294 = vector.broadcast %cst_149 : f32 to vector<4x8xf32>
    %295 = arith.mulf %294, %291 : vector<4x8xf32>
    %296 = arith.select %293, %291, %295 : vector<4x8xi1>, vector<4x8xf32>
    %cst_150 = arith.constant dense<0.000000e+00> : vector<12x8xf32>
    %297 = tpu.matmul %288, %11, %cst_150 {dimension_numbers = #tpu.dot_dimension_numbers<[1], [0], [0], [1], [0, 0, 1, 1], [], []>} : vector<12x16xf32>, vector<16x8xf32>, vector<12x8xf32> -> vector<12x8xf32>
    %298 = vector.broadcast %12 : vector<1x8xf32> to vector<12x8xf32>
    %299 = arith.addf %297, %298 : vector<12x8xf32>
    %cst_151 = arith.constant 0.000000e+00 : f32
    %300 = vector.broadcast %cst_151 : f32 to vector<12x8xf32>
    %301 = arith.cmpf ogt, %299, %300 : vector<12x8xf32>
    %cst_152 = arith.constant 2.000000e-01 : f32
    %302 = vector.broadcast %cst_152 : f32 to vector<12x8xf32>
    %303 = arith.mulf %302, %299 : vector<12x8xf32>
    %304 = arith.select %301, %299, %303 : vector<12x8xi1>, vector<12x8xf32>
    %cst_153 = arith.constant dense<0.000000e+00> : vector<4x8xf32>
    %305 = tpu.matmul %13, %304, %cst_153 {dimension_numbers = #tpu.dot_dimension_numbers<[1], [0], [0], [1], [0, 0, 1, 1], [], []>} : vector<4x12xf32>, vector<12x8xf32>, vector<4x8xf32> -> vector<4x8xf32>
    %c52 = arith.constant 52 : index
    %c0_154 = arith.constant 0 : index
    %306 = vector.load %arg18[%c52, %c0_154] : memref<64x16xf32, #tpu.memory_space<vmem>>, vector<4x8xf32>
    tpu.vector_store %arg18[%c52, %c0_154], %296 {strides = array<i32>} : memref<64x16xf32, #tpu.memory_space<vmem>>, vector<4x8xf32>,
    %c52_155 = arith.constant 52 : index
    %c8_156 = arith.constant 8 : index
    %307 = vector.load %arg18[%c52_155, %c8_156] : memref<64x16xf32, #tpu.memory_space<vmem>>, vector<4x8xf32>
    tpu.vector_store %arg18[%c52_155, %c8_156], %305 {strides = array<i32>} : memref<64x16xf32, #tpu.memory_space<vmem>>, vector<4x8xf32>,
    %308 = vector.extract_strided_slice %6 {offsets = [0, 224], sizes = [4, 16], strides = [1, 1]} : vector<4x256xf32> to vector<4x16xf32>
    %309 = vector.extract_strided_slice %8 {offsets = [0, 224], sizes = [12, 16], strides = [1, 1]} : vector<12x256xf32> to vector<12x16xf32>
    %cst_157 = arith.constant dense<0.000000e+00> : vector<4x8xf32>
    %310 = tpu.matmul %308, %9, %cst_157 {dimension_numbers = #tpu.dot_dimension_numbers<[1], [0], [0], [1], [0, 0, 1, 1], [], []>} : vector<4x16xf32>, vector<16x8xf32>, vector<4x8xf32> -> vector<4x8xf32>
    %311 = vector.broadcast %10 : vector<1x8xf32> to vector<4x8xf32>
    %312 = arith.addf %310, %311 : vector<4x8xf32>
    %cst_158 = arith.constant 0.000000e+00 : f32
    %313 = vector.broadcast %cst_158 : f32 to vector<4x8xf32>
    %314 = arith.cmpf ogt, %312, %313 : vector<4x8xf32>
    %cst_159 = arith.constant 2.000000e-01 : f32
    %315 = vector.broadcast %cst_159 : f32 to vector<4x8xf32>
    %316 = arith.mulf %315, %312 : vector<4x8xf32>
    %317 = arith.select %314, %312, %316 : vector<4x8xi1>, vector<4x8xf32>
    %cst_160 = arith.constant dense<0.000000e+00> : vector<12x8xf32>
    %318 = tpu.matmul %309, %11, %cst_160 {dimension_numbers = #tpu.dot_dimension_numbers<[1], [0], [0], [1], [0, 0, 1, 1], [], []>} : vector<12x16xf32>, vector<16x8xf32>, vector<12x8xf32> -> vector<12x8xf32>
    %319 = vector.broadcast %12 : vector<1x8xf32> to vector<12x8xf32>
    %320 = arith.addf %318, %319 : vector<12x8xf32>
    %cst_161 = arith.constant 0.000000e+00 : f32
    %321 = vector.broadcast %cst_161 : f32 to vector<12x8xf32>
    %322 = arith.cmpf ogt, %320, %321 : vector<12x8xf32>
    %cst_162 = arith.constant 2.000000e-01 : f32
    %323 = vector.broadcast %cst_162 : f32 to vector<12x8xf32>
    %324 = arith.mulf %323, %320 : vector<12x8xf32>
    %325 = arith.select %322, %320, %324 : vector<12x8xi1>, vector<12x8xf32>
    %cst_163 = arith.constant dense<0.000000e+00> : vector<4x8xf32>
    %326 = tpu.matmul %13, %325, %cst_163 {dimension_numbers = #tpu.dot_dimension_numbers<[1], [0], [0], [1], [0, 0, 1, 1], [], []>} : vector<4x12xf32>, vector<12x8xf32>, vector<4x8xf32> -> vector<4x8xf32>
    %c56 = arith.constant 56 : index
    %c0_164 = arith.constant 0 : index
    %327 = vector.load %arg18[%c56, %c0_164] : memref<64x16xf32, #tpu.memory_space<vmem>>, vector<4x8xf32>
    tpu.vector_store %arg18[%c56, %c0_164], %317 {strides = array<i32>} : memref<64x16xf32, #tpu.memory_space<vmem>>, vector<4x8xf32>,
    %c56_165 = arith.constant 56 : index
    %c8_166 = arith.constant 8 : index
    %328 = vector.load %arg18[%c56_165, %c8_166] : memref<64x16xf32, #tpu.memory_space<vmem>>, vector<4x8xf32>
    tpu.vector_store %arg18[%c56_165, %c8_166], %326 {strides = array<i32>} : memref<64x16xf32, #tpu.memory_space<vmem>>, vector<4x8xf32>,
    %329 = vector.extract_strided_slice %6 {offsets = [0, 240], sizes = [4, 16], strides = [1, 1]} : vector<4x256xf32> to vector<4x16xf32>
    %330 = vector.extract_strided_slice %8 {offsets = [0, 240], sizes = [12, 16], strides = [1, 1]} : vector<12x256xf32> to vector<12x16xf32>
    %cst_167 = arith.constant dense<0.000000e+00> : vector<4x8xf32>
    %331 = tpu.matmul %329, %9, %cst_167 {dimension_numbers = #tpu.dot_dimension_numbers<[1], [0], [0], [1], [0, 0, 1, 1], [], []>} : vector<4x16xf32>, vector<16x8xf32>, vector<4x8xf32> -> vector<4x8xf32>
    %332 = vector.broadcast %10 : vector<1x8xf32> to vector<4x8xf32>
    %333 = arith.addf %331, %332 : vector<4x8xf32>
    %cst_168 = arith.constant 0.000000e+00 : f32
    %334 = vector.broadcast %cst_168 : f32 to vector<4x8xf32>
    %335 = arith.cmpf ogt, %333, %334 : vector<4x8xf32>
    %cst_169 = arith.constant 2.000000e-01 : f32
    %336 = vector.broadcast %cst_169 : f32 to vector<4x8xf32>
    %337 = arith.mulf %336, %333 : vector<4x8xf32>
    %338 = arith.select %335, %333, %337 : vector<4x8xi1>, vector<4x8xf32>
    %cst_170 = arith.constant dense<0.000000e+00> : vector<12x8xf32>
    %339 = tpu.matmul %330, %11, %cst_170 {dimension_numbers = #tpu.dot_dimension_numbers<[1], [0], [0], [1], [0, 0, 1, 1], [], []>} : vector<12x16xf32>, vector<16x8xf32>, vector<12x8xf32> -> vector<12x8xf32>
    %340 = vector.broadcast %12 : vector<1x8xf32> to vector<12x8xf32>
    %341 = arith.addf %339, %340 : vector<12x8xf32>
    %cst_171 = arith.constant 0.000000e+00 : f32
    %342 = vector.broadcast %cst_171 : f32 to vector<12x8xf32>
    %343 = arith.cmpf ogt, %341, %342 : vector<12x8xf32>
    %cst_172 = arith.constant 2.000000e-01 : f32
    %344 = vector.broadcast %cst_172 : f32 to vector<12x8xf32>
    %345 = arith.mulf %344, %341 : vector<12x8xf32>
    %346 = arith.select %343, %341, %345 : vector<12x8xi1>, vector<12x8xf32>
    %cst_173 = arith.constant dense<0.000000e+00> : vector<4x8xf32>
    %347 = tpu.matmul %13, %346, %cst_173 {dimension_numbers = #tpu.dot_dimension_numbers<[1], [0], [0], [1], [0, 0, 1, 1], [], []>} : vector<4x12xf32>, vector<12x8xf32>, vector<4x8xf32> -> vector<4x8xf32>
    %c60 = arith.constant 60 : index
    %c0_174 = arith.constant 0 : index
    %348 = vector.load %arg18[%c60, %c0_174] : memref<64x16xf32, #tpu.memory_space<vmem>>, vector<4x8xf32>
    tpu.vector_store %arg18[%c60, %c0_174], %338 {strides = array<i32>} : memref<64x16xf32, #tpu.memory_space<vmem>>, vector<4x8xf32>,
    %c60_175 = arith.constant 60 : index
    %c8_176 = arith.constant 8 : index
    %349 = vector.load %arg18[%c60_175, %c8_176] : memref<64x16xf32, #tpu.memory_space<vmem>>, vector<4x8xf32>
    tpu.vector_store %arg18[%c60_175, %c8_176], %347 {strides = array<i32>} : memref<64x16xf32, #tpu.memory_space<vmem>>, vector<4x8xf32>,
    %c0_177 = arith.constant 0 : index
    %c0_178 = arith.constant 0 : index
    %350 = vector.load %arg18[%c0_177, %c0_178] : memref<64x16xf32, #tpu.memory_space<vmem>>, vector<64x16xf32>
    %c0_179 = arith.constant 0 : index
    %c0_180 = arith.constant 0 : index
    %351 = vector.load %arg8[%c0_179, %c0_180] : memref<16x96xf32, #tpu.memory_space<vmem>>, vector<16x96xf32>
    %cst_181 = arith.constant dense<0.000000e+00> : vector<64x96xf32>
    %352 = tpu.matmul %350, %351, %cst_181 {dimension_numbers = #tpu.dot_dimension_numbers<[1], [0], [0], [1], [0, 0, 1, 1], [], []>} : vector<64x16xf32>, vector<16x96xf32>, vector<64x96xf32> -> vector<64x96xf32>
    %c0_182 = arith.constant 0 : index
    %c0_183 = arith.constant 0 : index
    %353 = vector.load %arg9[%c0_182, %c0_183] : memref<1x96xf32, #tpu.memory_space<vmem>>, vector<1x96xf32>
    %354 = vector.broadcast %353 : vector<1x96xf32> to vector<64x96xf32>
    %355 = arith.addf %352, %354 : vector<64x96xf32>
    %c0_184 = arith.constant 0 : index
    %c0_185 = arith.constant 0 : index
    %356 = vector.load %arg10[%c0_184, %c0_185] : memref<32x96xf32, #tpu.memory_space<vmem>>, vector<32x96xf32>
    %c0_186 = arith.constant 0 : index
    %c0_187 = arith.constant 0 : index
    %357 = vector.load %arg11[%c0_186, %c0_187] : memref<1x96xf32, #tpu.memory_space<vmem>>, vector<1x96xf32>
    %cst_188 = arith.constant 0.000000e+00 : f32
    %358 = vector.broadcast %cst_188 : f32 to vector<8x32xf32>
    %359 = vector.extract_strided_slice %355 {offsets = [0, 0], sizes = [8, 96], strides = [1, 1]} : vector<64x96xf32> to vector<8x96xf32>
    %cst_189 = arith.constant dense<0.000000e+00> : vector<8x96xf32>
    %360 = tpu.matmul %358, %356, %cst_189 {dimension_numbers = #tpu.dot_dimension_numbers<[1], [0], [0], [1], [0, 0, 1, 1], [], []>} : vector<8x32xf32>, vector<32x96xf32>, vector<8x96xf32> -> vector<8x96xf32>
    %361 = vector.broadcast %357 : vector<1x96xf32> to vector<8x96xf32>
    %362 = arith.addf %360, %361 : vector<8x96xf32>
    %363 = vector.extract_strided_slice %359 {offsets = [0, 0], sizes = [8, 32], strides = [1, 1]} : vector<8x96xf32> to vector<8x32xf32>
    %364 = vector.extract_strided_slice %362 {offsets = [0, 0], sizes = [8, 32], strides = [1, 1]} : vector<8x96xf32> to vector<8x32xf32>
    %365 = arith.addf %363, %364 : vector<8x32xf32>
    %366 = arith.negf %365 : vector<8x32xf32>
    %367 = math.exp %366 : vector<8x32xf32>
    %cst_190 = arith.constant 1.000000e+00 : f32
    %368 = vector.broadcast %cst_190 : f32 to vector<8x32xf32>
    %369 = arith.addf %368, %367 : vector<8x32xf32>
    %370 = arith.divf %368, %369 : vector<8x32xf32>
    %371 = vector.extract_strided_slice %359 {offsets = [0, 32], sizes = [8, 32], strides = [1, 1]} : vector<8x96xf32> to vector<8x32xf32>
    %372 = vector.extract_strided_slice %362 {offsets = [0, 32], sizes = [8, 32], strides = [1, 1]} : vector<8x96xf32> to vector<8x32xf32>
    %373 = arith.addf %371, %372 : vector<8x32xf32>
    %374 = arith.negf %373 : vector<8x32xf32>
    %375 = math.exp %374 : vector<8x32xf32>
    %cst_191 = arith.constant 1.000000e+00 : f32
    %376 = vector.broadcast %cst_191 : f32 to vector<8x32xf32>
    %377 = arith.addf %376, %375 : vector<8x32xf32>
    %378 = arith.divf %376, %377 : vector<8x32xf32>
    %379 = vector.extract_strided_slice %359 {offsets = [0, 64], sizes = [8, 32], strides = [1, 1]} : vector<8x96xf32> to vector<8x32xf32>
    %380 = vector.extract_strided_slice %362 {offsets = [0, 64], sizes = [8, 32], strides = [1, 1]} : vector<8x96xf32> to vector<8x32xf32>
    %381 = arith.mulf %370, %380 : vector<8x32xf32>
    %382 = arith.addf %379, %381 : vector<8x32xf32>
    %383 = math.tanh %382 : vector<8x32xf32>
    %cst_192 = arith.constant 1.000000e+00 : f32
    %384 = vector.broadcast %cst_192 : f32 to vector<8x32xf32>
    %385 = arith.subf %384, %378 : vector<8x32xf32>
    %386 = arith.mulf %385, %383 : vector<8x32xf32>
    %387 = arith.mulf %378, %358 : vector<8x32xf32>
    %388 = arith.addf %386, %387 : vector<8x32xf32>
    %389 = vector.extract_strided_slice %355 {offsets = [8, 0], sizes = [8, 96], strides = [1, 1]} : vector<64x96xf32> to vector<8x96xf32>
    %cst_193 = arith.constant dense<0.000000e+00> : vector<8x96xf32>
    %390 = tpu.matmul %388, %356, %cst_193 {dimension_numbers = #tpu.dot_dimension_numbers<[1], [0], [0], [1], [0, 0, 1, 1], [], []>} : vector<8x32xf32>, vector<32x96xf32>, vector<8x96xf32> -> vector<8x96xf32>
    %391 = vector.broadcast %357 : vector<1x96xf32> to vector<8x96xf32>
    %392 = arith.addf %390, %391 : vector<8x96xf32>
    %393 = vector.extract_strided_slice %389 {offsets = [0, 0], sizes = [8, 32], strides = [1, 1]} : vector<8x96xf32> to vector<8x32xf32>
    %394 = vector.extract_strided_slice %392 {offsets = [0, 0], sizes = [8, 32], strides = [1, 1]} : vector<8x96xf32> to vector<8x32xf32>
    %395 = arith.addf %393, %394 : vector<8x32xf32>
    %396 = arith.negf %395 : vector<8x32xf32>
    %397 = math.exp %396 : vector<8x32xf32>
    %cst_194 = arith.constant 1.000000e+00 : f32
    %398 = vector.broadcast %cst_194 : f32 to vector<8x32xf32>
    %399 = arith.addf %398, %397 : vector<8x32xf32>
    %400 = arith.divf %398, %399 : vector<8x32xf32>
    %401 = vector.extract_strided_slice %389 {offsets = [0, 32], sizes = [8, 32], strides = [1, 1]} : vector<8x96xf32> to vector<8x32xf32>
    %402 = vector.extract_strided_slice %392 {offsets = [0, 32], sizes = [8, 32], strides = [1, 1]} : vector<8x96xf32> to vector<8x32xf32>
    %403 = arith.addf %401, %402 : vector<8x32xf32>
    %404 = arith.negf %403 : vector<8x32xf32>
    %405 = math.exp %404 : vector<8x32xf32>
    %cst_195 = arith.constant 1.000000e+00 : f32
    %406 = vector.broadcast %cst_195 : f32 to vector<8x32xf32>
    %407 = arith.addf %406, %405 : vector<8x32xf32>
    %408 = arith.divf %406, %407 : vector<8x32xf32>
    %409 = vector.extract_strided_slice %389 {offsets = [0, 64], sizes = [8, 32], strides = [1, 1]} : vector<8x96xf32> to vector<8x32xf32>
    %410 = vector.extract_strided_slice %392 {offsets = [0, 64], sizes = [8, 32], strides = [1, 1]} : vector<8x96xf32> to vector<8x32xf32>
    %411 = arith.mulf %400, %410 : vector<8x32xf32>
    %412 = arith.addf %409, %411 : vector<8x32xf32>
    %413 = math.tanh %412 : vector<8x32xf32>
    %cst_196 = arith.constant 1.000000e+00 : f32
    %414 = vector.broadcast %cst_196 : f32 to vector<8x32xf32>
    %415 = arith.subf %414, %408 : vector<8x32xf32>
    %416 = arith.mulf %415, %413 : vector<8x32xf32>
    %417 = arith.mulf %408, %388 : vector<8x32xf32>
    %418 = arith.addf %416, %417 : vector<8x32xf32>
    %419 = vector.extract_strided_slice %355 {offsets = [16, 0], sizes = [8, 96], strides = [1, 1]} : vector<64x96xf32> to vector<8x96xf32>
    %cst_197 = arith.constant dense<0.000000e+00> : vector<8x96xf32>
    %420 = tpu.matmul %418, %356, %cst_197 {dimension_numbers = #tpu.dot_dimension_numbers<[1], [0], [0], [1], [0, 0, 1, 1], [], []>} : vector<8x32xf32>, vector<32x96xf32>, vector<8x96xf32> -> vector<8x96xf32>
    %421 = vector.broadcast %357 : vector<1x96xf32> to vector<8x96xf32>
    %422 = arith.addf %420, %421 : vector<8x96xf32>
    %423 = vector.extract_strided_slice %419 {offsets = [0, 0], sizes = [8, 32], strides = [1, 1]} : vector<8x96xf32> to vector<8x32xf32>
    %424 = vector.extract_strided_slice %422 {offsets = [0, 0], sizes = [8, 32], strides = [1, 1]} : vector<8x96xf32> to vector<8x32xf32>
    %425 = arith.addf %423, %424 : vector<8x32xf32>
    %426 = arith.negf %425 : vector<8x32xf32>
    %427 = math.exp %426 : vector<8x32xf32>
    %cst_198 = arith.constant 1.000000e+00 : f32
    %428 = vector.broadcast %cst_198 : f32 to vector<8x32xf32>
    %429 = arith.addf %428, %427 : vector<8x32xf32>
    %430 = arith.divf %428, %429 : vector<8x32xf32>
    %431 = vector.extract_strided_slice %419 {offsets = [0, 32], sizes = [8, 32], strides = [1, 1]} : vector<8x96xf32> to vector<8x32xf32>
    %432 = vector.extract_strided_slice %422 {offsets = [0, 32], sizes = [8, 32], strides = [1, 1]} : vector<8x96xf32> to vector<8x32xf32>
    %433 = arith.addf %431, %432 : vector<8x32xf32>
    %434 = arith.negf %433 : vector<8x32xf32>
    %435 = math.exp %434 : vector<8x32xf32>
    %cst_199 = arith.constant 1.000000e+00 : f32
    %436 = vector.broadcast %cst_199 : f32 to vector<8x32xf32>
    %437 = arith.addf %436, %435 : vector<8x32xf32>
    %438 = arith.divf %436, %437 : vector<8x32xf32>
    %439 = vector.extract_strided_slice %419 {offsets = [0, 64], sizes = [8, 32], strides = [1, 1]} : vector<8x96xf32> to vector<8x32xf32>
    %440 = vector.extract_strided_slice %422 {offsets = [0, 64], sizes = [8, 32], strides = [1, 1]} : vector<8x96xf32> to vector<8x32xf32>
    %441 = arith.mulf %430, %440 : vector<8x32xf32>
    %442 = arith.addf %439, %441 : vector<8x32xf32>
    %443 = math.tanh %442 : vector<8x32xf32>
    %cst_200 = arith.constant 1.000000e+00 : f32
    %444 = vector.broadcast %cst_200 : f32 to vector<8x32xf32>
    %445 = arith.subf %444, %438 : vector<8x32xf32>
    %446 = arith.mulf %445, %443 : vector<8x32xf32>
    %447 = arith.mulf %438, %418 : vector<8x32xf32>
    %448 = arith.addf %446, %447 : vector<8x32xf32>
    %449 = vector.extract_strided_slice %355 {offsets = [24, 0], sizes = [8, 96], strides = [1, 1]} : vector<64x96xf32> to vector<8x96xf32>
    %cst_201 = arith.constant dense<0.000000e+00> : vector<8x96xf32>
    %450 = tpu.matmul %448, %356, %cst_201 {dimension_numbers = #tpu.dot_dimension_numbers<[1], [0], [0], [1], [0, 0, 1, 1], [], []>} : vector<8x32xf32>, vector<32x96xf32>, vector<8x96xf32> -> vector<8x96xf32>
    %451 = vector.broadcast %357 : vector<1x96xf32> to vector<8x96xf32>
    %452 = arith.addf %450, %451 : vector<8x96xf32>
    %453 = vector.extract_strided_slice %449 {offsets = [0, 0], sizes = [8, 32], strides = [1, 1]} : vector<8x96xf32> to vector<8x32xf32>
    %454 = vector.extract_strided_slice %452 {offsets = [0, 0], sizes = [8, 32], strides = [1, 1]} : vector<8x96xf32> to vector<8x32xf32>
    %455 = arith.addf %453, %454 : vector<8x32xf32>
    %456 = arith.negf %455 : vector<8x32xf32>
    %457 = math.exp %456 : vector<8x32xf32>
    %cst_202 = arith.constant 1.000000e+00 : f32
    %458 = vector.broadcast %cst_202 : f32 to vector<8x32xf32>
    %459 = arith.addf %458, %457 : vector<8x32xf32>
    %460 = arith.divf %458, %459 : vector<8x32xf32>
    %461 = vector.extract_strided_slice %449 {offsets = [0, 32], sizes = [8, 32], strides = [1, 1]} : vector<8x96xf32> to vector<8x32xf32>
    %462 = vector.extract_strided_slice %452 {offsets = [0, 32], sizes = [8, 32], strides = [1, 1]} : vector<8x96xf32> to vector<8x32xf32>
    %463 = arith.addf %461, %462 : vector<8x32xf32>
    %464 = arith.negf %463 : vector<8x32xf32>
    %465 = math.exp %464 : vector<8x32xf32>
    %cst_203 = arith.constant 1.000000e+00 : f32
    %466 = vector.broadcast %cst_203 : f32 to vector<8x32xf32>
    %467 = arith.addf %466, %465 : vector<8x32xf32>
    %468 = arith.divf %466, %467 : vector<8x32xf32>
    %469 = vector.extract_strided_slice %449 {offsets = [0, 64], sizes = [8, 32], strides = [1, 1]} : vector<8x96xf32> to vector<8x32xf32>
    %470 = vector.extract_strided_slice %452 {offsets = [0, 64], sizes = [8, 32], strides = [1, 1]} : vector<8x96xf32> to vector<8x32xf32>
    %471 = arith.mulf %460, %470 : vector<8x32xf32>
    %472 = arith.addf %469, %471 : vector<8x32xf32>
    %473 = math.tanh %472 : vector<8x32xf32>
    %cst_204 = arith.constant 1.000000e+00 : f32
    %474 = vector.broadcast %cst_204 : f32 to vector<8x32xf32>
    %475 = arith.subf %474, %468 : vector<8x32xf32>
    %476 = arith.mulf %475, %473 : vector<8x32xf32>
    %477 = arith.mulf %468, %448 : vector<8x32xf32>
    %478 = arith.addf %476, %477 : vector<8x32xf32>
    %479 = vector.extract_strided_slice %355 {offsets = [32, 0], sizes = [8, 96], strides = [1, 1]} : vector<64x96xf32> to vector<8x96xf32>
    %cst_205 = arith.constant dense<0.000000e+00> : vector<8x96xf32>
    %480 = tpu.matmul %478, %356, %cst_205 {dimension_numbers = #tpu.dot_dimension_numbers<[1], [0], [0], [1], [0, 0, 1, 1], [], []>} : vector<8x32xf32>, vector<32x96xf32>, vector<8x96xf32> -> vector<8x96xf32>
    %481 = vector.broadcast %357 : vector<1x96xf32> to vector<8x96xf32>
    %482 = arith.addf %480, %481 : vector<8x96xf32>
    %483 = vector.extract_strided_slice %479 {offsets = [0, 0], sizes = [8, 32], strides = [1, 1]} : vector<8x96xf32> to vector<8x32xf32>
    %484 = vector.extract_strided_slice %482 {offsets = [0, 0], sizes = [8, 32], strides = [1, 1]} : vector<8x96xf32> to vector<8x32xf32>
    %485 = arith.addf %483, %484 : vector<8x32xf32>
    %486 = arith.negf %485 : vector<8x32xf32>
    %487 = math.exp %486 : vector<8x32xf32>
    %cst_206 = arith.constant 1.000000e+00 : f32
    %488 = vector.broadcast %cst_206 : f32 to vector<8x32xf32>
    %489 = arith.addf %488, %487 : vector<8x32xf32>
    %490 = arith.divf %488, %489 : vector<8x32xf32>
    %491 = vector.extract_strided_slice %479 {offsets = [0, 32], sizes = [8, 32], strides = [1, 1]} : vector<8x96xf32> to vector<8x32xf32>
    %492 = vector.extract_strided_slice %482 {offsets = [0, 32], sizes = [8, 32], strides = [1, 1]} : vector<8x96xf32> to vector<8x32xf32>
    %493 = arith.addf %491, %492 : vector<8x32xf32>
    %494 = arith.negf %493 : vector<8x32xf32>
    %495 = math.exp %494 : vector<8x32xf32>
    %cst_207 = arith.constant 1.000000e+00 : f32
    %496 = vector.broadcast %cst_207 : f32 to vector<8x32xf32>
    %497 = arith.addf %496, %495 : vector<8x32xf32>
    %498 = arith.divf %496, %497 : vector<8x32xf32>
    %499 = vector.extract_strided_slice %479 {offsets = [0, 64], sizes = [8, 32], strides = [1, 1]} : vector<8x96xf32> to vector<8x32xf32>
    %500 = vector.extract_strided_slice %482 {offsets = [0, 64], sizes = [8, 32], strides = [1, 1]} : vector<8x96xf32> to vector<8x32xf32>
    %501 = arith.mulf %490, %500 : vector<8x32xf32>
    %502 = arith.addf %499, %501 : vector<8x32xf32>
    %503 = math.tanh %502 : vector<8x32xf32>
    %cst_208 = arith.constant 1.000000e+00 : f32
    %504 = vector.broadcast %cst_208 : f32 to vector<8x32xf32>
    %505 = arith.subf %504, %498 : vector<8x32xf32>
    %506 = arith.mulf %505, %503 : vector<8x32xf32>
    %507 = arith.mulf %498, %478 : vector<8x32xf32>
    %508 = arith.addf %506, %507 : vector<8x32xf32>
    %509 = vector.extract_strided_slice %355 {offsets = [40, 0], sizes = [8, 96], strides = [1, 1]} : vector<64x96xf32> to vector<8x96xf32>
    %cst_209 = arith.constant dense<0.000000e+00> : vector<8x96xf32>
    %510 = tpu.matmul %508, %356, %cst_209 {dimension_numbers = #tpu.dot_dimension_numbers<[1], [0], [0], [1], [0, 0, 1, 1], [], []>} : vector<8x32xf32>, vector<32x96xf32>, vector<8x96xf32> -> vector<8x96xf32>
    %511 = vector.broadcast %357 : vector<1x96xf32> to vector<8x96xf32>
    %512 = arith.addf %510, %511 : vector<8x96xf32>
    %513 = vector.extract_strided_slice %509 {offsets = [0, 0], sizes = [8, 32], strides = [1, 1]} : vector<8x96xf32> to vector<8x32xf32>
    %514 = vector.extract_strided_slice %512 {offsets = [0, 0], sizes = [8, 32], strides = [1, 1]} : vector<8x96xf32> to vector<8x32xf32>
    %515 = arith.addf %513, %514 : vector<8x32xf32>
    %516 = arith.negf %515 : vector<8x32xf32>
    %517 = math.exp %516 : vector<8x32xf32>
    %cst_210 = arith.constant 1.000000e+00 : f32
    %518 = vector.broadcast %cst_210 : f32 to vector<8x32xf32>
    %519 = arith.addf %518, %517 : vector<8x32xf32>
    %520 = arith.divf %518, %519 : vector<8x32xf32>
    %521 = vector.extract_strided_slice %509 {offsets = [0, 32], sizes = [8, 32], strides = [1, 1]} : vector<8x96xf32> to vector<8x32xf32>
    %522 = vector.extract_strided_slice %512 {offsets = [0, 32], sizes = [8, 32], strides = [1, 1]} : vector<8x96xf32> to vector<8x32xf32>
    %523 = arith.addf %521, %522 : vector<8x32xf32>
    %524 = arith.negf %523 : vector<8x32xf32>
    %525 = math.exp %524 : vector<8x32xf32>
    %cst_211 = arith.constant 1.000000e+00 : f32
    %526 = vector.broadcast %cst_211 : f32 to vector<8x32xf32>
    %527 = arith.addf %526, %525 : vector<8x32xf32>
    %528 = arith.divf %526, %527 : vector<8x32xf32>
    %529 = vector.extract_strided_slice %509 {offsets = [0, 64], sizes = [8, 32], strides = [1, 1]} : vector<8x96xf32> to vector<8x32xf32>
    %530 = vector.extract_strided_slice %512 {offsets = [0, 64], sizes = [8, 32], strides = [1, 1]} : vector<8x96xf32> to vector<8x32xf32>
    %531 = arith.mulf %520, %530 : vector<8x32xf32>
    %532 = arith.addf %529, %531 : vector<8x32xf32>
    %533 = math.tanh %532 : vector<8x32xf32>
    %cst_212 = arith.constant 1.000000e+00 : f32
    %534 = vector.broadcast %cst_212 : f32 to vector<8x32xf32>
    %535 = arith.subf %534, %528 : vector<8x32xf32>
    %536 = arith.mulf %535, %533 : vector<8x32xf32>
    %537 = arith.mulf %528, %508 : vector<8x32xf32>
    %538 = arith.addf %536, %537 : vector<8x32xf32>
    %539 = vector.extract_strided_slice %355 {offsets = [48, 0], sizes = [8, 96], strides = [1, 1]} : vector<64x96xf32> to vector<8x96xf32>
    %cst_213 = arith.constant dense<0.000000e+00> : vector<8x96xf32>
    %540 = tpu.matmul %538, %356, %cst_213 {dimension_numbers = #tpu.dot_dimension_numbers<[1], [0], [0], [1], [0, 0, 1, 1], [], []>} : vector<8x32xf32>, vector<32x96xf32>, vector<8x96xf32> -> vector<8x96xf32>
    %541 = vector.broadcast %357 : vector<1x96xf32> to vector<8x96xf32>
    %542 = arith.addf %540, %541 : vector<8x96xf32>
    %543 = vector.extract_strided_slice %539 {offsets = [0, 0], sizes = [8, 32], strides = [1, 1]} : vector<8x96xf32> to vector<8x32xf32>
    %544 = vector.extract_strided_slice %542 {offsets = [0, 0], sizes = [8, 32], strides = [1, 1]} : vector<8x96xf32> to vector<8x32xf32>
    %545 = arith.addf %543, %544 : vector<8x32xf32>
    %546 = arith.negf %545 : vector<8x32xf32>
    %547 = math.exp %546 : vector<8x32xf32>
    %cst_214 = arith.constant 1.000000e+00 : f32
    %548 = vector.broadcast %cst_214 : f32 to vector<8x32xf32>
    %549 = arith.addf %548, %547 : vector<8x32xf32>
    %550 = arith.divf %548, %549 : vector<8x32xf32>
    %551 = vector.extract_strided_slice %539 {offsets = [0, 32], sizes = [8, 32], strides = [1, 1]} : vector<8x96xf32> to vector<8x32xf32>
    %552 = vector.extract_strided_slice %542 {offsets = [0, 32], sizes = [8, 32], strides = [1, 1]} : vector<8x96xf32> to vector<8x32xf32>
    %553 = arith.addf %551, %552 : vector<8x32xf32>
    %554 = arith.negf %553 : vector<8x32xf32>
    %555 = math.exp %554 : vector<8x32xf32>
    %cst_215 = arith.constant 1.000000e+00 : f32
    %556 = vector.broadcast %cst_215 : f32 to vector<8x32xf32>
    %557 = arith.addf %556, %555 : vector<8x32xf32>
    %558 = arith.divf %556, %557 : vector<8x32xf32>
    %559 = vector.extract_strided_slice %539 {offsets = [0, 64], sizes = [8, 32], strides = [1, 1]} : vector<8x96xf32> to vector<8x32xf32>
    %560 = vector.extract_strided_slice %542 {offsets = [0, 64], sizes = [8, 32], strides = [1, 1]} : vector<8x96xf32> to vector<8x32xf32>
    %561 = arith.mulf %550, %560 : vector<8x32xf32>
    %562 = arith.addf %559, %561 : vector<8x32xf32>
    %563 = math.tanh %562 : vector<8x32xf32>
    %cst_216 = arith.constant 1.000000e+00 : f32
    %564 = vector.broadcast %cst_216 : f32 to vector<8x32xf32>
    %565 = arith.subf %564, %558 : vector<8x32xf32>
    %566 = arith.mulf %565, %563 : vector<8x32xf32>
    %567 = arith.mulf %558, %538 : vector<8x32xf32>
    %568 = arith.addf %566, %567 : vector<8x32xf32>
    %569 = vector.extract_strided_slice %355 {offsets = [56, 0], sizes = [8, 96], strides = [1, 1]} : vector<64x96xf32> to vector<8x96xf32>
    %cst_217 = arith.constant dense<0.000000e+00> : vector<8x96xf32>
    %570 = tpu.matmul %568, %356, %cst_217 {dimension_numbers = #tpu.dot_dimension_numbers<[1], [0], [0], [1], [0, 0, 1, 1], [], []>} : vector<8x32xf32>, vector<32x96xf32>, vector<8x96xf32> -> vector<8x96xf32>
    %571 = vector.broadcast %357 : vector<1x96xf32> to vector<8x96xf32>
    %572 = arith.addf %570, %571 : vector<8x96xf32>
    %573 = vector.extract_strided_slice %569 {offsets = [0, 0], sizes = [8, 32], strides = [1, 1]} : vector<8x96xf32> to vector<8x32xf32>
    %574 = vector.extract_strided_slice %572 {offsets = [0, 0], sizes = [8, 32], strides = [1, 1]} : vector<8x96xf32> to vector<8x32xf32>
    %575 = arith.addf %573, %574 : vector<8x32xf32>
    %576 = arith.negf %575 : vector<8x32xf32>
    %577 = math.exp %576 : vector<8x32xf32>
    %cst_218 = arith.constant 1.000000e+00 : f32
    %578 = vector.broadcast %cst_218 : f32 to vector<8x32xf32>
    %579 = arith.addf %578, %577 : vector<8x32xf32>
    %580 = arith.divf %578, %579 : vector<8x32xf32>
    %581 = vector.extract_strided_slice %569 {offsets = [0, 32], sizes = [8, 32], strides = [1, 1]} : vector<8x96xf32> to vector<8x32xf32>
    %582 = vector.extract_strided_slice %572 {offsets = [0, 32], sizes = [8, 32], strides = [1, 1]} : vector<8x96xf32> to vector<8x32xf32>
    %583 = arith.addf %581, %582 : vector<8x32xf32>
    %584 = arith.negf %583 : vector<8x32xf32>
    %585 = math.exp %584 : vector<8x32xf32>
    %cst_219 = arith.constant 1.000000e+00 : f32
    %586 = vector.broadcast %cst_219 : f32 to vector<8x32xf32>
    %587 = arith.addf %586, %585 : vector<8x32xf32>
    %588 = arith.divf %586, %587 : vector<8x32xf32>
    %589 = vector.extract_strided_slice %569 {offsets = [0, 64], sizes = [8, 32], strides = [1, 1]} : vector<8x96xf32> to vector<8x32xf32>
    %590 = vector.extract_strided_slice %572 {offsets = [0, 64], sizes = [8, 32], strides = [1, 1]} : vector<8x96xf32> to vector<8x32xf32>
    %591 = arith.mulf %580, %590 : vector<8x32xf32>
    %592 = arith.addf %589, %591 : vector<8x32xf32>
    %593 = math.tanh %592 : vector<8x32xf32>
    %cst_220 = arith.constant 1.000000e+00 : f32
    %594 = vector.broadcast %cst_220 : f32 to vector<8x32xf32>
    %595 = arith.subf %594, %588 : vector<8x32xf32>
    %596 = arith.mulf %595, %593 : vector<8x32xf32>
    %597 = arith.mulf %588, %568 : vector<8x32xf32>
    %598 = arith.addf %596, %597 : vector<8x32xf32>
    %c0_221 = arith.constant 0 : index
    %c0_222 = arith.constant 0 : index
    %599 = vector.load %arg17[%c0_221, %c0_222] : memref<8x32xf32, #tpu.memory_space<vmem>>, vector<8x32xf32>
    tpu.vector_store %arg17[%c0_221, %c0_222], %598 {strides = array<i32>} : memref<8x32xf32, #tpu.memory_space<vmem>>, vector<8x32xf32>,
    %c0_i32_223 = arith.constant 0 : i32
    %600 = tpu.memref_slice %arg21[%c0_i32_223] : memref<2x!tpu.dma_semaphore, #tpu.memory_space<semaphore_mem>> -> memref<1x!tpu.dma_semaphore, #tpu.memory_space<semaphore_mem>>
    %601 = tpu.memref_squeeze %600 : memref<1x!tpu.dma_semaphore, #tpu.memory_space<semaphore_mem>> -> memref<!tpu.dma_semaphore, #tpu.memory_space<semaphore_mem>>
    tpu.wait_dma2 semaphore(%601 : memref<!tpu.dma_semaphore, #tpu.memory_space<semaphore_mem>>) src(%arg12 : memref<32x768xbf16, #tpu.memory_space<any>>) dst(%arg19 : memref<32x768xbf16, #tpu.memory_space<vmem>>)
    %c1_i32_224 = arith.constant 1 : i32
    %602 = tpu.memref_slice %arg21[%c1_i32_224] : memref<2x!tpu.dma_semaphore, #tpu.memory_space<semaphore_mem>> -> memref<1x!tpu.dma_semaphore, #tpu.memory_space<semaphore_mem>>
    %603 = tpu.memref_squeeze %602 : memref<1x!tpu.dma_semaphore, #tpu.memory_space<semaphore_mem>> -> memref<!tpu.dma_semaphore, #tpu.memory_space<semaphore_mem>>
    tpu.wait_dma2 semaphore(%603 : memref<!tpu.dma_semaphore, #tpu.memory_space<semaphore_mem>>) src(%arg14 : memref<768x256xbf16, #tpu.memory_space<any>>) dst(%arg20 : memref<768x256xbf16, #tpu.memory_space<vmem>>)
    %604 = arith.truncf %598 : vector<8x32xf32> to vector<8x32xbf16>
    %c0_225 = arith.constant 0 : index
    %c0_226 = arith.constant 0 : index
    %605 = vector.load %arg19[%c0_225, %c0_226] : memref<32x768xbf16, #tpu.memory_space<vmem>>, vector<32x768xbf16>
    %cst_227 = arith.constant dense<0.000000e+00> : vector<8x768xf32>
    %606 = tpu.matmul %604, %605, %cst_227 {dimension_numbers = #tpu.dot_dimension_numbers<[1], [0], [0], [1], [0, 0, 1, 1], [], []>} : vector<8x32xbf16>, vector<32x768xbf16>, vector<8x768xf32> -> vector<8x768xf32>
    %c0_228 = arith.constant 0 : index
    %c0_229 = arith.constant 0 : index
    %607 = vector.load %arg13[%c0_228, %c0_229] : memref<1x768xf32, #tpu.memory_space<vmem>>, vector<1x768xf32>
    %608 = vector.broadcast %607 : vector<1x768xf32> to vector<8x768xf32>
    %609 = arith.addf %606, %608 : vector<8x768xf32>
    %cst_230 = arith.constant 0.000000e+00 : f32
    %610 = vector.broadcast %cst_230 : f32 to vector<8x768xf32>
    %611 = arith.cmpf ogt, %609, %610 : vector<8x768xf32>
    %cst_231 = arith.constant 2.000000e-01 : f32
    %612 = vector.broadcast %cst_231 : f32 to vector<8x768xf32>
    %613 = arith.mulf %612, %609 : vector<8x768xf32>
    %614 = arith.select %611, %609, %613 : vector<8x768xi1>, vector<8x768xf32>
    %615 = arith.truncf %614 : vector<8x768xf32> to vector<8x768xbf16>
    %c0_232 = arith.constant 0 : index
    %c0_233 = arith.constant 0 : index
    %616 = vector.load %arg20[%c0_232, %c0_233] : memref<768x256xbf16, #tpu.memory_space<vmem>>, vector<768x256xbf16>
    %cst_234 = arith.constant dense<0.000000e+00> : vector<8x256xf32>
    %617 = tpu.matmul %615, %616, %cst_234 {dimension_numbers = #tpu.dot_dimension_numbers<[1], [0], [0], [1], [0, 0, 1, 1], [], []>} : vector<8x768xbf16>, vector<768x256xbf16>, vector<8x256xf32> -> vector<8x256xf32>
    %c0_235 = arith.constant 0 : index
    %c0_236 = arith.constant 0 : index
    %618 = vector.load %arg15[%c0_235, %c0_236] : memref<1x256xf32, #tpu.memory_space<vmem>>, vector<1x256xf32>
    %619 = vector.broadcast %618 : vector<1x256xf32> to vector<8x256xf32>
    %620 = arith.addf %617, %619 : vector<8x256xf32>
    %c0_237 = arith.constant 0 : index
    %c0_238 = arith.constant 0 : index
    %621 = vector.load %arg16[%c0_237, %c0_238] : memref<8x256xf32, #tpu.memory_space<vmem>>, vector<8x256xf32>
    tpu.vector_store %arg16[%c0_237, %c0_238], %620 {strides = array<i32>} : memref<8x256xf32, #tpu.memory_space<vmem>>, vector<8x256xf32>,
    return
  }
}

</mosaic_0001>

<bundles_post_ra>
// kernel: hierarchical_graph_model.1
= control target key start
LH: loop header
LB: loop body
LE: loop exit
PB: predicated region body
PF: predicated region fallthrough
CT: control target
= control target key end

     0   :  { %s9099_s0 = inlined_call_operand.vmem [shape: f32[4,256], index: 0, kind: input, shape index: {}]   ;;  %s9100_s1 = inlined_call_operand.vmem [shape: f32[4,4], index: 1, kind: input, shape index: {}]   ;;  %s9101_s2 = inlined_call_operand.vmem [shape: f32[12,4], index: 2, kind: input, shape index: {}]   ;;  %s9102_s3 = inlined_call_operand.vmem [shape: f32[4,12], index: 3, kind: input, shape index: {}]   ;;  %s9103_s4 = inlined_call_operand.vmem [shape: f32[16,8], index: 4, kind: input, shape index: {}]   ;;  %s9104_s5 = inlined_call_operand.vmem [shape: f32[1,8], index: 5, kind: input, shape index: {}]   ;;  %s9105_s6 = inlined_call_operand.vmem [shape: f32[16,8], index: 6, kind: input, shape index: {}]   ;;  %s9106_s7 = inlined_call_operand.vmem [shape: f32[1,8], index: 7, kind: input, shape index: {}]   ;;  %s9107_s8 = inlined_call_operand.vmem [shape: f32[16,96], index: 8, kind: input, shape index: {}]   ;;  %s9108_s9 = inlined_call_operand.vmem [shape: f32[1,96], index: 9, kind: input, shape index: {}]   ;;  %s9109_s10 = inlined_call_operand.vmem [shape: f32[32,96], index: 10, kind: input, shape index: {}]   ;;  %s9110_s11 = inlined_call_operand.vmem [shape: f32[1,96], index: 11, kind: input, shape index: {}]   ;;  %s9111_s12 = inlined_call_operand.vmem [shape: bf16[32,768], index: 12, kind: input, shape index: {}]   ;;  %s9112_s13 = inlined_call_operand.vmem [shape: f32[1,768], index: 13, kind: input, shape index: {}]   ;;  %s9113_s14 = inlined_call_operand.vmem [shape: bf16[768,256], index: 14, kind: input, shape index: {}]   ;;  %s9114_s15 = inlined_call_operand.vmem [shape: f32[1,256], index: 15, kind: input, shape index: {}]   ;;  %s9115_s16 = inlined_call_operand.vmem [shape: f32[8,256], index: 16, kind: output, shape index: {0}]   ;;  %s9116_s17 = inlined_call_operand.hbm [shape: f32[8,32], index: 17, kind: output, shape index: {1}]  }
   0x1   :  { %9117 = sst [smem:[#allocation13_spill]] %s9099_s0 }
   0x2   :  { %9118 = sst [smem:[#allocation14_spill]] %s9100_s1 }
   0x3   :  { %23 = vsyncpa [#allocation7], 0  ;;  %v70_v0 = vld [vmem:[%s9111_s12] sm:$0xf]  ;;  %v72_v1 = vld [vmem:[%s9111_s12 + $0x18] sm:$0xf] }
   0x4   :  { %71 = vst [vmem:[#allocation3] sm:$0xf] %v70_v0  ;;  %73 = vst [vmem:[#allocation3 + $0x4] sm:$0xf] %v72_v1  ;;  %v74_v2 = vld [vmem:[%s9111_s12 + $0x4] sm:$0xf] }
   0x5   :  { %v76_v3 = vld [vmem:[%s9111_s12 + $0x1c] sm:$0xf]  ;;  %v78_v4 = vld [vmem:[%s9111_s12 + $0x8] sm:$0xf]  ;;  %75 = vst [vmem:[#allocation3 + $0x8] sm:$0xf] %v74_v2 }
   0x6   :  { %77 = vst [vmem:[#allocation3 + $0xc] sm:$0xf] %v76_v3  ;;  %79 = vst [vmem:[#allocation3 + $0x10] sm:$0xf] %v78_v4  ;;  %v80_v5 = vld [vmem:[%s9111_s12 + $0x20] sm:$0xf] }
   0x7   :  { %v82_v6 = vld [vmem:[%s9111_s12 + $0xc] sm:$0xf]  ;;  %v84_v7 = vld [vmem:[%s9111_s12 + $0x24] sm:$0xf]  ;;  %81 = vst [vmem:[#allocation3 + $0x14] sm:$0xf] %v80_v5 }
   0x8   :  { %83 = vst [vmem:[#allocation3 + $0x18] sm:$0xf] %v82_v6  ;;  %85 = vst [vmem:[#allocation3 + $0x1c] sm:$0xf] %v84_v7  ;;  %v86_v8 = vld [vmem:[%s9111_s12 + $0x10] sm:$0xf] }
   0x9   :  { %v88_v9 = vld [vmem:[%s9111_s12 + $0x28] sm:$0xf]  ;;  %v90_v10 = vld [vmem:[%s9111_s12 + $0x14] sm:$0xf]  ;;  %87 = vst [vmem:[#allocation3 + $0x20] sm:$0xf] %v86_v8 }
   0xa   :  { %89 = vst [vmem:[#allocation3 + $0x24] sm:$0xf] %v88_v9  ;;  %91 = vst [vmem:[#allocation3 + $0x28] sm:$0xf] %v90_v10  ;;  %v92_v11 = vld [vmem:[%s9111_s12 + $0x2c] sm:$0xff]  }
   0xb   :  { %v96_v12 = vld [vmem:[%s9111_s12 + $0x48] sm:$0xf]  ;;  %v98_v13 = vld [vmem:[%s9111_s12 + $0x34] sm:$0xf]  ;;  %93 = vst [vmem:[#allocation3 + $0x2c] sm:$0xff] %v92_v11  }
   0xc   :  { %97 = vst [vmem:[#allocation3 + $0x34] sm:$0xf] %v96_v12  ;;  %99 = vst [vmem:[#allocation3 + $0x38] sm:$0xf] %v98_v13  ;;  %v100_v14 = vld [vmem:[%s9111_s12 + $0x4c] sm:$0xf] }
   0xd   :  { %v102_v15 = vld [vmem:[%s9111_s12 + $0x38] sm:$0xf]  ;;  %v104_v16 = vld [vmem:[%s9111_s12 + $0x50] sm:$0xf]  ;;  %101 = vst [vmem:[#allocation3 + $0x3c] sm:$0xf] %v100_v14 }
   0xe   :  { %103 = vst [vmem:[#allocation3 + $0x40] sm:$0xf] %v102_v15  ;;  %105 = vst [vmem:[#allocation3 + $0x44] sm:$0xf] %v104_v16  ;;  %v106_v17 = vld [vmem:[%s9111_s12 + $0x3c] sm:$0xf] }
   0xf   :  { %v108_v18 = vld [vmem:[%s9111_s12 + $0x54] sm:$0xf]  ;;  %v110_v19 = vld [vmem:[%s9111_s12 + $0x40] sm:$0xf]  ;;  %107 = vst [vmem:[#allocation3 + $0x48] sm:$0xf] %v106_v17 }
  0x10   :  { %109 = vst [vmem:[#allocation3 + $0x4c] sm:$0xf] %v108_v18  ;;  %111 = vst [vmem:[#allocation3 + $0x50] sm:$0xf] %v110_v19  ;;  %v112_v20 = vld [vmem:[%s9111_s12 + $0x58] sm:$0xf] }
  0x11   :  { %v114_v21 = vld [vmem:[%s9111_s12 + $0x44] sm:$0xf]  ;;  %v116_v22 = vld [vmem:[%s9111_s12 + $0x5c] sm:$0xf]  ;;  %113 = vst [vmem:[#allocation3 + $0x54] sm:$0xf] %v112_v20 }
  0x12   :  { %115 = vst [vmem:[#allocation3 + $0x58] sm:$0xf] %v114_v21  ;;  %117 = vst [vmem:[#allocation3 + $0x5c] sm:$0xf] %v116_v22 }
  0x13   :  { %196 = vsyncadd [#allocation5], 1536  ;;  %v215_v23 = vld [vmem:[%s9113_s14] sm:$0xf]  ;;  %v217_v24 = vld [vmem:[%s9113_s14 + $0x8] sm:$0xf] }
  0x14   :  { %216 = vst [vmem:[#allocation4] sm:$0xf] %v215_v23  ;;  %218 = vst [vmem:[#allocation4 + $0x4] sm:$0xf] %v217_v24  ;;  %v219_v25 = vld [vmem:[%s9113_s14 + $0x4] sm:$0xf] }
  0x15   :  { %v221_v26 = vld [vmem:[%s9113_s14 + $0xc] sm:$0xff]   ;;  %v225_v27 = vld [vmem:[%s9113_s14 + $0x18] sm:$0xf]  ;;  %220 = vst [vmem:[#allocation4 + $0x8] sm:$0xf] %v219_v25  ;;  %v229_v29 = vld [vmem:[%s9113_s14 + $0x1c] sm:$0xff]  }
  0x16   :  { %222 = vst [vmem:[#allocation4 + $0xc] sm:$0xff] %v221_v26   ;;  %226 = vst [vmem:[#allocation4 + $0x14] sm:$0xf] %v225_v27  ;;  %v227_v28 = vld [vmem:[%s9113_s14 + $0x14] sm:$0xf]  ;;  %v237_v32 = vld [vmem:[%s9113_s14 + $0x2c] sm:$0xff]  }
  0x17   :  { %v233_v30 = vld [vmem:[%s9113_s14 + $0x28] sm:$0xf]  ;;  %228 = vst [vmem:[#allocation4 + $0x18] sm:$0xf] %v227_v28  ;;  %230 = vst [vmem:[#allocation4 + $0x1c] sm:$0xff] %v229_v29   ;;  %v245_v35 = vld [vmem:[%s9113_s14 + $0x3c] sm:$0xff]  }
  0x18   :  { %234 = vst [vmem:[#allocation4 + $0x24] sm:$0xf] %v233_v30  ;;  %v235_v31 = vld [vmem:[%s9113_s14 + $0x24] sm:$0xf]  ;;  %v241_v33 = vld [vmem:[%s9113_s14 + $0x38] sm:$0xf] }
  0x19   :  { %236 = vst [vmem:[#allocation4 + $0x28] sm:$0xf] %v235_v31  ;;  %238 = vst [vmem:[#allocation4 + $0x2c] sm:$0xff] %v237_v32   ;;  %v243_v34 = vld [vmem:[%s9113_s14 + $0x34] sm:$0xf]  ;;  %v253_v38 = vld [vmem:[%s9113_s14 + $0x4c] sm:$0xff]  }
  0x1a   :  { %242 = vst [vmem:[#allocation4 + $0x34] sm:$0xf] %v241_v33  ;;  %v249_v36 = vld [vmem:[%s9113_s14 + $0x48] sm:$0xf]  ;;  %244 = vst [vmem:[#allocation4 + $0x38] sm:$0xf] %v243_v34 }
  0x1b   :  { %246 = vst [vmem:[#allocation4 + $0x3c] sm:$0xff] %v245_v35   ;;  %250 = vst [vmem:[#allocation4 + $0x44] sm:$0xf] %v249_v36  ;;  %v251_v37 = vld [vmem:[%s9113_s14 + $0x44] sm:$0xf]  ;;  %v261_v41 = vld [vmem:[%s9113_s14 + $0x5c] sm:$0xff]  }
  0x1c   :  { %v257_v39 = vld [vmem:[%s9113_s14 + $0x58] sm:$0xf]  ;;  %252 = vst [vmem:[#allocation4 + $0x48] sm:$0xf] %v251_v37  ;;  %254 = vst [vmem:[#allocation4 + $0x4c] sm:$0xff] %v253_v38   ;;  %v269_v44 = vld [vmem:[%s9113_s14 + $0x6c] sm:$0xff]  }
  0x1d   :  { %258 = vst [vmem:[#allocation4 + $0x54] sm:$0xf] %v257_v39  ;;  %v259_v40 = vld [vmem:[%s9113_s14 + $0x54] sm:$0xf]  ;;  %v265_v42 = vld [vmem:[%s9113_s14 + $0x68] sm:$0xf] }
  0x1e   :  { %260 = vst [vmem:[#allocation4 + $0x58] sm:$0xf] %v259_v40  ;;  %262 = vst [vmem:[#allocation4 + $0x5c] sm:$0xff] %v261_v41   ;;  %v267_v43 = vld [vmem:[%s9113_s14 + $0x64] sm:$0xf]  ;;  %v277_v47 = vld [vmem:[%s9113_s14 + $0x7c] sm:$0xff]  }
  0x1f   :  { %266 = vst [vmem:[#allocation4 + $0x64] sm:$0xf] %v265_v42  ;;  %v273_v45 = vld [vmem:[%s9113_s14 + $0x78] sm:$0xf]  ;;  %268 = vst [vmem:[#allocation4 + $0x68] sm:$0xf] %v267_v43 }
  0x20   :  { %270 = vst [vmem:[#allocation4 + $0x6c] sm:$0xff] %v269_v44   ;;  %274 = vst [vmem:[#allocation4 + $0x74] sm:$0xf] %v273_v45  ;;  %v275_v46 = vld [vmem:[%s9113_s14 + $0x74] sm:$0xf]  ;;  %v285_v50 = vld [vmem:[%s9113_s14 + $0x8c] sm:$0xff]  }
  0x21   :  { %v281_v48 = vld [vmem:[%s9113_s14 + $0x88] sm:$0xf]  ;;  %276 = vst [vmem:[#allocation4 + $0x78] sm:$0xf] %v275_v46  ;;  %278 = vst [vmem:[#allocation4 + $0x7c] sm:$0xff] %v277_v47   ;;  %v293_v53 = vld [vmem:[%s9113_s14 + $0x9c] sm:$0xff]  }
  0x22   :  { %282 = vst [vmem:[#allocation4 + $0x84] sm:$0xf] %v281_v48  ;;  %v283_v49 = vld [vmem:[%s9113_s14 + $0x84] sm:$0xf]  ;;  %v289_v51 = vld [vmem:[%s9113_s14 + $0x98] sm:$0xf] }
  0x23   :  { %284 = vst [vmem:[#allocation4 + $0x88] sm:$0xf] %v283_v49  ;;  %286 = vst [vmem:[#allocation4 + $0x8c] sm:$0xff] %v285_v50   ;;  %v291_v52 = vld [vmem:[%s9113_s14 + $0x94] sm:$0xf]  ;;  %v301_v56 = vld [vmem:[%s9113_s14 + $0xac] sm:$0xff]  }
  0x24   :  { %290 = vst [vmem:[#allocation4 + $0x94] sm:$0xf] %v289_v51  ;;  %v297_v54 = vld [vmem:[%s9113_s14 + $0xa8] sm:$0xf]  ;;  %292 = vst [vmem:[#allocation4 + $0x98] sm:$0xf] %v291_v52 }
  0x25   :  { %294 = vst [vmem:[#allocation4 + $0x9c] sm:$0xff] %v293_v53   ;;  %298 = vst [vmem:[#allocation4 + $0xa4] sm:$0xf] %v297_v54  ;;  %v299_v55 = vld [vmem:[%s9113_s14 + $0xa4] sm:$0xf]  ;;  %v309_v59 = vld [vmem:[%s9113_s14 + $0xbc] sm:$0xff]  }
  0x26   :  { %v305_v57 = vld [vmem:[%s9113_s14 + $0xb8] sm:$0xf]  ;;  %300 = vst [vmem:[#allocation4 + $0xa8] sm:$0xf] %v299_v55  ;;  %302 = vst [vmem:[#allocation4 + $0xac] sm:$0xff] %v301_v56   ;;  %v317_v62 = vld [vmem:[%s9113_s14 + $0xcc] sm:$0xff]  }
  0x27   :  { %306 = vst [vmem:[#allocation4 + $0xb4] sm:$0xf] %v305_v57  ;;  %v307_v58 = vld [vmem:[%s9113_s14 + $0xb4] sm:$0xf]  ;;  %v313_v60 = vld [vmem:[%s9113_s14 + $0xc8] sm:$0xf] }
  0x28   :  { %308 = vst [vmem:[#allocation4 + $0xb8] sm:$0xf] %v307_v58  ;;  %310 = vst [vmem:[#allocation4 + $0xbc] sm:$0xff] %v309_v59   ;;  %v315_v61 = vld [vmem:[%s9113_s14 + $0xc4] sm:$0xf]  ;;  %v325_v1 = vld [vmem:[%s9113_s14 + $0xdc] sm:$0xff]  }
  0x29   :  { %314 = vst [vmem:[#allocation4 + $0xc4] sm:$0xf] %v313_v60  ;;  %v321_v63 = vld [vmem:[%s9113_s14 + $0xd8] sm:$0xf]  ;;  %316 = vst [vmem:[#allocation4 + $0xc8] sm:$0xf] %v315_v61 }
  0x2a   :  { %318 = vst [vmem:[#allocation4 + $0xcc] sm:$0xff] %v317_v62   ;;  %322 = vst [vmem:[#allocation4 + $0xd4] sm:$0xf] %v321_v63  ;;  %v323_v0 = vld [vmem:[%s9113_s14 + $0xd4] sm:$0xf]  ;;  %v333_v4 = vld [vmem:[%s9113_s14 + $0xec] sm:$0xff]  }
  0x2b   :  { %v329_v2 = vld [vmem:[%s9113_s14 + $0xe8] sm:$0xf]  ;;  %324 = vst [vmem:[#allocation4 + $0xd8] sm:$0xf] %v323_v0  ;;  %326 = vst [vmem:[#allocation4 + $0xdc] sm:$0xff] %v325_v1   ;;  %v341_v7 = vld [vmem:[%s9113_s14 + $0xfc] sm:$0xff]  }
  0x2c   :  { %330 = vst [vmem:[#allocation4 + $0xe4] sm:$0xf] %v329_v2  ;;  %v331_v3 = vld [vmem:[%s9113_s14 + $0xe4] sm:$0xf]  ;;  %v337_v5 = vld [vmem:[%s9113_s14 + $0xf8] sm:$0xf] }
  0x2d   :  { %332 = vst [vmem:[#allocation4 + $0xe8] sm:$0xf] %v331_v3  ;;  %334 = vst [vmem:[#allocation4 + $0xec] sm:$0xff] %v333_v4   ;;  %v339_v6 = vld [vmem:[%s9113_s14 + $0xf4] sm:$0xf]  ;;  %v349_v10 = vld [vmem:[%s9113_s14 + $0x10c] sm:$0xff]  }
  0x2e   :  { %338 = vst [vmem:[#allocation4 + $0xf4] sm:$0xf] %v337_v5  ;;  %v345_v8 = vld [vmem:[%s9113_s14 + $0x108] sm:$0xf]  ;;  %340 = vst [vmem:[#allocation4 + $0xf8] sm:$0xf] %v339_v6 }
  0x2f   :  { %342 = vst [vmem:[#allocation4 + $0xfc] sm:$0xff] %v341_v7   ;;  %346 = vst [vmem:[#allocation4 + $0x104] sm:$0xf] %v345_v8  ;;  %v347_v9 = vld [vmem:[%s9113_s14 + $0x104] sm:$0xf]  ;;  %v357_v13 = vld [vmem:[%s9113_s14 + $0x11c] sm:$0xff]  }
  0x30   :  { %v353_v11 = vld [vmem:[%s9113_s14 + $0x118] sm:$0xf]  ;;  %348 = vst [vmem:[#allocation4 + $0x108] sm:$0xf] %v347_v9  ;;  %350 = vst [vmem:[#allocation4 + $0x10c] sm:$0xff] %v349_v10   ;;  %v365_v16 = vld [vmem:[%s9113_s14 + $0x12c] sm:$0xff]  }
  0x31   :  { %354 = vst [vmem:[#allocation4 + $0x114] sm:$0xf] %v353_v11  ;;  %v355_v12 = vld [vmem:[%s9113_s14 + $0x114] sm:$0xf]  ;;  %v361_v14 = vld [vmem:[%s9113_s14 + $0x128] sm:$0xf] }
  0x32   :  { %356 = vst [vmem:[#allocation4 + $0x118] sm:$0xf] %v355_v12  ;;  %358 = vst [vmem:[#allocation4 + $0x11c] sm:$0xff] %v357_v13   ;;  %v363_v15 = vld [vmem:[%s9113_s14 + $0x124] sm:$0xf]  ;;  %v373_v19 = vld [vmem:[%s9113_s14 + $0x13c] sm:$0xff]  }
  0x33   :  { %362 = vst [vmem:[#allocation4 + $0x124] sm:$0xf] %v361_v14  ;;  %v369_v17 = vld [vmem:[%s9113_s14 + $0x138] sm:$0xf]  ;;  %364 = vst [vmem:[#allocation4 + $0x128] sm:$0xf] %v363_v15 }
  0x34   :  { %366 = vst [vmem:[#allocation4 + $0x12c] sm:$0xff] %v365_v16   ;;  %370 = vst [vmem:[#allocation4 + $0x134] sm:$0xf] %v369_v17  ;;  %v371_v18 = vld [vmem:[%s9113_s14 + $0x134] sm:$0xf]  ;;  %v381_v22 = vld [vmem:[%s9113_s14 + $0x14c] sm:$0xff]  }
  0x35   :  { %v377_v20 = vld [vmem:[%s9113_s14 + $0x148] sm:$0xf]  ;;  %372 = vst [vmem:[#allocation4 + $0x138] sm:$0xf] %v371_v18  ;;  %374 = vst [vmem:[#allocation4 + $0x13c] sm:$0xff] %v373_v19   ;;  %v389_v25 = vld [vmem:[%s9113_s14 + $0x15c] sm:$0xff]  }
  0x36   :  { %378 = vst [vmem:[#allocation4 + $0x144] sm:$0xf] %v377_v20  ;;  %v379_v21 = vld [vmem:[%s9113_s14 + $0x144] sm:$0xf]  ;;  %v385_v23 = vld [vmem:[%s9113_s14 + $0x158] sm:$0xf] }
  0x37   :  { %380 = vst [vmem:[#allocation4 + $0x148] sm:$0xf] %v379_v21  ;;  %382 = vst [vmem:[#allocation4 + $0x14c] sm:$0xff] %v381_v22   ;;  %v387_v24 = vld [vmem:[%s9113_s14 + $0x154] sm:$0xf]  ;;  %v397_v28 = vld [vmem:[%s9113_s14 + $0x16c] sm:$0xff]  }
  0x38   :  { %386 = vst [vmem:[#allocation4 + $0x154] sm:$0xf] %v385_v23  ;;  %v393_v26 = vld [vmem:[%s9113_s14 + $0x168] sm:$0xf]  ;;  %388 = vst [vmem:[#allocation4 + $0x158] sm:$0xf] %v387_v24 }
  0x39   :  { %390 = vst [vmem:[#allocation4 + $0x15c] sm:$0xff] %v389_v25   ;;  %394 = vst [vmem:[#allocation4 + $0x164] sm:$0xf] %v393_v26  ;;  %v395_v27 = vld [vmem:[%s9113_s14 + $0x164] sm:$0xf]  ;;  %v405_v31 = vld [vmem:[%s9113_s14 + $0x17c] sm:$0xff]  }
  0x3a   :  { %v401_v29 = vld [vmem:[%s9113_s14 + $0x178] sm:$0xf]  ;;  %396 = vst [vmem:[#allocation4 + $0x168] sm:$0xf] %v395_v27  ;;  %398 = vst [vmem:[#allocation4 + $0x16c] sm:$0xff] %v397_v28   ;;  %v413_v34 = vld [vmem:[%s9113_s14 + $0x18c] sm:$0xff]  }
  0x3b   :  { %402 = vst [vmem:[#allocation4 + $0x174] sm:$0xf] %v401_v29  ;;  %v403_v30 = vld [vmem:[%s9113_s14 + $0x174] sm:$0xf]  ;;  %v409_v32 = vld [vmem:[%s9113_s14 + $0x188] sm:$0xf] }
  0x3c   :  { %404 = vst [vmem:[#allocation4 + $0x178] sm:$0xf] %v403_v30  ;;  %406 = vst [vmem:[#allocation4 + $0x17c] sm:$0xff] %v405_v31   ;;  %v411_v33 = vld [vmem:[%s9113_s14 + $0x184] sm:$0xf]  ;;  %v421_v37 = vld [vmem:[%s9113_s14 + $0x19c] sm:$0xff]  }
  0x3d   :  { %410 = vst [vmem:[#allocation4 + $0x184] sm:$0xf] %v409_v32  ;;  %v417_v35 = vld [vmem:[%s9113_s14 + $0x198] sm:$0xf]  ;;  %412 = vst [vmem:[#allocation4 + $0x188] sm:$0xf] %v411_v33 }
  0x3e   :  { %414 = vst [vmem:[#allocation4 + $0x18c] sm:$0xff] %v413_v34   ;;  %418 = vst [vmem:[#allocation4 + $0x194] sm:$0xf] %v417_v35  ;;  %v419_v36 = vld [vmem:[%s9113_s14 + $0x194] sm:$0xf]  ;;  %v429_v40 = vld [vmem:[%s9113_s14 + $0x1ac] sm:$0xff]  }
  0x3f   :  { %v425_v38 = vld [vmem:[%s9113_s14 + $0x1a8] sm:$0xf]  ;;  %420 = vst [vmem:[#allocation4 + $0x198] sm:$0xf] %v419_v36  ;;  %422 = vst [vmem:[#allocation4 + $0x19c] sm:$0xff] %v421_v37   ;;  %v437_v43 = vld [vmem:[%s9113_s14 + $0x1bc] sm:$0xff]  }
  0x40   :  { %426 = vst [vmem:[#allocation4 + $0x1a4] sm:$0xf] %v425_v38  ;;  %v427_v39 = vld [vmem:[%s9113_s14 + $0x1a4] sm:$0xf]  ;;  %v433_v41 = vld [vmem:[%s9113_s14 + $0x1b8] sm:$0xf] }
  0x41   :  { %428 = vst [vmem:[#allocation4 + $0x1a8] sm:$0xf] %v427_v39  ;;  %430 = vst [vmem:[#allocation4 + $0x1ac] sm:$0xff] %v429_v40   ;;  %v435_v42 = vld [vmem:[%s9113_s14 + $0x1b4] sm:$0xf]  ;;  %v445_v46 = vld [vmem:[%s9113_s14 + $0x1cc] sm:$0xff]  }
  0x42   :  { %434 = vst [vmem:[#allocation4 + $0x1b4] sm:$0xf] %v433_v41  ;;  %v441_v44 = vld [vmem:[%s9113_s14 + $0x1c8] sm:$0xf]  ;;  %436 = vst [vmem:[#allocation4 + $0x1b8] sm:$0xf] %v435_v42 }
  0x43   :  { %438 = vst [vmem:[#allocation4 + $0x1bc] sm:$0xff] %v437_v43   ;;  %442 = vst [vmem:[#allocation4 + $0x1c4] sm:$0xf] %v441_v44  ;;  %v443_v45 = vld [vmem:[%s9113_s14 + $0x1c4] sm:$0xf]  ;;  %v453_v49 = vld [vmem:[%s9113_s14 + $0x1dc] sm:$0xff]  }
  0x44   :  { %v449_v47 = vld [vmem:[%s9113_s14 + $0x1d8] sm:$0xf]  ;;  %444 = vst [vmem:[#allocation4 + $0x1c8] sm:$0xf] %v443_v45  ;;  %446 = vst [vmem:[#allocation4 + $0x1cc] sm:$0xff] %v445_v46   ;;  %v461_v52 = vld [vmem:[%s9113_s14 + $0x1ec] sm:$0xff]  }
  0x45   :  { %450 = vst [vmem:[#allocation4 + $0x1d4] sm:$0xf] %v449_v47  ;;  %v451_v48 = vld [vmem:[%s9113_s14 + $0x1d4] sm:$0xf]  ;;  %v457_v50 = vld [vmem:[%s9113_s14 + $0x1e8] sm:$0xf] }
  0x46   :  { %452 = vst [vmem:[#allocation4 + $0x1d8] sm:$0xf] %v451_v48  ;;  %454 = vst [vmem:[#allocation4 + $0x1dc] sm:$0xff] %v453_v49   ;;  %v459_v51 = vld [vmem:[%s9113_s14 + $0x1e4] sm:$0xf]  ;;  %v469_v55 = vld [vmem:[%s9113_s14 + $0x1fc] sm:$0xff]  }
  0x47   :  { %458 = vst [vmem:[#allocation4 + $0x1e4] sm:$0xf] %v457_v50  ;;  %v465_v53 = vld [vmem:[%s9113_s14 + $0x1f8] sm:$0xf]  ;;  %460 = vst [vmem:[#allocation4 + $0x1e8] sm:$0xf] %v459_v51 }
  0x48   :  { %462 = vst [vmem:[#allocation4 + $0x1ec] sm:$0xff] %v461_v52   ;;  %466 = vst [vmem:[#allocation4 + $0x1f4] sm:$0xf] %v465_v53  ;;  %v467_v54 = vld [vmem:[%s9113_s14 + $0x1f4] sm:$0xf]  ;;  %v477_v58 = vld [vmem:[%s9113_s14 + $0x20c] sm:$0xff]  }
  0x49   :  { %v473_v56 = vld [vmem:[%s9113_s14 + $0x208] sm:$0xf]  ;;  %468 = vst [vmem:[#allocation4 + $0x1f8] sm:$0xf] %v467_v54  ;;  %470 = vst [vmem:[#allocation4 + $0x1fc] sm:$0xff] %v469_v55   ;;  %v485_v61 = vld [vmem:[%s9113_s14 + $0x21c] sm:$0xff]  }
  0x4a   :  { %474 = vst [vmem:[#allocation4 + $0x204] sm:$0xf] %v473_v56  ;;  %v475_v57 = vld [vmem:[%s9113_s14 + $0x204] sm:$0xf]  ;;  %v481_v59 = vld [vmem:[%s9113_s14 + $0x218] sm:$0xf] }
  0x4b   :  { %476 = vst [vmem:[#allocation4 + $0x208] sm:$0xf] %v475_v57  ;;  %478 = vst [vmem:[#allocation4 + $0x20c] sm:$0xff] %v477_v58   ;;  %v483_v60 = vld [vmem:[%s9113_s14 + $0x214] sm:$0xf]  ;;  %v493_v0 = vld [vmem:[%s9113_s14 + $0x22c] sm:$0xff]  }
  0x4c   :  { %482 = vst [vmem:[#allocation4 + $0x214] sm:$0xf] %v481_v59  ;;  %v489_v62 = vld [vmem:[%s9113_s14 + $0x228] sm:$0xf]  ;;  %484 = vst [vmem:[#allocation4 + $0x218] sm:$0xf] %v483_v60 }
  0x4d   :  { %486 = vst [vmem:[#allocation4 + $0x21c] sm:$0xff] %v485_v61   ;;  %490 = vst [vmem:[#allocation4 + $0x224] sm:$0xf] %v489_v62  ;;  %v491_v63 = vld [vmem:[%s9113_s14 + $0x224] sm:$0xf]  ;;  %v501_v3 = vld [vmem:[%s9113_s14 + $0x23c] sm:$0xff]  }
  0x4e   :  { %v497_v1 = vld [vmem:[%s9113_s14 + $0x238] sm:$0xf]  ;;  %492 = vst [vmem:[#allocation4 + $0x228] sm:$0xf] %v491_v63  ;;  %494 = vst [vmem:[#allocation4 + $0x22c] sm:$0xff] %v493_v0   ;;  %v509_v6 = vld [vmem:[%s9113_s14 + $0x24c] sm:$0xff]  }
  0x4f   :  { %498 = vst [vmem:[#allocation4 + $0x234] sm:$0xf] %v497_v1  ;;  %v499_v2 = vld [vmem:[%s9113_s14 + $0x234] sm:$0xf]  ;;  %v505_v4 = vld [vmem:[%s9113_s14 + $0x248] sm:$0xf] }
  0x50   :  { %500 = vst [vmem:[#allocation4 + $0x238] sm:$0xf] %v499_v2  ;;  %502 = vst [vmem:[#allocation4 + $0x23c] sm:$0xff] %v501_v3   ;;  %v507_v5 = vld [vmem:[%s9113_s14 + $0x244] sm:$0xf]  ;;  %v517_v9 = vld [vmem:[%s9113_s14 + $0x25c] sm:$0xff]  }
  0x51   :  { %506 = vst [vmem:[#allocation4 + $0x244] sm:$0xf] %v505_v4  ;;  %v513_v7 = vld [vmem:[%s9113_s14 + $0x258] sm:$0xf]  ;;  %508 = vst [vmem:[#allocation4 + $0x248] sm:$0xf] %v507_v5 }
  0x52   :  { %510 = vst [vmem:[#allocation4 + $0x24c] sm:$0xff] %v509_v6   ;;  %514 = vst [vmem:[#allocation4 + $0x254] sm:$0xf] %v513_v7  ;;  %v515_v8 = vld [vmem:[%s9113_s14 + $0x254] sm:$0xf]  ;;  %v525_v12 = vld [vmem:[%s9113_s14 + $0x26c] sm:$0xff]  }
  0x53   :  { %v521_v10 = vld [vmem:[%s9113_s14 + $0x268] sm:$0xf]  ;;  %516 = vst [vmem:[#allocation4 + $0x258] sm:$0xf] %v515_v8  ;;  %518 = vst [vmem:[#allocation4 + $0x25c] sm:$0xff] %v517_v9   ;;  %v533_v15 = vld [vmem:[%s9113_s14 + $0x27c] sm:$0xff]  }
  0x54   :  { %522 = vst [vmem:[#allocation4 + $0x264] sm:$0xf] %v521_v10  ;;  %v523_v11 = vld [vmem:[%s9113_s14 + $0x264] sm:$0xf]  ;;  %v529_v13 = vld [vmem:[%s9113_s14 + $0x278] sm:$0xf] }
  0x55   :  { %524 = vst [vmem:[#allocation4 + $0x268] sm:$0xf] %v523_v11  ;;  %526 = vst [vmem:[#allocation4 + $0x26c] sm:$0xff] %v525_v12   ;;  %v531_v14 = vld [vmem:[%s9113_s14 + $0x274] sm:$0xf]  ;;  %v541_v18 = vld [vmem:[%s9113_s14 + $0x28c] sm:$0xff]  }
  0x56   :  { %530 = vst [vmem:[#allocation4 + $0x274] sm:$0xf] %v529_v13  ;;  %v537_v16 = vld [vmem:[%s9113_s14 + $0x288] sm:$0xf]  ;;  %532 = vst [vmem:[#allocation4 + $0x278] sm:$0xf] %v531_v14 }
  0x57   :  { %534 = vst [vmem:[#allocation4 + $0x27c] sm:$0xff] %v533_v15   ;;  %538 = vst [vmem:[#allocation4 + $0x284] sm:$0xf] %v537_v16  ;;  %v539_v17 = vld [vmem:[%s9113_s14 + $0x284] sm:$0xf]  ;;  %v549_v21 = vld [vmem:[%s9113_s14 + $0x29c] sm:$0xff]  }
  0x58   :  { %v545_v19 = vld [vmem:[%s9113_s14 + $0x298] sm:$0xf]  ;;  %540 = vst [vmem:[#allocation4 + $0x288] sm:$0xf] %v539_v17  ;;  %542 = vst [vmem:[#allocation4 + $0x28c] sm:$0xff] %v541_v18   ;;  %v557_v24 = vld [vmem:[%s9113_s14 + $0x2ac] sm:$0xff]  }
  0x59   :  { %546 = vst [vmem:[#allocation4 + $0x294] sm:$0xf] %v545_v19  ;;  %v547_v20 = vld [vmem:[%s9113_s14 + $0x294] sm:$0xf]  ;;  %v553_v22 = vld [vmem:[%s9113_s14 + $0x2a8] sm:$0xf] }
  0x5a   :  { %548 = vst [vmem:[#allocation4 + $0x298] sm:$0xf] %v547_v20  ;;  %550 = vst [vmem:[#allocation4 + $0x29c] sm:$0xff] %v549_v21   ;;  %v555_v23 = vld [vmem:[%s9113_s14 + $0x2a4] sm:$0xf]  ;;  %v565_v27 = vld [vmem:[%s9113_s14 + $0x2bc] sm:$0xff]  }
  0x5b   :  { %554 = vst [vmem:[#allocation4 + $0x2a4] sm:$0xf] %v553_v22  ;;  %v561_v25 = vld [vmem:[%s9113_s14 + $0x2b8] sm:$0xf]  ;;  %556 = vst [vmem:[#allocation4 + $0x2a8] sm:$0xf] %v555_v23 }
  0x5c   :  { %558 = vst [vmem:[#allocation4 + $0x2ac] sm:$0xff] %v557_v24   ;;  %562 = vst [vmem:[#allocation4 + $0x2b4] sm:$0xf] %v561_v25  ;;  %v563_v26 = vld [vmem:[%s9113_s14 + $0x2b4] sm:$0xf]  ;;  %v573_v30 = vld [vmem:[%s9113_s14 + $0x2cc] sm:$0xff]  }
  0x5d   :  { %v569_v28 = vld [vmem:[%s9113_s14 + $0x2c8] sm:$0xf]  ;;  %564 = vst [vmem:[#allocation4 + $0x2b8] sm:$0xf] %v563_v26  ;;  %566 = vst [vmem:[#allocation4 + $0x2bc] sm:$0xff] %v565_v27   ;;  %v581_v33 = vld [vmem:[%s9113_s14 + $0x2dc] sm:$0xff]  }
  0x5e   :  { %570 = vst [vmem:[#allocation4 + $0x2c4] sm:$0xf] %v569_v28  ;;  %v571_v29 = vld [vmem:[%s9113_s14 + $0x2c4] sm:$0xf]  ;;  %v577_v31 = vld [vmem:[%s9113_s14 + $0x2d8] sm:$0xf] }
  0x5f   :  { %572 = vst [vmem:[#allocation4 + $0x2c8] sm:$0xf] %v571_v29  ;;  %574 = vst [vmem:[#allocation4 + $0x2cc] sm:$0xff] %v573_v30   ;;  %v579_v32 = vld [vmem:[%s9113_s14 + $0x2d4] sm:$0xf]  ;;  %v589_v36 = vld [vmem:[%s9113_s14 + $0x2ec] sm:$0xff]  }
  0x60   :  { %578 = vst [vmem:[#allocation4 + $0x2d4] sm:$0xf] %v577_v31  ;;  %v585_v34 = vld [vmem:[%s9113_s14 + $0x2e8] sm:$0xf]  ;;  %580 = vst [vmem:[#allocation4 + $0x2d8] sm:$0xf] %v579_v32 }
  0x61   :  { %582 = vst [vmem:[#allocation4 + $0x2dc] sm:$0xff] %v581_v33   ;;  %586 = vst [vmem:[#allocation4 + $0x2e4] sm:$0xf] %v585_v34  ;;  %v587_v35 = vld [vmem:[%s9113_s14 + $0x2e4] sm:$0xf] }
  0x62   :  { %v593_v37 = vld [vmem:[%s9113_s14 + $0x2f8] sm:$0xf]  ;;  %588 = vst [vmem:[#allocation4 + $0x2e8] sm:$0xf] %v587_v35  ;;  %590 = vst [vmem:[#allocation4 + $0x2ec] sm:$0xff] %v589_v36  }
  0x63   :  { %594 = vst [vmem:[#allocation4 + $0x2f4] sm:$0xf] %v593_v37  ;;  %v595_v38 = vld [vmem:[%s9113_s14 + $0x2f4] sm:$0xf]  ;;  %v597_v39 = vld [vmem:[%s9113_s14 + $0x2fc] sm:$0xf] }
  0x64   :  { %596 = vst [vmem:[#allocation4 + $0x2f8] sm:$0xf] %v595_v38  ;;  %598 = vst [vmem:[#allocation4 + $0x2fc] sm:$0xf] %v597_v39 }
  0x65   :  { %1013 = vsyncadd [#allocation5 + $0x1], 12288  ;;  %s9119_s29 = sld [smem:[#allocation13_spill]]  ;;  %vm1022_vm0 = vcmask 1043456   ;;  %v7693_v42 = vmov 0.0   ;;  %v1189_v43 = vld [vmem:[%s9103_s4] sm:$0xff] }
  0x66   :  { %1091 = vmatprep.mubr.f32.mxu0 %v7693_v42  ;;  %1176 = vmatprep.mubr.f32.mxu1 %v7693_v42  ;;  %s9120_s18 = sld [smem:[#allocation14_spill]]  ;;  %vm1018_vm1 = vcmask 31744   ;;  %v1190_v45 = vld [vmem:[%s9103_s4 + $0x8] sm:$0xff]  ;;  %v7694_v47 = vmov 0.0|0.0   ;;  %vm7695_vm2 = vmmov 0   ;;  %vm1202_vm3 = vcmask 130048  }
  0x67   :  { %v8316_v46 = vpack.c.bf16 %v1190_v45, %v1189_v43  ;;  %s7696_s4 = smov 112   ;;  %v1098_v50 = vld [vmem:[%s9101_s2] sm:$0xff]  ;;  %v1099_v51 = vld [vmem:[%s9101_s2 + $0x8] sm:$0xf]  ;;  %vm1448_vm5 = vcmask 60416   ;;  %s7699_s0 = smov 64  }
  0x68   :  { %v1192_v52 = vld [vmem:[%s9105_s6] sm:$0xff]  ;;  %v1193_v53 = vld [vmem:[%s9105_s6 + $0x8] sm:$0xff]  ;;  %s7697_s6 = smov 96   ;;  %s7700_s30 = smov 48   ;;  %vm7703_vm8 = vmmov 1   ;;  %vm1371_vm11 = vcmask 97280  }
  0x69   :  { %v8354_v54 = vpack.c.bf16 %v1193_v53, %v1192_v52  ;;  %v8362_v55 = vld [vmem:[%s9104_s5] ss:$0 sm:$0xff]  ;;  %s7701_s12 = smov 32   ;;  %s7702_s14 = smov 16   ;;  %vm8438_vm9 = vmpackc.low %vm1022_vm0, %vm7703_vm8  ;;  %vm1454_vm15 = vcmask 126016  }
  0x6a   :  { %v8432_v2 = vld [vmem:[%s9106_s7] ss:$0 sm:$0xff]  ;;  %s7704_s20 = smov 8  }
  0x6b   :  { %v1015_v40 = vld [vmem:[%s9119_s29] sm:$0xff]  ;;  %s7698_s29 = smov 80  }
  0x6c   :  { %v1017_v41 = vcombine.high %v1015_v40, %v1015_v40  ;;  %v1014_v44 = vld [vmem:[%s9120_s18] sm:$0xf] }
  0x6d   :  { %v8447_v18 = vld [vmem:[%s9102_s3] sm:$0xf] }
  0x6e   :  { %6594 = vmatprep.subr.msk.mxu0 %vm1022_vm0, %v1017_v41  ;;  %v5273_v13 = vld [vmem:[%s9109_s10] sm:$0xff] }
  0x6f   :  { %6595 = vmatpush1.msk.msra.mxu0 %vm1022_vm0, %v1015_v40 }
  0x70   :  { %6596 = vmatmul.mubr.msk.f32.vlgmr.msra.gmra.mrb[0].mxu0 %vm1018_vm1, %v1014_v44  ;;  %7363 = vmatprep.subr.bf16.mxu0 %v7694_v47 }
  0x71   :  { %7365 = vmatpush3.bf16.msra.mxu0 %v8316_v46  ;;  %6927 = vmatprep.mubr.msk.f32.mxu0 %vm7695_vm2, %v7693_v42 }
  0x72   :  { %7367 = vmatprep.subr.bf16.mxu0 %v8354_v54 }
 0x143   :  { %v8324_v48 = vpop.f32.mrb[0].mxu0 }
 0x144   :  { %1456 = vrot.lane.b32.xlu1 %v8324_v48, %s7696_s4  ;;  %v8328_v49 = vpop.f32.mrb[1].mxu0  ;;  %6928 = vmatmul.mubr.msk.f32.vlgmr.msra.gmra.mrb[2].mxu0 %vm1202_vm3, %v8324_v48 }
 0x145   :  { %6597 = vmatprep.subr.msk.mxu1 %vm1022_vm0, %v8328_v49  ;;  %7369 = vmatpush3.bf16.msra.mxu0 %v8354_v54 }
 0x146   :  { %6598 = vmatpush1.msk.msra.mxu1 %vm1022_vm0, %v8324_v48  ;;  %7374 = vmatprep.subr.bf16.mxu0 %v7694_v47 }
 0x147   :  { %6599 = vmatmul.mubr.msk.f32.vlgmr.msra.gmra.mrb[0].mxu1 %vm1018_vm1, %v1098_v50  ;;  %7370 = vmatprep.subr.bf16.mxu1 %v7694_v47 }
 0x148   :  { %1182 = vmatprep.mubr.f32.mxu1 %v7693_v42 }
 0x14b   :  { %6600 = vmatmul.mubr.msk.f32.gmra.mrb[2].mxu1 %vm1018_vm1, %v1099_v51 }
 0x14c   :  { %6941 = vmatprep.mubr.msk.f32.mxu1 %vm7695_vm2, %v7693_v42 }
 0x1b6   :  { %v1457_v1 = vpop.permute.xlu1 %1456 }
 0x217   :  { %v1271_v56 = vpop.f32.mrb[2].mxu0 }
 0x218   :  { %v1272_v57 = vadd.f32 %v8362_v55, %v1271_v56  ;;  %v6929_v58 = vpop.f32.mrb[3].mxu0 }
 0x21a   :  { %vm1275_vm4 = vcmp.gt.f32.partialorder %v1272_v57, 0.0  ;;  %v1276_v59 = vmul.f32 0.2, %v1272_v57  ;;  %v1178_v60 = vpop.f32.mrb[0].mxu1 }
 0x21b   :  { %1778 = vrot.lane.b32.xlu1 %v1178_v60, %s7697_s6  ;;  %1533 = vrot.lane.b32.xlu0 %v1178_v60, %s7696_s4  ;;  %v8367_v61 = vpop.f32.mrb[1].mxu1 }
 0x21c   :  { %6934 = vmatprep.mubr.msk.f32.mxu0 %vm1202_vm3, %v1178_v60  ;;  %v1277_v62 = vsel %vm1275_vm4, %v1272_v57, %v1276_v59 }
 0x21d   :  { %1449 = vst.msk [vmem:[#allocation2] sm:$0xf] %vm1448_vm5, %v1277_v62 }
 0x21e   :  { %v1184_v63 = vpop.f32.mrb[2].mxu1 }
 0x21f   :  { %1701 = vrot.lane.b32.xlu1 %v8324_v48, %s7697_s6  ;;  %1535 = vrot.lane.b32.xlu0 %v1184_v63, %s7696_s4  ;;  %v8374_v0 = vpop.f32.mrb[3].mxu1 }
 0x220   :  { %6935 = vmatmul.mubr.msk.f32.vlgmr.msra.gmra.mrb[4].mxu0 %vm1202_vm3, %v1184_v63 }
 0x221   :  { %7376 = vmatpush3.bf16.msra.mxu0 %v8316_v46  ;;  %6948 = vmatprep.mubr.msk.f32.mxu0 %vm7695_vm2, %v7693_v42 }
 0x222   :  { %7381 = vmatprep.subr.bf16.mxu0 %v7694_v47 }
 0x223   :  { %2025 = vrot.lane.b32.xlu1 %v1184_v63, %s7698_s29  ;;  %1780 = vrot.lane.b32.xlu0 %v1184_v63, %s7697_s6 }
 0x224   :  { %6949 = vmatmul.mubr.msk.f32.vlgmr.msra.gmra.mrb[6].mxu0 %vm1202_vm3, %v1457_v1 }
 0x225   :  { %6962 = vmatprep.mubr.msk.f32.mxu0 %vm7695_vm2, %v7693_v42 }
 0x227   :  { %2268 = vrot.lane.b32.xlu1 %v1178_v60, %s7699_s0  ;;  %2023 = vrot.lane.b32.xlu0 %v1178_v60, %s7698_s29 }
 0x22b   :  { %2191 = vrot.lane.b32.xlu1 %v8324_v48, %s7699_s0  ;;  %1946 = vrot.lane.b32.xlu0 %v8324_v48, %s7698_s29 }
 0x22f   :  { %2515 = vrot.lane.b32.xlu1 %v1184_v63, %s7700_s30  ;;  %2270 = vrot.lane.b32.xlu0 %v1184_v63, %s7699_s0 }
 0x233   :  { %2758 = vrot.lane.b32.xlu1 %v1178_v60, %s7701_s12  ;;  %2513 = vrot.lane.b32.xlu0 %v1178_v60, %s7700_s30 }
 0x237   :  { %2681 = vrot.lane.b32.xlu1 %v8324_v48, %s7701_s12  ;;  %2436 = vrot.lane.b32.xlu0 %v8324_v48, %s7700_s30 }
 0x23b   :  { %3005 = vrot.lane.b32.xlu1 %v1184_v63, %s7702_s14  ;;  %2760 = vrot.lane.b32.xlu0 %v1184_v63, %s7701_s12 }
 0x23f   :  { %3489 = vrot.lane.b32.xlu1 %v8367_v61, %s7696_s4  ;;  %3003 = vrot.lane.b32.xlu0 %v1178_v60, %s7702_s14 }
 0x243   :  { %3412 = vrot.lane.b32.xlu1 %v8328_v49, %s7696_s4  ;;  %2926 = vrot.lane.b32.xlu0 %v8324_v48, %s7702_s14 }
 0x247   :  { %3736 = vrot.lane.b32.xlu1 %v8374_v0, %s7697_s6  ;;  %3491 = vrot.lane.b32.xlu0 %v8374_v0, %s7696_s4 }
 0x24b   :  { %3979 = vrot.lane.b32.xlu1 %v8367_v61, %s7698_s29  ;;  %3734 = vrot.lane.b32.xlu0 %v8367_v61, %s7697_s6 }
 0x24f   :  { %3902 = vrot.lane.b32.xlu1 %v8328_v49, %s7698_s29  ;;  %3657 = vrot.lane.b32.xlu0 %v8328_v49, %s7697_s6 }
 0x253   :  { %4226 = vrot.lane.b32.xlu1 %v8374_v0, %s7699_s0  ;;  %3981 = vrot.lane.b32.xlu0 %v8374_v0, %s7698_s29 }
 0x257   :  { %4469 = vrot.lane.b32.xlu1 %v8367_v61, %s7700_s30  ;;  %4224 = vrot.lane.b32.xlu0 %v8367_v61, %s7699_s0 }
 0x25b   :  { %4392 = vrot.lane.b32.xlu1 %v8328_v49, %s7700_s30  ;;  %4147 = vrot.lane.b32.xlu0 %v8328_v49, %s7699_s0 }
 0x25f   :  { %4716 = vrot.lane.b32.xlu1 %v8374_v0, %s7701_s12  ;;  %4471 = vrot.lane.b32.xlu0 %v8374_v0, %s7700_s30 }
 0x263   :  { %4959 = vrot.lane.b32.xlu1 %v8367_v61, %s7702_s14  ;;  %4714 = vrot.lane.b32.xlu0 %v8367_v61, %s7701_s12 }
 0x267   :  { %4882 = vrot.lane.b32.xlu1 %v8328_v49, %s7702_s14  ;;  %4637 = vrot.lane.b32.xlu0 %v8328_v49, %s7701_s12 }
 0x26b   :  { %4961 = vrot.lane.b32.xlu0 %v8374_v0, %s7702_s14 }
 0x28d   :  { %v1534_v17 = vpop.permute.xlu0 %1533  ;;  %v1779_v20 = vpop.permute.xlu1 %1778 }
 0x291   :  { %v1536_v21 = vpop.permute.xlu0 %1535  ;;  %v1702_v22 = vpop.permute.xlu1 %1701 }
 0x295   :  { %v1781_v25 = vpop.permute.xlu0 %1780 }
 0x299   :  { %v8467_v33 = vpop.permute.xlu0 %2023 }
 0x29d   :  { %v1947_v41 = vpop.permute.xlu0 %1946 }
 0x2a1   :  { %v8480_v43 = vpop.permute.xlu0 %2270 }
 0x2a5   :  { %v8489_v44 = vpop.permute.xlu0 %2513 }
 0x2a9   :  { %v8491_v45 = vpop.permute.xlu0 %2436 }
 0x2ad   :  { %v8493_v48 = vpop.permute.xlu0 %2760 }
 0x2b1   :  { %v8495_v50 = vpop.permute.xlu0 %3003 }
 0x2b5   :  { %v8497_v51 = vpop.permute.xlu0 %2926 }
 0x2b9   :  { %v8499_v52 = vpop.permute.xlu0 %3491 }
 0x2bd   :  { %v8501_v53 = vpop.permute.xlu0 %3734 }
 0x2c1   :  { %v8503_v56 = vpop.permute.xlu0 %3657 }
 0x2c5   :  { %v8505_v57 = vpop.permute.xlu0 %3981 }
 0x2c9   :  { %v8507_v58 = vpop.permute.xlu0 %4224 }
 0x2cd   :  { %v8509_v59 = vpop.permute.xlu0 %4147 }
 0x2d1   :  { %v8511_v60 = vpop.permute.xlu0 %4471 }
 0x2d5   :  { %v8513_v62 = vpop.permute.xlu0 %4714 }
 0x2d9   :  { %v8515_v63 = vpop.permute.xlu0 %4637 }
 0x2dd   :  { %v8517_v1 = vpop.permute.xlu0 %4961 }
 0x2f3   :  { %v6936_v3 = vpop.f32.mrb[4].mxu0 }
 0x2f4   :  { %v1362_v4 = vadd.f32 %v6936_v3, %v8432_v2  ;;  %v1356_v5 = vpop.f32.mrb[5].mxu0 }
 0x2f5   :  { %v1357_v6 = vadd.f32 %v8432_v2, %v1356_v5 }
 0x2f6   :  { %vm1366_vm6 = vcmp.gt.f32.partialorder %v1362_v4, 0.0  ;;  %v1368_v7 = vmul.f32 0.2, %v1362_v4 }
 0x2f7   :  { %vm1365_vm7 = vcmp.gt.f32.partialorder %v1357_v6, 0.0  ;;  %v1367_v8 = vmul.f32 0.2, %v1357_v6  ;;  %v1526_v9 = vpop.f32.mrb[6].mxu0 }
 0x2f8   :  { %v1370_v10 = vsel %vm1366_vm6, %v1362_v4, %v1368_v7  ;;  %v1527_v11 = vadd.f32 %v8362_v55, %v1526_v9  ;;  %v6950_v12 = vpop.f32.mrb[7].mxu0 }
 0x2f9   :  { %v1369_v14 = vsel %vm1365_vm7, %v1357_v6, %v1367_v8 }
 0x2fa   :  { %v7371_v15 = vpack.c.bf16 %v1370_v10, %v1369_v14  ;;  %vm1530_vm10 = vcmp.gt.f32.partialorder %v1527_v11, 0.0  ;;  %v1531_v16 = vmul.f32 0.2, %v1527_v11  ;;  %v2026_v14 = vpop.permute.xlu1 %2025 }
 0x2fc   :  { %7373 = vmatpush3.bf16.msk.msra.mxu1 %vm8438_vm9, %v7371_v15  ;;  %v1532_v19 = vsel %vm1530_vm10, %v1527_v11, %v1531_v16 }
 0x2fd   :  { %7378 = vmatprep.subr.bf16.mxu1 %v8354_v54  ;;  %1695 = vst.msk [vmem:[#allocation2 + $0x4] sm:$0xf] %vm1448_vm5, %v1532_v19 }
 0x2ff   :  { %6942 = vmatmul.mubr.msk.f32.vlgmr.msra.gmra.mrb[4].mxu1 %vm1371_vm11, %v8447_v18 }
 0x300   :  { %7380 = vmatpush3.bf16.msra.mxu1 %v8354_v54  ;;  %6955 = vmatprep.mubr.msk.f32.mxu1 %vm1202_vm3, %v1534_v17 }
 0x301   :  { %7385 = vmatprep.subr.bf16.mxu1 %v7694_v47 }
 0x303   :  { %6956 = vmatmul.mubr.msk.f32.vlgmr.msra.gmra.mrb[6].mxu1 %vm1202_vm3, %v1536_v21 }
 0x304   :  { %7387 = vmatpush3.bf16.msra.mxu1 %v8316_v46  ;;  %6969 = vmatprep.mubr.msk.f32.mxu1 %vm7695_vm2, %v7693_v42 }
 0x305   :  { %7392 = vmatprep.subr.bf16.mxu1 %v7694_v47 }
 0x307   :  { %6970 = vmatmul.mubr.msk.f32.vlgmr.msra.gmra.mrb[8].mxu1 %vm1202_vm3, %v1702_v22 }
 0x308   :  { %6983 = vmatprep.mubr.msk.f32.mxu1 %vm7695_vm2, %v7693_v42 }
 0x3d2   :  { %v1444_v23 = vpop.f32.mrb[4].mxu1 }
 0x3d3   :  { %v6943_v24 = vpop.f32.mrb[5].mxu1  ;;  %1451 = vrot.lane.b32.xlu0 %v1444_v23, %s7704_s20  ;;  %v2269_v23 = vpop.permute.xlu1 %2268 }
 0x3d6   :  { %v6957_v26 = vpop.f32.mrb[6].mxu1 }
 0x3d7   :  { %v1613_v27 = vadd.f32 %v6957_v26, %v8432_v2  ;;  %v1607_v28 = vpop.f32.mrb[7].mxu1  ;;  %v2192_v24 = vpop.permute.xlu1 %2191 }
 0x3d8   :  { %v1608_v29 = vadd.f32 %v8432_v2, %v1607_v28 }
 0x3d9   :  { %vm1617_vm12 = vcmp.gt.f32.partialorder %v1613_v27, 0.0  ;;  %v1619_v30 = vmul.f32 0.2, %v1613_v27 }
 0x3da   :  { %vm1616_vm13 = vcmp.gt.f32.partialorder %v1608_v29, 0.0  ;;  %v1618_v31 = vmul.f32 0.2, %v1608_v29  ;;  %v1771_v32 = vpop.f32.mrb[8].mxu1 }
 0x3db   :  { %v1621_v34 = vsel %vm1617_vm12, %v1613_v27, %v1619_v30  ;;  %v1772_v35 = vadd.f32 %v8362_v55, %v1771_v32  ;;  %v6971_v36 = vpop.f32.mrb[9].mxu1 }
 0x3dc   :  { %v1620_v37 = vsel %vm1616_vm13, %v1608_v29, %v1618_v31 }
 0x3dd   :  { %v7382_v38 = vpack.c.bf16 %v1621_v34, %v1620_v37  ;;  %vm1775_vm14 = vcmp.gt.f32.partialorder %v1772_v35, 0.0  ;;  %v1776_v39 = vmul.f32 0.2, %v1772_v35 }
 0x3df   :  { %7384 = vmatpush3.bf16.msk.msra.mxu0 %vm8438_vm9, %v7382_v38  ;;  %v1777_v40 = vsel %vm1775_vm14, %v1772_v35, %v1776_v39 }
 0x3e0   :  { %7389 = vmatprep.subr.bf16.mxu0 %v8354_v54  ;;  %1940 = vst.msk [vmem:[#allocation2 + $0x8] sm:$0xf] %vm1448_vm5, %v1777_v40 }
 0x3e2   :  { %6963 = vmatmul.mubr.msk.f32.vlgmr.msra.gmra.mrb[8].mxu0 %vm1371_vm11, %v8447_v18 }
 0x3e3   :  { %7391 = vmatpush3.bf16.msra.mxu0 %v8354_v54  ;;  %6976 = vmatprep.mubr.msk.f32.mxu0 %vm1202_vm3, %v1779_v20 }
 0x3e4   :  { %7396 = vmatprep.subr.bf16.mxu0 %v7694_v47 }
 0x3e6   :  { %6977 = vmatmul.mubr.msk.f32.vlgmr.msra.gmra.mrb[10].mxu0 %vm1202_vm3, %v1781_v25  ;;  %v8542_v25 = vpop.permute.xlu1 %2515 }
 0x3e7   :  { %7398 = vmatpush3.bf16.msra.mxu0 %v8316_v46  ;;  %6990 = vmatprep.mubr.msk.f32.mxu0 %vm7695_vm2, %v7693_v42 }
 0x3e8   :  { %7403 = vmatprep.subr.bf16.mxu0 %v7694_v47 }
 0x3ea   :  { %6991 = vmatmul.mubr.msk.f32.vlgmr.msra.gmra.mrb[12].mxu0 %vm1202_vm3, %v1947_v41  ;;  %v8544_v26 = vpop.permute.xlu1 %2758 }
 0x3eb   :  { %7004 = vmatprep.mubr.msk.f32.mxu0 %vm7695_vm2, %v7693_v42 }
 0x3ee   :  { %v8546_v27 = vpop.permute.xlu1 %2681 }
 0x3f2   :  { %v8548_v28 = vpop.permute.xlu1 %3005 }
 0x3f6   :  { %v8550_v29 = vpop.permute.xlu1 %3489 }
 0x3fa   :  { %v8552_v30 = vpop.permute.xlu1 %3412 }
 0x3fe   :  { %v8554_v31 = vpop.permute.xlu1 %3736 }
 0x402   :  { %v8556_v32 = vpop.permute.xlu1 %3979 }
 0x445   :  { %v1452_v3 = vpop.permute.xlu0 %1451 }
 0x446   :  { %1455 = vst.msk [vmem:[#allocation2] sm:$0xf] %vm1454_vm15, %v1452_v3 }
 0x4b5   :  { %v1691_v4 = vpop.f32.mrb[8].mxu0 }
 0x4b6   :  { %1697 = vrot.lane.b32.xlu1 %v1691_v4, %s7704_s20  ;;  %v6964_v5 = vpop.f32.mrb[9].mxu0 }
 0x4b9   :  { %v6978_v6 = vpop.f32.mrb[10].mxu0 }
 0x4ba   :  { %v1858_v7 = vadd.f32 %v6978_v6, %v8432_v2  ;;  %v1852_v8 = vpop.f32.mrb[11].mxu0 }
 0x4bb   :  { %v1853_v9 = vadd.f32 %v8432_v2, %v1852_v8 }
 0x4bc   :  { %vm1862_vm0 = vcmp.gt.f32.partialorder %v1858_v7, 0.0  ;;  %v1864_v10 = vmul.f32 0.2, %v1858_v7 }
 0x4bd   :  { %vm1861_vm1 = vcmp.gt.f32.partialorder %v1853_v9, 0.0  ;;  %v1863_v11 = vmul.f32 0.2, %v1853_v9  ;;  %v2016_v12 = vpop.f32.mrb[12].mxu0 }
 0x4be   :  { %v1866_v15 = vsel %vm1862_vm0, %v1858_v7, %v1864_v10  ;;  %v2017_v16 = vadd.f32 %v8362_v55, %v2016_v12  ;;  %v6992_v17 = vpop.f32.mrb[13].mxu0 }
 0x4bf   :  { %v1865_v19 = vsel %vm1861_vm1, %v1853_v9, %v1863_v11 }
 0x4c0   :  { %v7393_v20 = vpack.c.bf16 %v1866_v15, %v1865_v19  ;;  %vm2020_vm4 = vcmp.gt.f32.partialorder %v2017_v16, 0.0  ;;  %v2021_v21 = vmul.f32 0.2, %v2017_v16 }
 0x4c2   :  { %7395 = vmatpush3.bf16.msk.msra.mxu1 %vm8438_vm9, %v7393_v20  ;;  %v2022_v22 = vsel %vm2020_vm4, %v2017_v16, %v2021_v21 }
 0x4c3   :  { %7400 = vmatprep.subr.bf16.mxu1 %v8354_v54  ;;  %2185 = vst.msk [vmem:[#allocation2 + $0xc] sm:$0xf] %vm1448_vm5, %v2022_v22 }
 0x4c5   :  { %6984 = vmatmul.mubr.msk.f32.vlgmr.msra.gmra.mrb[10].mxu1 %vm1371_vm11, %v8447_v18 }
 0x4c6   :  { %7402 = vmatpush3.bf16.msra.mxu1 %v8354_v54  ;;  %6997 = vmatprep.mubr.msk.f32.mxu1 %vm1202_vm3, %v8467_v33  ;;  %v8558_v33 = vpop.permute.xlu1 %3902 }
 0x4c7   :  { %7407 = vmatprep.subr.bf16.mxu1 %v7694_v47 }
 0x4c9   :  { %6998 = vmatmul.mubr.msk.f32.vlgmr.msra.gmra.mrb[12].mxu1 %vm1202_vm3, %v2026_v14 }
 0x4ca   :  { %7409 = vmatpush3.bf16.msra.mxu1 %v8316_v46  ;;  %7011 = vmatprep.mubr.msk.f32.mxu1 %vm7695_vm2, %v7693_v42  ;;  %v8560_v34 = vpop.permute.xlu1 %4226 }
 0x4cb   :  { %7414 = vmatprep.subr.bf16.mxu1 %v7694_v47 }
 0x4cd   :  { %7012 = vmatmul.mubr.msk.f32.vlgmr.msra.gmra.mrb[14].mxu1 %vm1202_vm3, %v2192_v24 }
 0x4ce   :  { %7025 = vmatprep.mubr.msk.f32.mxu1 %vm7695_vm2, %v7693_v42  ;;  %v8562_v35 = vpop.permute.xlu1 %4469 }
 0x4d2   :  { %v8564_v36 = vpop.permute.xlu1 %4392 }
 0x4d6   :  { %v8566_v37 = vpop.permute.xlu1 %4716 }
 0x4da   :  { %v8568_v38 = vpop.permute.xlu1 %4959 }
 0x4de   :  { %v8570_v39 = vpop.permute.xlu1 %4882 }
 0x528   :  { %v1698_v40 = vpop.permute.xlu1 %1697 }
 0x529   :  { %1700 = vst.msk [vmem:[#allocation2 + $0x4] sm:$0xf] %vm1454_vm15, %v1698_v40 }
 0x598   :  { %v1936_v41 = vpop.f32.mrb[10].mxu1 }
 0x599   :  { %v6985_v3 = vpop.f32.mrb[11].mxu1  ;;  %1942 = vrot.lane.b32.xlu0 %v1936_v41, %s7704_s20 }
 0x59c   :  { %v6999_v4 = vpop.f32.mrb[12].mxu1 }
 0x59d   :  { %v2103_v5 = vadd.f32 %v6999_v4, %v8432_v2  ;;  %v2097_v6 = vpop.f32.mrb[13].mxu1 }
 0x59e   :  { %v2098_v7 = vadd.f32 %v8432_v2, %v2097_v6 }
 0x59f   :  { %vm2107_vm6 = vcmp.gt.f32.partialorder %v2103_v5, 0.0  ;;  %v2109_v8 = vmul.f32 0.2, %v2103_v5 }
 0x5a0   :  { %vm2106_vm7 = vcmp.gt.f32.partialorder %v2098_v7, 0.0  ;;  %v2108_v9 = vmul.f32 0.2, %v2098_v7  ;;  %v2261_v10 = vpop.f32.mrb[14].mxu1 }
 0x5a1   :  { %v2111_v11 = vsel %vm2107_vm6, %v2103_v5, %v2109_v8  ;;  %v2262_v12 = vadd.f32 %v8362_v55, %v2261_v10  ;;  %v7013_v14 = vpop.f32.mrb[15].mxu1 }
 0x5a2   :  { %v2110_v15 = vsel %vm2106_vm7, %v2098_v7, %v2108_v9 }
 0x5a3   :  { %v7404_v16 = vpack.c.bf16 %v2111_v11, %v2110_v15  ;;  %vm2265_vm8 = vcmp.gt.f32.partialorder %v2262_v12, 0.0  ;;  %v2266_v17 = vmul.f32 0.2, %v2262_v12 }
 0x5a5   :  { %7406 = vmatpush3.bf16.msk.msra.mxu0 %vm8438_vm9, %v7404_v16  ;;  %v2267_v19 = vsel %vm2265_vm8, %v2262_v12, %v2266_v17 }
 0x5a6   :  { %7411 = vmatprep.subr.bf16.mxu0 %v8354_v54  ;;  %2430 = vst.msk [vmem:[#allocation2 + $0x10] sm:$0xf] %vm1448_vm5, %v2267_v19 }
 0x5a8   :  { %7005 = vmatmul.mubr.msk.f32.vlgmr.msra.gmra.mrb[14].mxu0 %vm1371_vm11, %v8447_v18 }
 0x5a9   :  { %7413 = vmatpush3.bf16.msra.mxu0 %v8354_v54  ;;  %7018 = vmatprep.mubr.msk.f32.mxu0 %vm1202_vm3, %v2269_v23 }
 0x5aa   :  { %7418 = vmatprep.subr.bf16.mxu0 %v7694_v47 }
 0x5ac   :  { %7019 = vmatmul.mubr.msk.f32.vlgmr.msra.gmra.mrb[16].mxu0 %vm1202_vm3, %v8480_v43 }
 0x5ad   :  { %7420 = vmatpush3.bf16.msra.mxu0 %v8316_v46  ;;  %7032 = vmatprep.mubr.msk.f32.mxu0 %vm7695_vm2, %v7693_v42 }
 0x5ae   :  { %7425 = vmatprep.subr.bf16.mxu0 %v7694_v47 }
 0x5b0   :  { %7033 = vmatmul.mubr.msk.f32.vlgmr.msra.gmra.mrb[18].mxu0 %vm1202_vm3, %v8491_v45 }
 0x5b1   :  { %7046 = vmatprep.mubr.msk.f32.mxu0 %vm7695_vm2, %v7693_v42 }
 0x60b   :  { %v1943_v20 = vpop.permute.xlu0 %1942 }
 0x60c   :  { %1945 = vst.msk [vmem:[#allocation2 + $0x8] sm:$0xf] %vm1454_vm15, %v1943_v20 }
 0x67b   :  { %v2181_v21 = vpop.f32.mrb[14].mxu0 }
 0x67c   :  { %2187 = vrot.lane.b32.xlu1 %v2181_v21, %s7704_s20  ;;  %v7006_v43 = vpop.f32.mrb[15].mxu0 }
 0x67f   :  { %v7020_v22 = vpop.f32.mrb[16].mxu0 }
 0x680   :  { %v2348_v23 = vadd.f32 %v7020_v22, %v8432_v2  ;;  %v2342_v24 = vpop.f32.mrb[17].mxu0 }
 0x681   :  { %v2343_v40 = vadd.f32 %v8432_v2, %v2342_v24 }
 0x682   :  { %vm2352_vm10 = vcmp.gt.f32.partialorder %v2348_v23, 0.0  ;;  %v2354_v41 = vmul.f32 0.2, %v2348_v23 }
 0x683   :  { %vm2351_vm12 = vcmp.gt.f32.partialorder %v2343_v40, 0.0  ;;  %v2353_v45 = vmul.f32 0.2, %v2343_v40  ;;  %v2506_v3 = vpop.f32.mrb[18].mxu0 }
 0x684   :  { %v2356_v4 = vsel %vm2352_vm10, %v2348_v23, %v2354_v41  ;;  %v2507_v5 = vadd.f32 %v8362_v55, %v2506_v3  ;;  %v7034_v6 = vpop.f32.mrb[19].mxu0 }
 0x685   :  { %v2355_v7 = vsel %vm2351_vm12, %v2343_v40, %v2353_v45 }
 0x686   :  { %v7415_v8 = vpack.c.bf16 %v2356_v4, %v2355_v7  ;;  %vm2510_vm13 = vcmp.gt.f32.partialorder %v2507_v5, 0.0  ;;  %v2511_v9 = vmul.f32 0.2, %v2507_v5 }
 0x688   :  { %7417 = vmatpush3.bf16.msk.msra.mxu1 %vm8438_vm9, %v7415_v8  ;;  %v2512_v10 = vsel %vm2510_vm13, %v2507_v5, %v2511_v9 }
 0x689   :  { %7422 = vmatprep.subr.bf16.mxu1 %v8354_v54  ;;  %2675 = vst.msk [vmem:[#allocation2 + $0x14] sm:$0xf] %vm1448_vm5, %v2512_v10 }
 0x68b   :  { %7026 = vmatmul.mubr.msk.f32.vlgmr.msra.gmra.mrb[16].mxu1 %vm1371_vm11, %v8447_v18 }
 0x68c   :  { %7424 = vmatpush3.bf16.msra.mxu1 %v8354_v54  ;;  %7039 = vmatprep.mubr.msk.f32.mxu1 %vm1202_vm3, %v8489_v44 }
 0x68d   :  { %7429 = vmatprep.subr.bf16.mxu1 %v7694_v47 }
 0x68f   :  { %7040 = vmatmul.mubr.msk.f32.vlgmr.msra.gmra.mrb[18].mxu1 %vm1202_vm3, %v8542_v25 }
 0x690   :  { %7431 = vmatpush3.bf16.msra.mxu1 %v8316_v46  ;;  %7053 = vmatprep.mubr.msk.f32.mxu1 %vm7695_vm2, %v7693_v42 }
 0x691   :  { %7436 = vmatprep.subr.bf16.mxu1 %v7694_v47 }
 0x693   :  { %7054 = vmatmul.mubr.msk.f32.vlgmr.msra.gmra.mrb[20].mxu1 %vm1202_vm3, %v8546_v27 }
 0x694   :  { %7067 = vmatprep.mubr.msk.f32.mxu1 %vm7695_vm2, %v7693_v42 }
 0x6ee   :  { %v2188_v11 = vpop.permute.xlu1 %2187 }
 0x6ef   :  { %2190 = vst.msk [vmem:[#allocation2 + $0xc] sm:$0xf] %vm1454_vm15, %v2188_v11 }
 0x75e   :  { %v2426_v44 = vpop.f32.mrb[16].mxu1 }
 0x75f   :  { %v7027_v12 = vpop.f32.mrb[17].mxu1  ;;  %2432 = vrot.lane.b32.xlu0 %v2426_v44, %s7704_s20 }
 0x762   :  { %v7041_v25 = vpop.f32.mrb[18].mxu1 }
 0x763   :  { %v2593_v14 = vadd.f32 %v7041_v25, %v8432_v2  ;;  %v2587_v15 = vpop.f32.mrb[19].mxu1 }
 0x764   :  { %v2588_v16 = vadd.f32 %v8432_v2, %v2587_v15 }
 0x765   :  { %vm2597_vm14 = vcmp.gt.f32.partialorder %v2593_v14, 0.0  ;;  %v2599_v17 = vmul.f32 0.2, %v2593_v14 }
 0x766   :  { %vm2596_vm0 = vcmp.gt.f32.partialorder %v2588_v16, 0.0  ;;  %v2598_v27 = vmul.f32 0.2, %v2588_v16  ;;  %v2751_v19 = vpop.f32.mrb[20].mxu1 }
 0x767   :  { %v2601_v20 = vsel %vm2597_vm14, %v2593_v14, %v2599_v17  ;;  %v2752_v21 = vadd.f32 %v8362_v55, %v2751_v19  ;;  %v7055_v43 = vpop.f32.mrb[21].mxu1 }
 0x768   :  { %v2600_v22 = vsel %vm2596_vm0, %v2588_v16, %v2598_v27 }
 0x769   :  { %v7426_v23 = vpack.c.bf16 %v2601_v20, %v2600_v22  ;;  %vm2755_vm1 = vcmp.gt.f32.partialorder %v2752_v21, 0.0  ;;  %v2756_v24 = vmul.f32 0.2, %v2752_v21 }
 0x76b   :  { %7428 = vmatpush3.bf16.msk.msra.mxu0 %vm8438_vm9, %v7426_v23  ;;  %v2757_v40 = vsel %vm2755_vm1, %v2752_v21, %v2756_v24 }
 0x76c   :  { %7433 = vmatprep.subr.bf16.mxu0 %v8354_v54  ;;  %2920 = vst.msk [vmem:[#allocation2 + $0x18] sm:$0xf] %vm1448_vm5, %v2757_v40 }
 0x76e   :  { %7047 = vmatmul.mubr.msk.f32.vlgmr.msra.gmra.mrb[20].mxu0 %vm1371_vm11, %v8447_v18 }
 0x76f   :  { %7435 = vmatpush3.bf16.msra.mxu0 %v8354_v54  ;;  %7060 = vmatprep.mubr.msk.f32.mxu0 %vm1202_vm3, %v8544_v26 }
 0x770   :  { %7440 = vmatprep.subr.bf16.mxu0 %v7694_v47 }
 0x772   :  { %7061 = vmatmul.mubr.msk.f32.vlgmr.msra.gmra.mrb[22].mxu0 %vm1202_vm3, %v8493_v48 }
 0x773   :  { %7442 = vmatpush3.bf16.msra.mxu0 %v8316_v46  ;;  %7074 = vmatprep.mubr.msk.f32.mxu0 %vm7695_vm2, %v7693_v42 }
 0x774   :  { %7447 = vmatprep.subr.bf16.mxu0 %v7694_v47 }
 0x776   :  { %7075 = vmatmul.mubr.msk.f32.vlgmr.msra.gmra.mrb[24].mxu0 %vm1202_vm3, %v8497_v51 }
 0x777   :  { %7088 = vmatprep.mubr.msk.f32.mxu0 %vm7695_vm2, %v7693_v42 }
 0x7d1   :  { %v2433_v41 = vpop.permute.xlu0 %2432 }
 0x7d2   :  { %2435 = vst.msk [vmem:[#allocation2 + $0x10] sm:$0xf] %vm1454_vm15, %v2433_v41 }
 0x841   :  { %v2671_v26 = vpop.f32.mrb[20].mxu0 }
 0x842   :  { %2677 = vrot.lane.b32.xlu1 %v2671_v26, %s7704_s20  ;;  %v7048_v48 = vpop.f32.mrb[21].mxu0 }
 0x845   :  { %v7062_v45 = vpop.f32.mrb[22].mxu0 }
 0x846   :  { %v2838_v3 = vadd.f32 %v7062_v45, %v8432_v2  ;;  %v2832_v4 = vpop.f32.mrb[23].mxu0 }
 0x847   :  { %v2833_v5 = vadd.f32 %v8432_v2, %v2832_v4 }
 0x848   :  { %vm2842_vm4 = vcmp.gt.f32.partialorder %v2838_v3, 0.0  ;;  %v2844_v6 = vmul.f32 0.2, %v2838_v3 }
 0x849   :  { %vm2841_vm6 = vcmp.gt.f32.partialorder %v2833_v5, 0.0  ;;  %v2843_v51 = vmul.f32 0.2, %v2833_v5  ;;  %v2996_v7 = vpop.f32.mrb[24].mxu0 }
 0x84a   :  { %v2846_v8 = vsel %vm2842_vm4, %v2838_v3, %v2844_v6  ;;  %v2997_v9 = vadd.f32 %v8362_v55, %v2996_v7  ;;  %v7076_v10 = vpop.f32.mrb[25].mxu0 }
 0x84b   :  { %v2845_v11 = vsel %vm2841_vm6, %v2833_v5, %v2843_v51 }
 0x84c   :  { %v7437_v44 = vpack.c.bf16 %v2846_v8, %v2845_v11  ;;  %vm3000_vm7 = vcmp.gt.f32.partialorder %v2997_v9, 0.0  ;;  %v3001_v12 = vmul.f32 0.2, %v2997_v9 }
 0x84e   :  { %7439 = vmatpush3.bf16.msk.msra.mxu1 %vm8438_vm9, %v7437_v44  ;;  %v3002_v25 = vsel %vm3000_vm7, %v2997_v9, %v3001_v12 }
 0x84f   :  { %7444 = vmatprep.subr.bf16.mxu1 %v8354_v54  ;;  %3165 = vst.msk [vmem:[#allocation2 + $0x1c] sm:$0xf] %vm1448_vm5, %v3002_v25 }
 0x851   :  { %7068 = vmatmul.mubr.msk.f32.vlgmr.msra.gmra.mrb[22].mxu1 %vm1371_vm11, %v8447_v18 }
 0x852   :  { %7446 = vmatpush3.bf16.msra.mxu1 %v8354_v54  ;;  %7081 = vmatprep.mubr.msk.f32.mxu1 %vm1202_vm3, %v8495_v50 }
 0x853   :  { %7451 = vmatprep.subr.bf16.mxu1 %v7694_v47 }
 0x855   :  { %7082 = vmatmul.mubr.msk.f32.vlgmr.msra.gmra.mrb[24].mxu1 %vm1202_vm3, %v8548_v28 }
 0x856   :  { %7453 = vmatpush3.bf16.msra.mxu1 %v8316_v46  ;;  %7095 = vmatprep.mubr.msk.f32.mxu1 %vm7695_vm2, %v7693_v42 }
 0x857   :  { %7458 = vmatprep.subr.bf16.mxu1 %v7694_v47 }
 0x859   :  { %7096 = vmatmul.mubr.msk.f32.vlgmr.msra.gmra.mrb[26].mxu1 %vm1202_vm3, %v8328_v49 }
 0x85a   :  { %7109 = vmatprep.mubr.msk.f32.mxu1 %vm7695_vm2, %v7693_v42 }
 0x8b4   :  { %v2678_v14 = vpop.permute.xlu1 %2677 }
 0x8b5   :  { %2680 = vst.msk [vmem:[#allocation2 + $0x14] sm:$0xf] %vm1454_vm15, %v2678_v14 }
 0x924   :  { %v2916_v50 = vpop.f32.mrb[22].mxu1 }
 0x925   :  { %v7069_v15 = vpop.f32.mrb[23].mxu1  ;;  %2922 = vrot.lane.b32.xlu0 %v2916_v50, %s7704_s20 }
 0x928   :  { %v7083_v28 = vpop.f32.mrb[24].mxu1 }
 0x929   :  { %v3083_v16 = vadd.f32 %v7083_v28, %v8432_v2  ;;  %v3077_v17 = vpop.f32.mrb[25].mxu1 }
 0x92a   :  { %v3078_v27 = vadd.f32 %v8432_v2, %v3077_v17 }
 0x92b   :  { %vm3087_vm8 = vcmp.gt.f32.partialorder %v3083_v16, 0.0  ;;  %v3089_v19 = vmul.f32 0.2, %v3083_v16 }
 0x92c   :  { %vm3086_vm10 = vcmp.gt.f32.partialorder %v3078_v27, 0.0  ;;  %v3088_v49 = vmul.f32 0.2, %v3078_v27  ;;  %v3239_v20 = vpop.f32.mrb[26].mxu1 }
 0x92d   :  { %v3091_v21 = vsel %vm3087_vm8, %v3083_v16, %v3089_v19  ;;  %v3240_v43 = vadd.f32 %v8362_v55, %v3239_v20  ;;  %v7097_v22 = vpop.f32.mrb[27].mxu1 }
 0x92e   :  { %v3090_v23 = vsel %vm3086_vm10, %v3078_v27, %v3088_v49 }
 0x92f   :  { %v7448_v24 = vpack.c.bf16 %v3091_v21, %v3090_v23  ;;  %vm3243_vm12 = vcmp.gt.f32.partialorder %v3240_v43, 0.0  ;;  %v3244_v40 = vmul.f32 0.2, %v3240_v43 }
 0x931   :  { %7450 = vmatpush3.bf16.msk.msra.mxu0 %vm8438_vm9, %v7448_v24  ;;  %v3245_v41 = vsel %vm3243_vm12, %v3240_v43, %v3244_v40 }
 0x932   :  { %7455 = vmatprep.subr.bf16.mxu0 %v8354_v54  ;;  %3406 = vst.msk [vmem:[#allocation2 + $0x20] sm:$0xf] %vm1448_vm5, %v3245_v41 }
 0x934   :  { %7089 = vmatmul.mubr.msk.f32.vlgmr.msra.gmra.mrb[26].mxu0 %vm1371_vm11, %v8447_v18 }
 0x935   :  { %7457 = vmatpush3.bf16.msra.mxu0 %v8354_v54  ;;  %7102 = vmatprep.mubr.msk.f32.mxu0 %vm1202_vm3, %v8367_v61 }
 0x936   :  { %7462 = vmatprep.subr.bf16.mxu0 %v7694_v47 }
 0x938   :  { %7103 = vmatmul.mubr.msk.f32.vlgmr.msra.gmra.mrb[28].mxu0 %vm1202_vm3, %v8374_v0 }
 0x939   :  { %7464 = vmatpush3.bf16.msra.mxu0 %v8316_v46  ;;  %7116 = vmatprep.mubr.msk.f32.mxu0 %vm7695_vm2, %v7693_v42 }
 0x93a   :  { %7469 = vmatprep.subr.bf16.mxu0 %v7694_v47 }
 0x93c   :  { %7117 = vmatmul.mubr.msk.f32.vlgmr.msra.gmra.mrb[30].mxu0 %vm1202_vm3, %v8552_v30 }
 0x93d   :  { %7130 = vmatprep.mubr.msk.f32.mxu0 %vm7695_vm2, %v7693_v42 }
 0x997   :  { %v2923_v26 = vpop.permute.xlu0 %2922 }
 0x998   :  { %2925 = vst.msk [vmem:[#allocation2 + $0x18] sm:$0xf] %vm1454_vm15, %v2923_v26 }
 0xa07   :  { %v3161_v61 = vpop.f32.mrb[26].mxu0 }
 0xa08   :  { %3167 = vrot.lane.b32.xlu1 %v3161_v61, %s7704_s20  ;;  %v7090_v0 = vpop.f32.mrb[27].mxu0 }
 0xa0b   :  { %v7104_v48 = vpop.f32.mrb[28].mxu0 }
 0xa0c   :  { %v3324_v45 = vadd.f32 %v7104_v48, %v8432_v2  ;;  %v3318_v3 = vpop.f32.mrb[29].mxu0 }
 0xa0d   :  { %v3319_v4 = vadd.f32 %v8432_v2, %v3318_v3 }
 0xa0e   :  { %vm3328_vm13 = vcmp.gt.f32.partialorder %v3324_v45, 0.0  ;;  %v3330_v5 = vmul.f32 0.2, %v3324_v45 }
 0xa0f   :  { %vm3327_vm14 = vcmp.gt.f32.partialorder %v3319_v4, 0.0  ;;  %v3329_v30 = vmul.f32 0.2, %v3319_v4  ;;  %v3482_v6 = vpop.f32.mrb[30].mxu0 }
 0xa10   :  { %v3332_v51 = vsel %vm3328_vm13, %v3324_v45, %v3330_v5  ;;  %v3483_v7 = vadd.f32 %v8362_v55, %v3482_v6  ;;  %v7118_v8 = vpop.f32.mrb[31].mxu0 }
 0xa11   :  { %v3331_v9 = vsel %vm3327_vm14, %v3319_v4, %v3329_v30 }
 0xa12   :  { %v7459_v10 = vpack.c.bf16 %v3332_v51, %v3331_v9  ;;  %vm3486_vm0 = vcmp.gt.f32.partialorder %v3483_v7, 0.0  ;;  %v3487_v11 = vmul.f32 0.2, %v3483_v7 }
 0xa14   :  { %7461 = vmatpush3.bf16.msk.msra.mxu1 %vm8438_vm9, %v7459_v10  ;;  %v3488_v44 = vsel %vm3486_vm0, %v3483_v7, %v3487_v11 }
 0xa15   :  { %7466 = vmatprep.subr.bf16.mxu1 %v8354_v54  ;;  %3651 = vst.msk [vmem:[#allocation2 + $0x24] sm:$0xf] %vm1448_vm5, %v3488_v44 }
 0xa17   :  { %7110 = vmatmul.mubr.msk.f32.vlgmr.msra.gmra.mrb[28].mxu1 %vm1371_vm11, %v8447_v18 }
 0xa18   :  { %7468 = vmatpush3.bf16.msra.mxu1 %v8354_v54  ;;  %7123 = vmatprep.mubr.msk.f32.mxu1 %vm1202_vm3, %v8550_v29 }
 0xa19   :  { %7473 = vmatprep.subr.bf16.mxu1 %v7694_v47 }
 0xa1b   :  { %7124 = vmatmul.mubr.msk.f32.vlgmr.msra.gmra.mrb[30].mxu1 %vm1202_vm3, %v8499_v52 }
 0xa1c   :  { %7475 = vmatpush3.bf16.msra.mxu1 %v8316_v46  ;;  %7137 = vmatprep.mubr.msk.f32.mxu1 %vm7695_vm2, %v7693_v42 }
 0xa1d   :  { %7480 = vmatprep.subr.bf16.mxu1 %v7694_v47 }
 0xa1f   :  { %7138 = vmatmul.mubr.msk.f32.vlgmr.msra.gmra.mrb[32].mxu1 %vm1202_vm3, %v8503_v56 }
 0xa20   :  { %7151 = vmatprep.mubr.msk.f32.mxu1 %vm7695_vm2, %v7693_v42 }
 0xa7a   :  { %v3168_v12 = vpop.permute.xlu1 %3167 }
 0xa7b   :  { %3170 = vst.msk [vmem:[#allocation2 + $0x1c] sm:$0xf] %vm1454_vm15, %v3168_v12 }
 0xaea   :  { %v3402_v29 = vpop.f32.mrb[28].mxu1 }
 0xaeb   :  { %v7111_v25 = vpop.f32.mrb[29].mxu1  ;;  %3408 = vrot.lane.b32.xlu0 %v3402_v29, %s7704_s20 }
 0xaee   :  { %v7125_v52 = vpop.f32.mrb[30].mxu1 }
 0xaef   :  { %v3569_v14 = vadd.f32 %v7125_v52, %v8432_v2  ;;  %v3563_v50 = vpop.f32.mrb[31].mxu1 }
 0xaf0   :  { %v3564_v15 = vadd.f32 %v8432_v2, %v3563_v50 }
 0xaf1   :  { %vm3573_vm1 = vcmp.gt.f32.partialorder %v3569_v14, 0.0  ;;  %v3575_v28 = vmul.f32 0.2, %v3569_v14 }
 0xaf2   :  { %vm3572_vm4 = vcmp.gt.f32.partialorder %v3564_v15, 0.0  ;;  %v3574_v56 = vmul.f32 0.2, %v3564_v15  ;;  %v3727_v16 = vpop.f32.mrb[32].mxu1 }
 0xaf3   :  { %v3577_v17 = vsel %vm3573_vm1, %v3569_v14, %v3575_v28  ;;  %v3728_v27 = vadd.f32 %v8362_v55, %v3727_v16  ;;  %v7139_v19 = vpop.f32.mrb[33].mxu1 }
 0xaf4   :  { %v3576_v49 = vsel %vm3572_vm4, %v3564_v15, %v3574_v56 }
 0xaf5   :  { %v7470_v20 = vpack.c.bf16 %v3577_v17, %v3576_v49  ;;  %vm3731_vm6 = vcmp.gt.f32.partialorder %v3728_v27, 0.0  ;;  %v3732_v21 = vmul.f32 0.2, %v3728_v27  ;;  %v8803_v49 = vld [vmem:[%s9104_s5] ss:$0 sm:$0xff] }
 0xaf7   :  { %7472 = vmatpush3.bf16.msk.msra.mxu0 %vm8438_vm9, %v7470_v20  ;;  %v3733_v43 = vsel %vm3731_vm6, %v3728_v27, %v3732_v21 }
 0xaf8   :  { %7477 = vmatprep.subr.bf16.mxu0 %v8354_v54  ;;  %3896 = vst.msk [vmem:[#allocation2 + $0x28] sm:$0xf] %vm1448_vm5, %v3733_v43 }
 0xafa   :  { %7131 = vmatmul.mubr.msk.f32.vlgmr.msra.gmra.mrb[32].mxu0 %vm1371_vm11, %v8447_v18 }
 0xafb   :  { %7479 = vmatpush3.bf16.msra.mxu0 %v8354_v54  ;;  %7144 = vmatprep.mubr.msk.f32.mxu0 %vm1202_vm3, %v8501_v53 }
 0xafc   :  { %7484 = vmatprep.subr.bf16.mxu0 %v7694_v47 }
 0xafe   :  { %7145 = vmatmul.mubr.msk.f32.vlgmr.msra.gmra.mrb[34].mxu0 %vm1202_vm3, %v8554_v31 }
 0xaff   :  { %7486 = vmatpush3.bf16.msra.mxu0 %v8316_v46  ;;  %7158 = vmatprep.mubr.msk.f32.mxu0 %vm7695_vm2, %v7693_v42 }
 0xb00   :  { %7491 = vmatprep.subr.bf16.mxu0 %v7694_v47 }
 0xb02   :  { %7159 = vmatmul.mubr.msk.f32.vlgmr.msra.gmra.mrb[36].mxu0 %vm1202_vm3, %v8558_v33 }
 0xb03   :  { %7172 = vmatprep.mubr.msk.f32.mxu0 %vm7695_vm2, %v7693_v42 }
 0xb5d   :  { %v3409_v22 = vpop.permute.xlu0 %3408 }
 0xb5e   :  { %3411 = vst.msk [vmem:[#allocation2 + $0x20] sm:$0xf] %vm1454_vm15, %v3409_v22 }
 0xbcd   :  { %v3647_v53 = vpop.f32.mrb[32].mxu0 }
 0xbce   :  { %3653 = vrot.lane.b32.xlu1 %v3647_v53, %s7704_s20  ;;  %v7132_v31 = vpop.f32.mrb[33].mxu0 }
 0xbd1   :  { %v7146_v23 = vpop.f32.mrb[34].mxu0 }
 0xbd2   :  { %v3814_v24 = vadd.f32 %v7146_v23, %v8432_v2  ;;  %v3808_v40 = vpop.f32.mrb[35].mxu0 }
 0xbd3   :  { %v3809_v41 = vadd.f32 %v8432_v2, %v3808_v40 }
 0xbd4   :  { %vm3818_vm7 = vcmp.gt.f32.partialorder %v3814_v24, 0.0  ;;  %v3820_v26 = vmul.f32 0.2, %v3814_v24 }
 0xbd5   :  { %vm3817_vm8 = vcmp.gt.f32.partialorder %v3809_v41, 0.0  ;;  %v3819_v33 = vmul.f32 0.2, %v3809_v41  ;;  %v3972_v61 = vpop.f32.mrb[36].mxu0 }
 0xbd6   :  { %v3822_v0 = vsel %vm3818_vm7, %v3814_v24, %v3820_v26  ;;  %v3973_v48 = vadd.f32 %v8362_v55, %v3972_v61  ;;  %v7160_v45 = vpop.f32.mrb[37].mxu0 }
 0xbd7   :  { %v3821_v3 = vsel %vm3817_vm8, %v3809_v41, %v3819_v33 }
 0xbd8   :  { %v7481_v4 = vpack.c.bf16 %v3822_v0, %v3821_v3  ;;  %vm3976_vm10 = vcmp.gt.f32.partialorder %v3973_v48, 0.0  ;;  %v3977_v5 = vmul.f32 0.2, %v3973_v48 }
 0xbda   :  { %7483 = vmatpush3.bf16.msk.msra.mxu1 %vm8438_vm9, %v7481_v4  ;;  %v3978_v30 = vsel %vm3976_vm10, %v3973_v48, %v3977_v5 }
 0xbdb   :  { %7488 = vmatprep.subr.bf16.mxu1 %v8354_v54  ;;  %4141 = vst.msk [vmem:[#allocation2 + $0x2c] sm:$0xf] %vm1448_vm5, %v3978_v30 }
 0xbdd   :  { %7152 = vmatmul.mubr.msk.f32.vlgmr.msra.gmra.mrb[34].mxu1 %vm1371_vm11, %v8447_v18 }
 0xbde   :  { %7490 = vmatpush3.bf16.msra.mxu1 %v8354_v54  ;;  %7165 = vmatprep.mubr.msk.f32.mxu1 %vm1202_vm3, %v8556_v32 }
 0xbdf   :  { %7495 = vmatprep.subr.bf16.mxu1 %v7694_v47 }
 0xbe1   :  { %7166 = vmatmul.mubr.msk.f32.vlgmr.msra.gmra.mrb[36].mxu1 %vm1202_vm3, %v8505_v57 }
 0xbe2   :  { %7497 = vmatpush3.bf16.msra.mxu1 %v8316_v46  ;;  %7179 = vmatprep.mubr.msk.f32.mxu1 %vm7695_vm2, %v7693_v42 }
 0xbe3   :  { %7502 = vmatprep.subr.bf16.mxu1 %v7694_v47 }
 0xbe5   :  { %7180 = vmatmul.mubr.msk.f32.vlgmr.msra.gmra.mrb[38].mxu1 %vm1202_vm3, %v8509_v59 }
 0xbe6   :  { %7193 = vmatprep.mubr.msk.f32.mxu1 %vm7695_vm2, %v7693_v42 }
 0xc40   :  { %v3654_v6 = vpop.permute.xlu1 %3653 }
 0xc41   :  { %3656 = vst.msk [vmem:[#allocation2 + $0x24] sm:$0xf] %vm1454_vm15, %v3654_v6 }
 0xcb0   :  { %v3892_v32 = vpop.f32.mrb[34].mxu1 }
 0xcb1   :  { %v7153_v51 = vpop.f32.mrb[35].mxu1  ;;  %3898 = vrot.lane.b32.xlu0 %v3892_v32, %s7704_s20 }
 0xcb4   :  { %v7167_v57 = vpop.f32.mrb[36].mxu1 }
 0xcb5   :  { %v4059_v7 = vadd.f32 %v7167_v57, %v8432_v2  ;;  %v4053_v8 = vpop.f32.mrb[37].mxu1 }
 0xcb6   :  { %v4054_v9 = vadd.f32 %v8432_v2, %v4053_v8 }
 0xcb7   :  { %vm4063_vm12 = vcmp.gt.f32.partialorder %v4059_v7, 0.0  ;;  %v4065_v10 = vmul.f32 0.2, %v4059_v7 }
 0xcb8   :  { %vm4062_vm13 = vcmp.gt.f32.partialorder %v4054_v9, 0.0  ;;  %v4064_v59 = vmul.f32 0.2, %v4054_v9  ;;  %v4217_v11 = vpop.f32.mrb[38].mxu1 }
 0xcb9   :  { %v4067_v44 = vsel %vm4063_vm12, %v4059_v7, %v4065_v10  ;;  %v4218_v12 = vadd.f32 %v8362_v55, %v4217_v11  ;;  %v7181_v29 = vpop.f32.mrb[39].mxu1 }
 0xcba   :  { %v4066_v25 = vsel %vm4062_vm13, %v4054_v9, %v4064_v59  ;;  %v5136_v29 = vld [vmem:[%s9107_s8 + $0x8] sm:$0xff] }
 0xcbb   :  { %v7492_v52 = vpack.c.bf16 %v4067_v44, %v4066_v25  ;;  %vm4221_vm14 = vcmp.gt.f32.partialorder %v4218_v12, 0.0  ;;  %v4222_v14 = vmul.f32 0.2, %v4218_v12 }
 0xcbd   :  { %7494 = vmatpush3.bf16.msk.msra.mxu0 %vm8438_vm9, %v7492_v52  ;;  %v4223_v50 = vsel %vm4221_vm14, %v4218_v12, %v4222_v14  ;;  %v5135_v12 = vld [vmem:[%s9107_s8] sm:$0xff] }
 0xcbe   :  { %7499 = vmatprep.subr.bf16.mxu0 %v8354_v54  ;;  %4386 = vst.msk [vmem:[#allocation2 + $0x30] sm:$0xf] %vm1448_vm5, %v4223_v50  ;;  %v7539_v52 = vpack.c.bf16 %v5136_v29, %v5135_v12  ;;  %v7664_v14 = vld [vmem:[%s9102_s3] sm:$0xf] }
 0xcbf   :  { %v5127_v50 = vld [vmem:[#allocation2] sm:$0xff] }
 0xcc0   :  { %7173 = vmatmul.mubr.msk.f32.vlgmr.msra.gmra.mrb[38].mxu0 %vm1371_vm11, %v8447_v18 }
 0xcc1   :  { %7501 = vmatpush3.bf16.msra.mxu0 %v8354_v54  ;;  %7186 = vmatprep.mubr.msk.f32.mxu0 %vm1202_vm3, %v8507_v58 }
 0xcc2   :  { %7506 = vmatprep.subr.bf16.mxu0 %v7694_v47 }
 0xcc4   :  { %7187 = vmatmul.mubr.msk.f32.vlgmr.msra.gmra.mrb[40].mxu0 %vm1202_vm3, %v8560_v34 }
 0xcc5   :  { %7508 = vmatpush3.bf16.msra.mxu0 %v8316_v46  ;;  %7200 = vmatprep.mubr.msk.f32.mxu0 %vm7695_vm2, %v7693_v42 }
 0xcc6   :  { %7513 = vmatprep.subr.bf16.mxu0 %v7694_v47 }
 0xcc8   :  { %7201 = vmatmul.mubr.msk.f32.vlgmr.msra.gmra.mrb[42].mxu0 %vm1202_vm3, %v8564_v36 }
 0xcc9   :  { %7214 = vmatprep.mubr.msk.f32.mxu0 %vm7695_vm2, %v7693_v42 }
 0xd23   :  { %v3899_v55 = vpop.permute.xlu0 %3898 }
 0xd24   :  { %3901 = vst.msk [vmem:[#allocation2 + $0x28] sm:$0xf] %vm1454_vm15, %v3899_v55  ;;  %v5128_v55 = vld [vmem:[#allocation2 + $0x8] sm:$0xff] }
 0xd93   :  { %v4137_v58 = vpop.f32.mrb[38].mxu0 }
 0xd94   :  { %4143 = vrot.lane.b32.xlu1 %v4137_v58, %s7704_s20  ;;  %v7174_v34 = vpop.f32.mrb[39].mxu0  ;;  %v5129_v58 = vld [vmem:[#allocation2 + $0x10] sm:$0xff] }
 0xd97   :  { %v7188_v15 = vpop.f32.mrb[40].mxu0 }
 0xd98   :  { %v4304_v28 = vadd.f32 %v7188_v15, %v8432_v2  ;;  %v4298_v56 = vpop.f32.mrb[41].mxu0 }
 0xd99   :  { %v4299_v16 = vadd.f32 %v8432_v2, %v4298_v56 }
 0xd9a   :  { %vm4308_vm0 = vcmp.gt.f32.partialorder %v4304_v28, 0.0  ;;  %v4310_v17 = vmul.f32 0.2, %v4304_v28 }
 0xd9b   :  { %vm4307_vm1 = vcmp.gt.f32.partialorder %v4299_v16, 0.0  ;;  %v4309_v36 = vmul.f32 0.2, %v4299_v16  ;;  %v4462_v27 = vpop.f32.mrb[42].mxu0 }
 0xd9c   :  { %v4312_v19 = vsel %vm4308_vm0, %v4304_v28, %v4310_v17  ;;  %v4463_v20 = vadd.f32 %v8803_v49, %v4462_v27  ;;  %v7202_v21 = vpop.f32.mrb[43].mxu0 }
 0xd9d   :  { %v4311_v43 = vsel %vm4307_vm1, %v4299_v16, %v4309_v36 }
 0xd9e   :  { %v7503_v22 = vpack.c.bf16 %v4312_v19, %v4311_v43  ;;  %vm4466_vm4 = vcmp.gt.f32.partialorder %v4463_v20, 0.0  ;;  %v4467_v53 = vmul.f32 0.2, %v4463_v20 }
 0xda0   :  { %7505 = vmatpush3.bf16.msk.msra.mxu1 %vm8438_vm9, %v7503_v22  ;;  %v4468_v31 = vsel %vm4466_vm4, %v4463_v20, %v4467_v53 }
 0xda1   :  { %7510 = vmatprep.subr.bf16.mxu1 %v8354_v54  ;;  %4631 = vst.msk [vmem:[#allocation2 + $0x34] sm:$0xf] %vm1448_vm5, %v4468_v31 }
 0xda3   :  { %7194 = vmatmul.mubr.msk.f32.vlgmr.msra.gmra.mrb[40].mxu1 %vm1371_vm11, %v8447_v18 }
 0xda4   :  { %7512 = vmatpush3.bf16.msra.mxu1 %v8354_v54  ;;  %7207 = vmatprep.mubr.msk.f32.mxu1 %vm1202_vm3, %v8562_v35 }
 0xda5   :  { %7517 = vmatprep.subr.bf16.mxu1 %v7694_v47 }
 0xda7   :  { %7208 = vmatmul.mubr.msk.f32.vlgmr.msra.gmra.mrb[42].mxu1 %vm1202_vm3, %v8511_v60 }
 0xda8   :  { %7519 = vmatpush3.bf16.msra.mxu1 %v8316_v46  ;;  %7221 = vmatprep.mubr.msk.f32.mxu1 %vm7695_vm2, %v7693_v42 }
 0xda9   :  { %7524 = vmatprep.subr.bf16.mxu1 %v7694_v47 }
 0xdab   :  { %7222 = vmatmul.mubr.msk.f32.vlgmr.msra.gmra.mrb[44].mxu1 %vm1202_vm3, %v8515_v63 }
 0xdac   :  { %7235 = vmatprep.mubr.msk.f32.mxu1 %vm7695_vm2, %v7693_v42 }
 0xe06   :  { %v4144_v23 = vpop.permute.xlu1 %4143 }
 0xe07   :  { %4146 = vst.msk [vmem:[#allocation2 + $0x2c] sm:$0xf] %vm1454_vm15, %v4144_v23 }
 0xe0e   :  { %v5132_v34 = vld [vmem:[#allocation2 + $0x28] sm:$0xff] }
 0xe76   :  { %v4382_v35 = vpop.f32.mrb[40].mxu1 }
 0xe77   :  { %v7195_v24 = vpop.f32.mrb[41].mxu1  ;;  %4388 = vrot.lane.b32.xlu0 %v4382_v35, %s7704_s20 }
 0xe7a   :  { %v7209_v60 = vpop.f32.mrb[42].mxu1 }
 0xe7b   :  { %v4549_v40 = vadd.f32 %v7209_v60, %v8432_v2  ;;  %v4543_v41 = vpop.f32.mrb[43].mxu1 }
 0xe7c   :  { %v4544_v26 = vadd.f32 %v8432_v2, %v4543_v41 }
 0xe7d   :  { %vm4553_vm6 = vcmp.gt.f32.partialorder %v4549_v40, 0.0  ;;  %v4555_v33 = vmul.f32 0.2, %v4549_v40 }
 0xe7e   :  { %vm4552_vm7 = vcmp.gt.f32.partialorder %v4544_v26, 0.0  ;;  %v4554_v63 = vmul.f32 0.2, %v4544_v26  ;;  %v4707_v61 = vpop.f32.mrb[44].mxu1 }
 0xe7f   :  { %v4557_v0 = vsel %vm4553_vm6, %v4549_v40, %v4555_v33  ;;  %v4708_v48 = vadd.f32 %v8803_v49, %v4707_v61  ;;  %v7223_v45 = vpop.f32.mrb[45].mxu1  ;;  %v5274_v40 = vld [vmem:[%s9109_s10 + $0x8] sm:$0xff]  ;;  %v5276_v33 = vld [vmem:[%s9109_s10 + $0x18] sm:$0xff] }
 0xe80   :  { %v4556_v3 = vsel %vm4552_vm7, %v4544_v26, %v4554_v63  ;;  %v8909_v41 = vpack.c.bf16 %v5274_v40, %v5273_v13  ;;  %v5275_v26 = vld [vmem:[%s9109_s10 + $0x10] sm:$0xff] }
 0xe81   :  { %v7514_v4 = vpack.c.bf16 %v4557_v0, %v4556_v3  ;;  %vm4711_vm8 = vcmp.gt.f32.partialorder %v4708_v48, 0.0  ;;  %v4712_v5 = vmul.f32 0.2, %v4708_v48  ;;  %v8921_v63 = vpack.c.bf16 %v5276_v33, %v5275_v26 }
 0xe83   :  { %7516 = vmatpush3.bf16.msk.msra.mxu0 %vm8438_vm9, %v7514_v4  ;;  %v4713_v30 = vsel %vm4711_vm8, %v4708_v48, %v4712_v5  ;;  %v8945_v5 = vld [vmem:[%s9110_s11] ss:$0 sm:$0xff] }
 0xe84   :  { %7521 = vmatprep.subr.bf16.mxu0 %v8354_v54  ;;  %4876 = vst.msk [vmem:[#allocation2 + $0x38] sm:$0xf] %vm1448_vm5, %v4713_v30 }
 0xe86   :  { %7215 = vmatmul.mubr.msk.f32.vlgmr.msra.gmra.mrb[44].mxu0 %vm1371_vm11, %v8447_v18 }
 0xe87   :  { %7523 = vmatpush3.bf16.msra.mxu0 %v8354_v54  ;;  %7228 = vmatprep.mubr.msk.f32.mxu0 %vm1202_vm3, %v8513_v62 }
 0xe88   :  { %7528 = vmatprep.subr.bf16.mxu0 %v7694_v47 }
 0xe8a   :  { %7229 = vmatmul.mubr.msk.f32.vlgmr.msra.gmra.mrb[46].mxu0 %vm1202_vm3, %v8566_v37 }
 0xe8b   :  { %7530 = vmatpush3.bf16.msra.mxu0 %v8316_v46  ;;  %7242 = vmatprep.mubr.msk.f32.mxu0 %vm7695_vm2, %v7693_v42  ;;  %v7663_v46 = vld [vmem:[%s9106_s7] ss:$0 sm:$0xff] }
 0xe8c   :  { %7535 = vmatprep.subr.bf16.mxu0 %v7694_v47 }
 0xe8e   :  { %7243 = vmatmul.mubr.msk.f32.vlgmr.msra.gmra.mrb[48].mxu0 %vm1202_vm3, %v8570_v39 }
 0xe8f   :  { %7256 = vmatprep.mubr.msk.f32.mxu0 %vm7695_vm2, %v7693_v42 }
 0xee9   :  { %v4389_v2 = vpop.permute.xlu0 %4388 }
 0xeea   :  { %4391 = vst.msk [vmem:[#allocation2 + $0x30] sm:$0xf] %vm1454_vm15, %v4389_v2 }
 0xf59   :  { %v4627_v18 = vpop.f32.mrb[44].mxu0 }
 0xf5a   :  { %4633 = vrot.lane.b32.xlu1 %v4627_v18, %s7704_s20  ;;  %v7216_v62 = vpop.f32.mrb[45].mxu0 }
 0xf5b   :  { %v8952_v62 = vld [vmem:[%s9108_s9] ss:$0 sm:$0xff] }
 0xf5d   :  { %v7230_v37 = vpop.f32.mrb[46].mxu0 }
 0xf5e   :  { %v4794_v6 = vadd.f32 %v7663_v46, %v7230_v37  ;;  %v4788_v32 = vpop.f32.mrb[47].mxu0 }
 0xf5f   :  { %v4789_v51 = vadd.f32 %v7663_v46, %v4788_v32 }
 0xf60   :  { %vm4798_vm10 = vcmp.gt.f32.partialorder %v4794_v6, 0.0  ;;  %v4800_v39 = vmul.f32 0.2, %v4794_v6 }
 0xf61   :  { %vm4797_vm12 = vcmp.gt.f32.partialorder %v4789_v51, 0.0  ;;  %v4799_v57 = vmul.f32 0.2, %v4789_v51  ;;  %v4952_v7 = vpop.f32.mrb[48].mxu0 }
 0xf62   :  { %v4802_v8 = vsel %vm4798_vm10, %v4794_v6, %v4800_v39  ;;  %v4953_v9 = vadd.f32 %v8803_v49, %v4952_v7  ;;  %v7244_v10 = vpop.f32.mrb[49].mxu0 }
 0xf63   :  { %v4801_v59 = vsel %vm4797_vm12, %v4789_v51, %v4799_v57 }
 0xf64   :  { %v7525_v11 = vpack.c.bf16 %v4802_v8, %v4801_v59  ;;  %vm4956_vm13 = vcmp.gt.f32.partialorder %v4953_v9, 0.0  ;;  %v4957_v44 = vmul.f32 0.2, %v4953_v9 }
 0xf66   :  { %7527 = vmatpush3.bf16.msk.msra.mxu1 %vm8438_vm9, %v7525_v11  ;;  %v4958_v25 = vsel %vm4956_vm13, %v4953_v9, %v4957_v44 }
 0xf67   :  { %7532 = vmatprep.subr.bf16.mxu1 %v8354_v54  ;;  %5121 = vst.msk [vmem:[#allocation2 + $0x3c] sm:$0xf] %vm1448_vm5, %v4958_v25 }
 0xf69   :  { %7236 = vmatmul.mubr.msk.f32.vlgmr.msra.gmra.mrb[46].mxu1 %vm1371_vm11, %v7664_v14 }
 0xf6a   :  { %7534 = vmatpush3.bf16.msra.mxu1 %v8354_v54  ;;  %7249 = vmatprep.mubr.msk.f32.mxu1 %vm1202_vm3, %v8568_v38  ;;  %v5130_v54 = vld [vmem:[#allocation2 + $0x18] sm:$0xff]  ;;  %v5131_v38 = vld [vmem:[#allocation2 + $0x20] sm:$0xff] }
 0xf6b   :  { %7540 = vmatprep.subr.bf16.mxu1 %v7539_v52 }
 0xf6d   :  { %7250 = vmatmul.mubr.msk.f32.vlgmr.msra.gmra.mrb[48].mxu1 %vm1202_vm3, %v8517_v1 }
 0xf6e   :  { %7542 = vmatpush3.bf16.msra.mxu1 %v7539_v52  ;;  %7263 = vmatprep.mubr.msk.f32.mxu1 %vm1202_vm3, %v5127_v50 }
 0xf6f   :  { %7543 = vmatprep.subr.bf16.mxu1 %v7694_v47 }
 0xf71   :  { %7264 = vmatmul.mubr.msk.f32.vlgmr.msra.gmra.mrb[50].mxu1 %vm1202_vm3, %v5128_v55 }
 0xf72   :  { %7266 = vmatprep.mubr.msk.f32.mxu1 %vm1202_vm3, %v5129_v58  ;;  %7545 = vmatpush3.bf16.msra.mxu1 %v8909_v41 }
 0xf73   :  { %7546 = vmatprep.subr.bf16.mxu1 %v7694_v47 }
 0xf75   :  { %7267 = vmatmul.mubr.msk.f32.gmra.mrb[52].mxu1 %vm1202_vm3, %v5130_v54 }
 0xf76   :  { %7269 = vmatprep.mubr.msk.f32.mxu1 %vm1202_vm3, %v5131_v38  ;;  %7548 = vmatpush3.bf16.msra.mxu1 %v8921_v63 }
 0xf77   :  { %7549 = vmatprep.subr.bf16.mxu1 %v7694_v47 }
 0xf79   :  { %7270 = vmatmul.mubr.msk.f32.gmra.mrb[54].mxu1 %vm1202_vm3, %v5132_v34 }
 0xfcc   :  { %v4634_v1 = vpop.permute.xlu1 %4633 }
 0xfcd   :  { %4636 = vst.msk [vmem:[#allocation2 + $0x34] sm:$0xf] %vm1454_vm15, %v4634_v1 }
 0xfd4   :  { %v5133_v15 = vld [vmem:[#allocation2 + $0x30] sm:$0xff] }
 0xfd5   :  { %7272 = vmatprep.mubr.msk.f32.mxu1 %vm1202_vm3, %v5133_v15 }
0x103c   :  { %v4872_v28 = vpop.f32.mrb[46].mxu1 }
0x103d   :  { %v7237_v56 = vpop.f32.mrb[47].mxu1  ;;  %4878 = vrot.lane.b32.xlu0 %v4872_v28, %s7704_s20 }
0x1040   :  { %v7251_v16 = vpop.f32.mrb[48].mxu1 }
0x1041   :  { %v5039_v17 = vadd.f32 %v7663_v46, %v7251_v16  ;;  %v5033_v36 = vpop.f32.mrb[49].mxu1 }
0x1042   :  { %v5034_v27 = vadd.f32 %v7663_v46, %v5033_v36 }
0x1043   :  { %vm5043_vm5 = vcmp.gt.f32.partialorder %v5039_v17, 0.0  ;;  %v5045_v19 = vmul.f32 0.2, %v5039_v17 }
0x1044   :  { %vm5042_vm14 = vcmp.gt.f32.partialorder %v5034_v27, 0.0  ;;  %v5044_v49 = vmul.f32 0.2, %v5034_v27  ;;  %v8886_v20 = vpop.f32.mrb[50].mxu1 }
0x1045   :  { %v5047_v21 = vsel %vm5043_vm5, %v5039_v17, %v5045_v19  ;;  %v5234_v43 = vpop.f32.mrb[51].mxu1  ;;  %v5240_v55 = vadd.f32 %v8886_v20, %v8952_v62 }
0x1046   :  { %v5046_v22 = vsel %vm5042_vm14, %v5034_v27, %v5044_v49  ;;  %v5235_v37 = vadd.f32 %v8952_v62, %v5234_v43 }
0x1047   :  { %v7536_v53 = vpack.c.bf16 %v5047_v21, %v5046_v22 }
0x1048   :  { %v8888_v31 = vpop.f32.mrb[52].mxu1 }
0x1049   :  { %7538 = vmatpush3.bf16.msk.msra.mxu0 %vm8438_vm9, %v7536_v53  ;;  %v8892_v23 = vpop.f32.mrb[53].mxu1 }
0x104a   :  { %7585 = vmatprep.subr.bf16.mxu0 %v7694_v47 }
0x104c   :  { %7257 = vmatmul.mubr.msk.f32.vlgmr.msra.gmra.mrb[50].mxu0 %vm1371_vm11, %v7664_v14  ;;  %v8896_v35 = vpop.f32.mrb[54].mxu1 }
0x104d   :  { %v8898_v24 = vpop.f32.mrb[55].mxu1  ;;  %7360 = vmatprep.mubr.msk.f32.mxu0 %vm7695_vm2, %v7693_v42  ;;  %7587 = vmatpush3.bf16.msra.mxu0 %v8909_v41 }
0x104e   :  { %7588 = vmatprep.subr.bf16.mxu0 %v7694_v47 }
0x1051   :  { %7590 = vmatpush3.bf16.msra.mxu0 %v8921_v63 }
0x10af   :  { %v4879_v60 = vpop.permute.xlu0 %4878 }
0x10b0   :  { %4881 = vst.msk [vmem:[#allocation2 + $0x38] sm:$0xf] %vm1454_vm15, %v4879_v60  ;;  %v5245_v60 = vadd.f32 %v8952_v62, %v8892_v23 }
0x111f   :  { %v5117_v61 = vpop.f32.mrb[50].mxu0 }
0x1120   :  { %5123 = vrot.lane.b32.xlu1 %v5117_v61, %s7704_s20  ;;  %v7258_v0 = vpop.f32.mrb[51].mxu0 }
0x1192   :  { %v5124_v48 = vpop.permute.xlu1 %5123 }
0x1193   :  { %5126 = vst.msk [vmem:[#allocation2 + $0x3c] sm:$0xf] %vm1454_vm15, %v5124_v48 }
0x119a   :  { %v5134_v45 = vld [vmem:[#allocation2 + $0x38] sm:$0xff] }
0x119b   :  { %7273 = vmatmul.mubr.msk.f32.gmra.mrb[56].mxu1 %vm1202_vm3, %v5134_v45  ;;  %vm5284_vm3 = vcmask 261120  }
0x119c   :  { %7283 = vmatprep.mubr.msk.f32.mxu1 %vm7695_vm2, %v7693_v42 }
0x119f   :  { %7284 = vmatmul.mubr.f32.vlgmr.msra.gmra.mrb[58].mxu1 %v7693_v42 }
0x11a0   :  { %7551 = vmatpush3.bf16.msra.mxu1 %v8909_v41  ;;  %7294 = vmatprep.mubr.msk.f32.mxu1 %vm7695_vm2, %v7693_v42 }
0x11a1   :  { %7552 = vmatprep.subr.bf16.mxu1 %v7694_v47 }
0x11a4   :  { %7554 = vmatpush3.bf16.msra.mxu1 %v8921_v63 }
0x11a5   :  { %7555 = vmatprep.subr.bf16.mxu1 %v7694_v47 }
0x126e   :  { %v8938_v3 = vpop.f32.mrb[56].mxu1 }
0x126f   :  { %v8940_v4 = vpop.f32.mrb[57].mxu1 }
0x1272   :  { %v5354_v30 = vpop.f32.mrb[58].mxu1 }
0x1273   :  { %v5355_v2 = vadd.f32 %v8945_v5, %v5354_v30  ;;  %v7285_v18 = vpop.f32.mrb[59].mxu1 }
0x1275   :  { %5366 = vrot.lane.b32.xlu0 %v5355_v2, %s7699_s0  ;;  %v5358_v46 = vadd.f32 %v5355_v2, %v5235_v37 }
0x1277   :  { %v6693_v6 = vmul.f32 -1.442695, %v5358_v46 }
0x1279   :  { %7614 = vpow2.f32 %v6693_v6 }
0x1283   :  { %v7615_v32 = vpop.eup %7614 }
0x1284   :  { %v5362_v51 = vadd.f32 1.0, %v7615_v32 }
0x1286   :  { %7616 = vrcp.f32 %v5362_v51 }
0x1290   :  { %v7617_v39 = vpop.eup %7616 }
0x1291   :  { %v5376_v59 = vsub.f32 1.0, %v7617_v39  ;;  %v5382_v44 = vmul.f32 0.0, %v7617_v39 }
0x12e7   :  { %v5367_v57 = vpop.permute.xlu0 %5366 }
0x12e8   :  { %v5369_v7 = vmul.f32 %v7617_v39, %v5367_v57 }
0x12ea   :  { %5371 = vrot.lane.b32.xlu1 %v5369_v7, %s7699_s0  ;;  %v5250_v7 = vadd.f32 %v8888_v31, %v8952_v62 }
0x135c   :  { %v5372_v8 = vpop.permute.xlu1 %5371 }
0x135d   :  { %v5374_v9 = vadd.f32 %v5372_v8, %v5235_v37 }
0x135f   :  { %7618 = vtanh.f32 %v5374_v9 }
0x1369   :  { %v7619_v10 = vpop.eup %7618 }
0x136a   :  { %5378 = vrot.lane.b32.xlu0 %v7619_v10, %s7697_s6 }
0x13dc   :  { %v5379_v11 = vpop.permute.xlu0 %5378 }
0x13dd   :  { %v5381_v12 = vmul.f32 %v5379_v11, %v5376_v59 }
0x13df   :  { %v5383_v29 = vadd.f32 %v5382_v44, %v5381_v12 }
0x13e1   :  { %5385 = vrot.lane.b32.xlu1 %v5383_v29, %s7697_s6 }
0x1453   :  { %v5386_v25 = vpop.permute.xlu1 %5385 }
0x1454   :  { %7295 = vmatmul.mubr.msk.f32.vlgmr.msra.gmra.mrb[60].mxu1 %vm5284_vm3, %v5386_v25 }
0x1455   :  { %7557 = vmatpush3.bf16.msra.mxu1 %v8909_v41  ;;  %7305 = vmatprep.mubr.msk.f32.mxu1 %vm7695_vm2, %v7693_v42 }
0x1456   :  { %7558 = vmatprep.subr.bf16.mxu1 %v7694_v47 }
0x1459   :  { %7560 = vmatpush3.bf16.msra.mxu1 %v8921_v63 }
0x145a   :  { %7561 = vmatprep.subr.bf16.mxu1 %v7694_v47 }
0x1527   :  { %v5455_v52 = vpop.f32.mrb[60].mxu1 }
0x1528   :  { %v5456_v14 = vadd.f32 %v8945_v5, %v5455_v52  ;;  %v7296_v50 = vpop.f32.mrb[61].mxu1 }
0x152a   :  { %5467 = vrot.lane.b32.xlu0 %v5456_v14, %s7699_s0  ;;  %v5459_v58 = vadd.f32 %v5456_v14, %v5240_v55 }
0x152c   :  { %v6695_v54 = vmul.f32 -1.442695, %v5459_v58 }
0x152e   :  { %7620 = vpow2.f32 %v6695_v54 }
0x1538   :  { %v7621_v38 = vpop.eup %7620 }
0x1539   :  { %v5463_v34 = vadd.f32 1.0, %v7621_v38 }
0x153b   :  { %7622 = vrcp.f32 %v5463_v34 }
0x1545   :  { %v7623_v1 = vpop.eup %7622 }
0x1546   :  { %v5477_v36 = vsub.f32 1.0, %v7623_v1  ;;  %v5483_v19 = vmul.f32 %v7623_v1, %v5383_v29 }
0x159c   :  { %v5468_v15 = vpop.permute.xlu0 %5467 }
0x159d   :  { %v5470_v28 = vmul.f32 %v7623_v1, %v5468_v15  ;;  %v5255_v15 = vadd.f32 %v8952_v62, %v8898_v24 }
0x159f   :  { %5472 = vrot.lane.b32.xlu1 %v5470_v28, %s7699_s0 }
0x1611   :  { %v5473_v56 = vpop.permute.xlu1 %5472 }
0x1612   :  { %v5475_v16 = vadd.f32 %v5473_v56, %v5240_v55 }
0x1614   :  { %7624 = vtanh.f32 %v5475_v16 }
0x161e   :  { %v7625_v17 = vpop.eup %7624 }
0x161f   :  { %5479 = vrot.lane.b32.xlu0 %v7625_v17, %s7697_s6 }
0x1691   :  { %v5480_v27 = vpop.permute.xlu0 %5479 }
0x1692   :  { %v5482_v49 = vmul.f32 %v5480_v27, %v5477_v36 }
0x1694   :  { %v5484_v20 = vadd.f32 %v5483_v19, %v5482_v49 }
0x1696   :  { %5486 = vrot.lane.b32.xlu1 %v5484_v20, %s7697_s6 }
0x1708   :  { %v5487_v21 = vpop.permute.xlu1 %5486 }
0x1709   :  { %7306 = vmatmul.mubr.msk.f32.vlgmr.msra.gmra.mrb[62].mxu1 %vm5284_vm3, %v5487_v21 }
0x170a   :  { %7563 = vmatpush3.bf16.msra.mxu1 %v8909_v41  ;;  %7316 = vmatprep.mubr.msk.f32.mxu1 %vm7695_vm2, %v7693_v42 }
0x170b   :  { %7564 = vmatprep.subr.bf16.mxu1 %v7694_v47 }
0x170e   :  { %7566 = vmatpush3.bf16.msra.mxu1 %v8921_v63 }
0x170f   :  { %7567 = vmatprep.subr.bf16.mxu1 %v7694_v47 }
0x17dc   :  { %v5556_v43 = vpop.f32.mrb[62].mxu1 }
0x17dd   :  { %v5557_v22 = vadd.f32 %v8945_v5, %v5556_v43  ;;  %v7307_v53 = vpop.f32.mrb[63].mxu1 }
0x17df   :  { %5568 = vrot.lane.b32.xlu0 %v5557_v22, %s7699_s0  ;;  %v5560_v13 = vadd.f32 %v5557_v22, %v5245_v60 }
0x17e1   :  { %v6697_v40 = vmul.f32 -1.442695, %v5560_v13 }
0x17e3   :  { %7626 = vpow2.f32 %v6697_v40 }
0x17ed   :  { %v7627_v26 = vpop.eup %7626 }
0x17ee   :  { %v5564_v33 = vadd.f32 1.0, %v7627_v26 }
0x17f0   :  { %7628 = vrcp.f32 %v5564_v33 }
0x17fa   :  { %v7629_v61 = vpop.eup %7628 }
0x17fb   :  { %v5578_v18 = vsub.f32 1.0, %v7629_v61  ;;  %v5584_v23 = vmul.f32 %v7629_v61, %v5484_v20 }
0x1851   :  { %v5569_v0 = vpop.permute.xlu0 %5568 }
0x1852   :  { %v5571_v48 = vmul.f32 %v7629_v61, %v5569_v0  ;;  %v5260_v61 = vadd.f32 %v8896_v35, %v8952_v62 }
0x1854   :  { %5573 = vrot.lane.b32.xlu1 %v5571_v48, %s7699_s0 }
0x18c6   :  { %v5574_v45 = vpop.permute.xlu1 %5573 }
0x18c7   :  { %v5576_v30 = vadd.f32 %v5574_v45, %v5245_v60 }
0x18c9   :  { %7630 = vtanh.f32 %v5576_v30 }
0x18d3   :  { %v7631_v2 = vpop.eup %7630 }
0x18d4   :  { %5580 = vrot.lane.b32.xlu0 %v7631_v2, %s7697_s6 }
0x1946   :  { %v5581_v37 = vpop.permute.xlu0 %5580 }
0x1947   :  { %v5583_v46 = vmul.f32 %v5581_v37, %v5578_v18 }
0x1949   :  { %v5585_v6 = vadd.f32 %v5584_v23, %v5583_v46 }
0x194b   :  { %5587 = vrot.lane.b32.xlu1 %v5585_v6, %s7697_s6 }
0x19bd   :  { %v5588_v32 = vpop.permute.xlu1 %5587 }
0x19be   :  { %7317 = vmatmul.mubr.msk.f32.vlgmr.msra.gmra.mrb[64].mxu1 %vm5284_vm3, %v5588_v32 }
0x19bf   :  { %7569 = vmatpush3.bf16.msra.mxu1 %v8909_v41  ;;  %7327 = vmatprep.mubr.msk.f32.mxu1 %vm7695_vm2, %v7693_v42 }
0x19c0   :  { %7570 = vmatprep.subr.bf16.mxu1 %v7694_v47 }
0x19c3   :  { %7572 = vmatpush3.bf16.msra.mxu1 %v8921_v63 }
0x19c4   :  { %7573 = vmatprep.subr.bf16.mxu1 %v7694_v47 }
0x1a91   :  { %v5657_v51 = vpop.f32.mrb[64].mxu1 }
0x1a92   :  { %v5658_v39 = vadd.f32 %v8945_v5, %v5657_v51  ;;  %v7318_v57 = vpop.f32.mrb[65].mxu1 }
0x1a94   :  { %5669 = vrot.lane.b32.xlu0 %v5658_v39, %s7699_s0  ;;  %v5661_v8 = vadd.f32 %v5658_v39, %v5250_v7 }
0x1a96   :  { %v6699_v9 = vmul.f32 -1.442695, %v5661_v8 }
0x1a98   :  { %7632 = vpow2.f32 %v6699_v9 }
0x1aa2   :  { %v7633_v10 = vpop.eup %7632 }
0x1aa3   :  { %v5665_v59 = vadd.f32 1.0, %v7633_v10 }
0x1aa5   :  { %7634 = vrcp.f32 %v5665_v59 }
0x1aaf   :  { %v7635_v11 = vpop.eup %7634 }
0x1ab0   :  { %v5679_v14 = vsub.f32 1.0, %v7635_v11  ;;  %v5685_v31 = vmul.f32 %v7635_v11, %v5585_v6 }
0x1b06   :  { %v5670_v44 = vpop.permute.xlu0 %5669 }
0x1b07   :  { %v5672_v12 = vmul.f32 %v7635_v11, %v5670_v44 }
0x1b09   :  { %5674 = vrot.lane.b32.xlu1 %v5672_v12, %s7699_s0 }
0x1b7b   :  { %v5675_v29 = vpop.permute.xlu1 %5674 }
0x1b7c   :  { %v5677_v25 = vadd.f32 %v5675_v29, %v5250_v7  ;;  %v5265_v7 = vadd.f32 %v8952_v62, %v8940_v4 }
0x1b7e   :  { %7636 = vtanh.f32 %v5677_v25 }
0x1b88   :  { %v7637_v52 = vpop.eup %7636 }
0x1b89   :  { %5681 = vrot.lane.b32.xlu0 %v7637_v52, %s7697_s6 }
0x1bfb   :  { %v5682_v50 = vpop.permute.xlu0 %5681 }
0x1bfc   :  { %v5684_v55 = vmul.f32 %v5682_v50, %v5679_v14 }
0x1bfe   :  { %v5686_v58 = vadd.f32 %v5685_v31, %v5684_v55 }
0x1c00   :  { %5688 = vrot.lane.b32.xlu1 %v5686_v58, %s7697_s6 }
0x1c72   :  { %v5689_v54 = vpop.permute.xlu1 %5688 }
0x1c73   :  { %7328 = vmatmul.mubr.msk.f32.vlgmr.msra.gmra.mrb[66].mxu1 %vm5284_vm3, %v5689_v54 }
0x1c74   :  { %7575 = vmatpush3.bf16.msra.mxu1 %v8909_v41  ;;  %7338 = vmatprep.mubr.msk.f32.mxu1 %vm7695_vm2, %v7693_v42 }
0x1c75   :  { %7576 = vmatprep.subr.bf16.mxu1 %v7694_v47 }
0x1c78   :  { %7578 = vmatpush3.bf16.msra.mxu1 %v8921_v63 }
0x1c79   :  { %7579 = vmatprep.subr.bf16.mxu1 %v7694_v47 }
0x1d46   :  { %v5758_v38 = vpop.f32.mrb[66].mxu1 }
0x1d47   :  { %v5759_v34 = vadd.f32 %v8945_v5, %v5758_v38  ;;  %v7329_v1 = vpop.f32.mrb[67].mxu1 }
0x1d48   :  { %v5270_v1 = vadd.f32 %v8938_v3, %v8952_v62 }
0x1d49   :  { %5770 = vrot.lane.b32.xlu0 %v5759_v34, %s7699_s0  ;;  %v5762_v28 = vadd.f32 %v5759_v34, %v5255_v15 }
0x1d4b   :  { %v6701_v56 = vmul.f32 -1.442695, %v5762_v28 }
0x1d4d   :  { %7638 = vpow2.f32 %v6701_v56 }
0x1d57   :  { %v7639_v16 = vpop.eup %7638 }
0x1d58   :  { %v5766_v17 = vadd.f32 1.0, %v7639_v16 }
0x1d5a   :  { %7640 = vrcp.f32 %v5766_v17 }
0x1d64   :  { %v7641_v36 = vpop.eup %7640 }
0x1d65   :  { %v5780_v43 = vsub.f32 1.0, %v7641_v36  ;;  %v5786_v24 = vmul.f32 %v7641_v36, %v5686_v58 }
0x1dbb   :  { %v5771_v27 = vpop.permute.xlu0 %5770 }
0x1dbc   :  { %v5773_v19 = vmul.f32 %v7641_v36, %v5771_v27 }
0x1dbe   :  { %5775 = vrot.lane.b32.xlu1 %v5773_v19, %s7699_s0 }
0x1e30   :  { %v5776_v49 = vpop.permute.xlu1 %5775 }
0x1e31   :  { %v5778_v20 = vadd.f32 %v5776_v49, %v5255_v15 }
0x1e33   :  { %7642 = vtanh.f32 %v5778_v20 }
0x1e3d   :  { %v7643_v21 = vpop.eup %7642 }
0x1e3e   :  { %5782 = vrot.lane.b32.xlu0 %v7643_v21, %s7697_s6 }
0x1eb0   :  { %v5783_v22 = vpop.permute.xlu0 %5782 }
0x1eb1   :  { %v5785_v53 = vmul.f32 %v5783_v22, %v5780_v43 }
0x1eb3   :  { %v5787_v60 = vadd.f32 %v5786_v24, %v5785_v53 }
0x1eb5   :  { %5789 = vrot.lane.b32.xlu1 %v5787_v60, %s7697_s6 }
0x1f27   :  { %v5790_v13 = vpop.permute.xlu1 %5789 }
0x1f28   :  { %7339 = vmatmul.mubr.msk.f32.vlgmr.msra.gmra.mrb[68].mxu1 %vm5284_vm3, %v5790_v13 }
0x1f29   :  { %7581 = vmatpush3.bf16.msra.mxu1 %v8909_v41  ;;  %7349 = vmatprep.mubr.msk.f32.mxu1 %vm7695_vm2, %v7693_v42 }
0x1f2a   :  { %7582 = vmatprep.subr.bf16.mxu1 %v7694_v47 }
0x1f2d   :  { %7584 = vmatpush3.bf16.msra.mxu1 %v8921_v63 }
0x1ffb   :  { %v5859_v40 = vpop.f32.mrb[68].mxu1 }
0x1ffc   :  { %v5860_v26 = vadd.f32 %v8945_v5, %v5859_v40  ;;  %v7340_v33 = vpop.f32.mrb[69].mxu1 }
0x1ffe   :  { %5871 = vrot.lane.b32.xlu0 %v5860_v26, %s7699_s0  ;;  %v5863_v0 = vadd.f32 %v5860_v26, %v5260_v61 }
0x2000   :  { %v6703_v48 = vmul.f32 -1.442695, %v5863_v0 }
0x2002   :  { %7644 = vpow2.f32 %v6703_v48 }
0x200c   :  { %v7645_v41 = vpop.eup %7644 }
0x200d   :  { %v5867_v45 = vadd.f32 1.0, %v7645_v41 }
0x200f   :  { %7646 = vrcp.f32 %v5867_v45 }
0x2019   :  { %v7647_v42 = vpop.eup %7646 }
0x201a   :  { %v5881_v37 = vsub.f32 1.0, %v7647_v42  ;;  %v5887_v35 = vmul.f32 %v7647_v42, %v5787_v60 }
0x2070   :  { %v5872_v30 = vpop.permute.xlu0 %5871 }
0x2071   :  { %v5874_v47 = vmul.f32 %v7647_v42, %v5872_v30 }
0x2073   :  { %5876 = vrot.lane.b32.xlu1 %v5874_v47, %s7699_s0 }
0x20e5   :  { %v5877_v63 = vpop.permute.xlu1 %5876 }
0x20e6   :  { %v5879_v2 = vadd.f32 %v5877_v63, %v5260_v61 }
0x20e8   :  { %7648 = vtanh.f32 %v5879_v2 }
0x20f2   :  { %v7649_v18 = vpop.eup %7648 }
0x20f3   :  { %5883 = vrot.lane.b32.xlu0 %v7649_v18, %s7697_s6 }
0x2165   :  { %v5884_v23 = vpop.permute.xlu0 %5883 }
0x2166   :  { %v5886_v46 = vmul.f32 %v5884_v23, %v5881_v37 }
0x2168   :  { %v5888_v6 = vadd.f32 %v5887_v35, %v5886_v46 }
0x216a   :  { %5890 = vrot.lane.b32.xlu1 %v5888_v6, %s7697_s6 }
0x21dc   :  { %v5891_v32 = vpop.permute.xlu1 %5890 }
0x21dd   :  { %7350 = vmatmul.mubr.msk.f32.vlgmr.msra.gmra.mrb[70].mxu1 %vm5284_vm3, %v5891_v32 }
0x22b0   :  { %v5960_v51 = vpop.f32.mrb[70].mxu1 }
0x22b1   :  { %v5961_v39 = vadd.f32 %v8945_v5, %v5960_v51  ;;  %v7351_v57 = vpop.f32.mrb[71].mxu1 }
0x22b3   :  { %5972 = vrot.lane.b32.xlu0 %v5961_v39, %s7699_s0  ;;  %v5964_v8 = vadd.f32 %v5961_v39, %v5265_v7 }
0x22b5   :  { %v6705_v9 = vmul.f32 -1.442695, %v5964_v8 }
0x22b7   :  { %7650 = vpow2.f32 %v6705_v9 }
0x22c1   :  { %v7651_v10 = vpop.eup %7650 }
0x22c2   :  { %v5968_v59 = vadd.f32 1.0, %v7651_v10 }
0x22c4   :  { %7652 = vrcp.f32 %v5968_v59 }
0x22ce   :  { %v7653_v11 = vpop.eup %7652 }
0x22cf   :  { %v5982_v14 = vsub.f32 1.0, %v7653_v11  ;;  %v5988_v4 = vmul.f32 %v7653_v11, %v5888_v6 }
0x2325   :  { %v5973_v44 = vpop.permute.xlu0 %5972 }
0x2326   :  { %v5975_v12 = vmul.f32 %v7653_v11, %v5973_v44 }
0x2328   :  { %5977 = vrot.lane.b32.xlu1 %v5975_v12, %s7699_s0 }
0x239a   :  { %v5978_v29 = vpop.permute.xlu1 %5977 }
0x239b   :  { %v5980_v25 = vadd.f32 %v5978_v29, %v5265_v7 }
0x239d   :  { %7654 = vtanh.f32 %v5980_v25 }
0x23a7   :  { %v7655_v52 = vpop.eup %7654 }
0x23a8   :  { %5984 = vrot.lane.b32.xlu0 %v7655_v52, %s7697_s6 }
0x241a   :  { %v5985_v50 = vpop.permute.xlu0 %5984 }
0x241b   :  { %v5987_v31 = vmul.f32 %v5985_v50, %v5982_v14 }
0x241d   :  { %v5989_v55 = vadd.f32 %v5988_v4, %v5987_v31 }
0x241f   :  { %5991 = vrot.lane.b32.xlu1 %v5989_v55, %s7697_s6 }
0x2491   :  { %v5992_v58 = vpop.permute.xlu1 %5991 }
0x2492   :  { %7361 = vmatmul.mubr.msk.f32.vlgmr.msra.gmra.mrb[52].mxu0 %vm5284_vm3, %v5992_v58 }
0x2565   :  { %v6061_v54 = vpop.f32.mrb[52].mxu0 }
0x2566   :  { %v6062_v38 = vadd.f32 %v8945_v5, %v6061_v54  ;;  %v7362_v34 = vpop.f32.mrb[53].mxu0 }
0x2568   :  { %6073 = vrot.lane.b32.xlu0 %v6062_v38, %s7699_s0  ;;  %v6065_v15 = vadd.f32 %v6062_v38, %v5270_v1 }
0x256a   :  { %v6707_v28 = vmul.f32 -1.442695, %v6065_v15 }
0x256c   :  { %7656 = vpow2.f32 %v6707_v28 }
0x2576   :  { %v7657_v56 = vpop.eup %7656 }
0x2577   :  { %v6069_v16 = vadd.f32 1.0, %v7657_v56 }
0x2579   :  { %7658 = vrcp.f32 %v6069_v16 }
0x2583   :  { %v7659_v17 = vpop.eup %7658 }
0x2584   :  { %v6083_v20 = vsub.f32 1.0, %v7659_v17  ;;  %v6089_v3 = vmul.f32 %v7659_v17, %v5989_v55 }
0x25da   :  { %v6074_v36 = vpop.permute.xlu0 %6073 }
0x25db   :  { %v6076_v27 = vmul.f32 %v7659_v17, %v6074_v36 }
0x25dd   :  { %6078 = vrot.lane.b32.xlu1 %v6076_v27, %s7699_s0 }
0x264f   :  { %v6079_v19 = vpop.permute.xlu1 %6078 }
0x2650   :  { %v6081_v49 = vadd.f32 %v6079_v19, %v5270_v1 }
0x2652   :  { %7660 = vtanh.f32 %v6081_v49 }
0x265c   :  { %v7661_v5 = vpop.eup %7660 }
0x265d   :  { %6085 = vrot.lane.b32.xlu0 %v7661_v5, %s7697_s6 }
0x26cf   :  { %v6086_v21 = vpop.permute.xlu0 %6085 }
0x26d0   :  { %v6088_v62 = vmul.f32 %v6086_v21, %v6083_v20 }
0x26d2   :  { %v6090_v43 = vadd.f32 %v6089_v3, %v6088_v62 }
0x26d4   :  { %6092 = vrot.lane.b32.xlu1 %v6090_v43, %s7697_s6 }
0x2746   :  { %v6093_v22 = vpop.permute.xlu1 %6092 }
0x2747   :  { %6095 = vst.msk [vmem:[#allocation6] sm:$0xff] %vm5284_vm3, %v6093_v22 }
0x2748   :  { %7687 = dma.done.wait [#allocation5], 1536 }
0x2749   :  { %7688 = vsyncadd [#allocation5], 4294965760  ;;  %v6104_v24 = vpack.c.bf16 %v6090_v43, %v6090_v43 }
0x274a   :  { %7689 = dma.done.wait [#allocation5 + $0x1], 12288 }
0x274b   :  { %7690 = vsyncadd [#allocation5 + $0x1], 4294955008  ;;  %v7705_v53 = vmov 0   ;;  %6150 = vrot.lane.b32.xlu0 %v6104_v24, %s7697_s6  ;;  %v6106_v60 = vld [vmem:[#allocation3 + $0x8] sm:$0xff]  ;;  %v6108_v13 = vld [vmem:[#allocation3 + $0x18] sm:$0xff] }
0x274c   :  { %6187 = vmatprep.mubr.bf16.mxu1 %v7705_v53  ;;  %6228 = vmatprep.mubr.bf16.mxu0 %v7705_v53  ;;  %v6105_v40 = vld [vmem:[#allocation3] sm:$0xff]  ;;  %v6107_v26 = vld [vmem:[#allocation3 + $0x10] sm:$0xff]  ;;  %v6112_v33 = vld [vmem:[#allocation3 + $0x38] sm:$0xff] }
0x274d   :  { %6155 = vmatprep.subr.bf16.mxu1 %v6106_v60  ;;  %6196 = vmatprep.subr.bf16.mxu0 %v6108_v13  ;;  %v6114_v61 = vld [vmem:[#allocation3 + $0x48] sm:$0xff]  ;;  %v6111_v0 = vld [vmem:[#allocation3 + $0x30] sm:$0xff]  ;;  %v6113_v48 = vld [vmem:[#allocation3 + $0x40] sm:$0xff] }
0x274e   :  { %6156 = vmatpush1.bf16.msra.mxu1 %v6105_v40  ;;  %6197 = vmatpush1.bf16.msra.mxu0 %v6107_v26  ;;  %v6110_v41 = vld [vmem:[#allocation3 + $0x28] sm:$0xff]  ;;  %v6109_v42 = vld [vmem:[#allocation3 + $0x20] sm:$0xff]  ;;  %v6116_v47 = vld [vmem:[#allocation3 + $0x58] sm:$0xff] }
0x274f   :  { %6157 = vmatprep.subr.bf16.mxu1 %v6112_v33  ;;  %6198 = vmatprep.subr.bf16.mxu0 %v6114_v61  ;;  %v6335_v45 = vld [vmem:[#allocation4 + $0x108] sm:$0xff]  ;;  %v6334_v63 = vld [vmem:[#allocation4 + $0x100] sm:$0xff]  ;;  %v6337_v2 = vld [vmem:[#allocation4 + $0x118] sm:$0xff] }
0x2750   :  { %v6115_v18 = vld [vmem:[#allocation3 + $0x50] sm:$0xff]  ;;  %v6303_v37 = vld [vmem:[#allocation4 + $0x8] sm:$0xff]  ;;  %v6302_v46 = vld [vmem:[#allocation4] sm:$0xff] }
0x2751   :  { %v6336_v23 = vld [vmem:[#allocation4 + $0x110] sm:$0xff]  ;;  %v6339_v35 = vld [vmem:[#allocation4 + $0x128] sm:$0xff]  ;;  %v6305_v6 = vld [vmem:[#allocation4 + $0x18] sm:$0xff] }
0x2752   :  { %6158 = vmatpush1.bf16.msra.mxu1 %v6111_v0  ;;  %6199 = vmatpush1.bf16.msra.mxu0 %v6113_v48  ;;  %v6338_v32 = vld [vmem:[#allocation4 + $0x120] sm:$0xff]  ;;  %v6341_v51 = vld [vmem:[#allocation4 + $0x138] sm:$0xff]  ;;  %v6304_v39 = vld [vmem:[#allocation4 + $0x10] sm:$0xff] }
0x2753   :  { %6237 = vmatprep.subr.bf16.mxu1 %v6110_v41  ;;  %6451 = vmatprep.subr.bf16.mxu0 %v6335_v45  ;;  %v6307_v57 = vld [vmem:[#allocation4 + $0x28] sm:$0xff]  ;;  %v6340_v7 = vld [vmem:[#allocation4 + $0x130] sm:$0xff]  ;;  %v6306_v9 = vld [vmem:[#allocation4 + $0x20] sm:$0xff] }
0x2754   :  { %v6343_v8 = vld [vmem:[#allocation4 + $0x148] sm:$0xff]  ;;  %v6309_v10 = vld [vmem:[#allocation4 + $0x38] sm:$0xff]  ;;  %v6342_v59 = vld [vmem:[#allocation4 + $0x140] sm:$0xff] }
0x2755   :  { %v6345_v11 = vld [vmem:[#allocation4 + $0x158] sm:$0xff]  ;;  %v6308_v44 = vld [vmem:[#allocation4 + $0x30] sm:$0xff]  ;;  %v6311_v12 = vld [vmem:[#allocation4 + $0x48] sm:$0xff] }
0x2756   :  { %v6344_v29 = vld [vmem:[#allocation4 + $0x150] sm:$0xff]  ;;  %v6347_v25 = vld [vmem:[#allocation4 + $0x168] sm:$0xff]  ;;  %v6310_v52 = vld [vmem:[#allocation4 + $0x40] sm:$0xff] }
0x2757   :  { %v6313_v14 = vld [vmem:[#allocation4 + $0x58] sm:$0xff]  ;;  %v6346_v50 = vld [vmem:[#allocation4 + $0x160] sm:$0xff]  ;;  %v6312_v31 = vld [vmem:[#allocation4 + $0x50] sm:$0xff] }
0x2758   :  { %v6349_v4 = vld [vmem:[#allocation4 + $0x178] sm:$0xff]  ;;  %v6315_v55 = vld [vmem:[#allocation4 + $0x68] sm:$0xff]  ;;  %v6348_v58 = vld [vmem:[#allocation4 + $0x170] sm:$0xff] }
0x2759   :  { %v6351_v54 = vld [vmem:[#allocation4 + $0x188] sm:$0xff]  ;;  %v6314_v38 = vld [vmem:[#allocation4 + $0x60] sm:$0xff]  ;;  %v6317_v34 = vld [vmem:[#allocation4 + $0x78] sm:$0xff] }
0x275a   :  { %v6350_v1 = vld [vmem:[#allocation4 + $0x180] sm:$0xff]  ;;  %v6353_v15 = vld [vmem:[#allocation4 + $0x198] sm:$0xff]  ;;  %v6316_v28 = vld [vmem:[#allocation4 + $0x70] sm:$0xff] }
0x275b   :  { %v6319_v56 = vld [vmem:[#allocation4 + $0x88] sm:$0xff]  ;;  %v6352_v16 = vld [vmem:[#allocation4 + $0x190] sm:$0xff]  ;;  %v6318_v36 = vld [vmem:[#allocation4 + $0x80] sm:$0xff] }
0x275c   :  { %v6355_v17 = vld [vmem:[#allocation4 + $0x1a8] sm:$0xff]  ;;  %v6321_v27 = vld [vmem:[#allocation4 + $0x98] sm:$0xff]  ;;  %v6354_v19 = vld [vmem:[#allocation4 + $0x1a0] sm:$0xff] }
0x275d   :  { %v6357_v49 = vld [vmem:[#allocation4 + $0x1b8] sm:$0xff]  ;;  %v6320_v5 = vld [vmem:[#allocation4 + $0x90] sm:$0xff]  ;;  %v6323_v20 = vld [vmem:[#allocation4 + $0xa8] sm:$0xff] }
0x275e   :  { %v6356_v21 = vld [vmem:[#allocation4 + $0x1b0] sm:$0xff]  ;;  %v6359_v3 = vld [vmem:[#allocation4 + $0x1c8] sm:$0xff]  ;;  %v6322_v62 = vld [vmem:[#allocation4 + $0xa0] sm:$0xff] }
0x275f   :  { %v6325_v43 = vld [vmem:[#allocation4 + $0xb8] sm:$0xff]  ;;  %v6358_v22 = vld [vmem:[#allocation4 + $0x1c0] sm:$0xff]  ;;  %v6327_v60 = vld [vmem:[#allocation4 + $0xc8] sm:$0xff] }
0x2760   :  { %v6361_v24 = vld [vmem:[#allocation4 + $0x1d8] sm:$0xff]  ;;  %v6360_v13 = vld [vmem:[#allocation4 + $0x1d0] sm:$0xff]  ;;  %v6326_v40 = vld [vmem:[#allocation4 + $0xc0] sm:$0xff] }
0x2761   :  { %v6329_v26 = vld [vmem:[#allocation4 + $0xd8] sm:$0xff]  ;;  %v6328_v33 = vld [vmem:[#allocation4 + $0xd0] sm:$0xff]  ;;  %v6363_v61 = vld [vmem:[#allocation4 + $0x1e8] sm:$0xff] }
0x2762   :  { %v6331_v0 = vld [vmem:[#allocation4 + $0xe8] sm:$0xff]  ;;  %v6362_v48 = vld [vmem:[#allocation4 + $0x1e0] sm:$0xff]  ;;  %v6365_v45 = vld [vmem:[#allocation4 + $0x1f8] sm:$0xff] }
0x2763   :  { %v6330_v41 = vld [vmem:[#allocation4 + $0xe0] sm:$0xff] }
0x27bd   :  { %v6151_v30 = vpop.permute.xlu0 %6150 }
0x27be   :  { %6708 = vmatmul.mubr.msk.bf16.vlgmr.msra.gmra.mrb[72].mxu1 %vm5284_vm3, %v6151_v30  ;;  %6709 = vmatmul.mubr.msk.bf16.vlgmr.msra.gmra.mrb[56].mxu0 %vm5284_vm3, %v6151_v30 }
0x27bf   :  { %6238 = vmatpush1.bf16.msra.mxu1 %v6109_v42  ;;  %6269 = vmatprep.mubr.bf16.mxu1 %v7705_v53  ;;  %v6324_v53 = vld [vmem:[#allocation4 + $0xb0] sm:$0xff]  ;;  %v6333_v42 = vld [vmem:[#allocation4 + $0xf8] sm:$0xff] }
0x27c0   :  { %6239 = vmatprep.subr.bf16.mxu1 %v6116_v47  ;;  %6452 = vmatpush1.bf16.msra.mxu0 %v6334_v63  ;;  %v6332_v47 = vld [vmem:[#allocation4 + $0xf0] sm:$0xff]  ;;  %v6367_v63 = vld [vmem:[#allocation4 + $0x208] sm:$0xff] }
0x27c1   :  { %6453 = vmatprep.subr.bf16.mxu0 %v6337_v2  ;;  %v6119_v2 = vlaneseq }
0x27c3   :  { %6240 = vmatpush1.bf16.msra.mxu1 %v6115_v18  ;;  %v9048_v18 = vshrl.u32 %v6119_v2, 7  ;;  %v6387_v2 = vld [vmem:[#allocation4 + $0x2a8] sm:$0xff] }
0x27c4   :  { %6410 = vmatprep.subr.bf16.mxu1 %v6303_v37  ;;  %6454 = vmatpush1.bf16.msra.mxu0 %v6336_v23 }
0x27c5   :  { %6455 = vmatprep.subr.bf16.mxu0 %v6339_v35  ;;  %v6121_v37 = vsub.s32 0, %v9048_v18  ;;  %v6129_v23 = vsub.s32 2, %v9048_v18  ;;  %v9055_v35 = vld [vmem:[%s9112_s13] sm:$0x3f]  ;;  %s7706_s13 = smov [#allocation6]  }
0x27c6   :  { %6710 = vmatmul.mubr.msk.bf16.vlgmr.msra.gmra.mrb[76].mxu1 %vm5284_vm3, %v6151_v30  ;;  %v6364_v30 = vld [vmem:[#allocation4 + $0x1f0] sm:$0xff]  ;;  %s6543_s6 = sshll.u32 %s7706_s13, 4  ;;  %s6544_s6 = int_to_ptr.vmem [resolvable:$true] %s6543_s6 }
0x27c7   :  { %6411 = vmatpush1.bf16.msra.mxu1 %v6302_v46  ;;  %v6125_v46 = vsub.s32 1, %v9048_v18  ;;  %s7665_s0 = scalar_lea.vmem %s6544_s6, 128  ;;  %p7670_p1 = scmp.lt.s32.totalorder %s6544_s6, %s6544_s6 }
0x27c8   :  { %6412 = vmatprep.subr.bf16.mxu1 %v6305_v6  ;;  %6456 = vmatpush1.bf16.msra.mxu0 %v6338_v32  ;;  %v6133_v6 = vsub.s32 3, %v9048_v18  ;;  %v6122_v32 = vrot.slane %v9055_v35, %v6121_v37  ;;  %p7666_p0 = scmp.ne.s32.totalorder %s6544_s6, %s7665_s0  ;;  %p7671_p2 = scmp.lt.s32.totalorder %s7665_s0, %s7665_s0 }
0x27c9   :  { %6457 = vmatprep.subr.bf16.mxu0 %v6341_v51  ;;  %v6130_v51 = vrot.slane %v9055_v35, %v6129_v23  ;;  %v6386_v23 = vld [vmem:[#allocation4 + $0x2a0] sm:$0xff] }
0x27ca   :  { %p7672_p3 = por %p7671_p2, %p7670_p1 }
0x27cb   :  { %6413 = vmatpush1.bf16.msra.mxu1 %v6304_v39  ;;  %v6126_v39 = vrot.slane %v9055_v35, %v6125_v46 }
0x27cc   :  { %6414 = vmatprep.subr.bf16.mxu1 %v6307_v57  ;;  %6458 = vmatpush1.bf16.msra.mxu0 %v6340_v7  ;;  %v6134_v57 = vrot.slane %v9055_v35, %v6133_v6  ;;  %v6389_v6 = vld [vmem:[#allocation4 + $0x2b8] sm:$0xff]  ;;  %p7673_p4 = pnand %p7672_p3, %p7666_p0 }
0x27cd   :  { %6459 = vmatprep.subr.bf16.mxu0 %v6343_v8 }
0x27cf   :  { %6415 = vmatpush1.bf16.msra.mxu1 %v6306_v9 }
0x27d0   :  { %6416 = vmatprep.subr.bf16.mxu1 %v6309_v10  ;;  %6460 = vmatpush1.bf16.msra.mxu0 %v6342_v59 }
0x27d1   :  { %6461 = vmatprep.subr.bf16.mxu0 %v6345_v11 }
0x27d3   :  { %6417 = vmatpush1.bf16.msra.mxu1 %v6308_v44 }
0x27d4   :  { %6418 = vmatprep.subr.bf16.mxu1 %v6311_v12  ;;  %6462 = vmatpush1.bf16.msra.mxu0 %v6344_v29 }
0x27d5   :  { %6463 = vmatprep.subr.bf16.mxu0 %v6347_v25 }
0x27d7   :  { %6419 = vmatpush1.bf16.msra.mxu1 %v6310_v52  ;;  %v6141_v52 = vsub.s32 5, %v9048_v18 }
0x27d8   :  { %6420 = vmatprep.subr.bf16.mxu1 %v6313_v14  ;;  %6464 = vmatpush1.bf16.msra.mxu0 %v6346_v50 }
0x27d9   :  { %6465 = vmatprep.subr.bf16.mxu0 %v6349_v4 }
0x27db   :  { %6421 = vmatpush1.bf16.msra.mxu1 %v6312_v31 }
0x27dc   :  { %6422 = vmatprep.subr.bf16.mxu1 %v6315_v55  ;;  %6466 = vmatpush1.bf16.msra.mxu0 %v6348_v58 }
0x27dd   :  { %6467 = vmatprep.subr.bf16.mxu0 %v6351_v54 }
0x27df   :  { %6423 = vmatpush1.bf16.msra.mxu1 %v6314_v38 }
0x27e0   :  { %6424 = vmatprep.subr.bf16.mxu1 %v6317_v34  ;;  %6468 = vmatpush1.bf16.msra.mxu0 %v6350_v1  ;;  %v6142_v34 = vrot.slane %v9055_v35, %v6141_v52 }
0x27e1   :  { %6469 = vmatprep.subr.bf16.mxu0 %v6353_v15 }
0x27e3   :  { %6425 = vmatpush1.bf16.msra.mxu1 %v6316_v28 }
0x27e4   :  { %6426 = vmatprep.subr.bf16.mxu1 %v6319_v56  ;;  %6470 = vmatpush1.bf16.msra.mxu0 %v6352_v16 }
0x27e5   :  { %6471 = vmatprep.subr.bf16.mxu0 %v6355_v17 }
0x27e7   :  { %6427 = vmatpush1.bf16.msra.mxu1 %v6318_v36 }
0x27e8   :  { %6428 = vmatprep.subr.bf16.mxu1 %v6321_v27  ;;  %6472 = vmatpush1.bf16.msra.mxu0 %v6354_v19  ;;  %v6366_v27 = vld [vmem:[#allocation4 + $0x200] sm:$0xff] }
0x27e9   :  { %6473 = vmatprep.subr.bf16.mxu0 %v6357_v49  ;;  %v6369_v49 = vld [vmem:[#allocation4 + $0x218] sm:$0xff] }
0x27eb   :  { %6429 = vmatpush1.bf16.msra.mxu1 %v6320_v5 }
0x27ec   :  { %6430 = vmatprep.subr.bf16.mxu1 %v6323_v20  ;;  %6474 = vmatpush1.bf16.msra.mxu0 %v6356_v21 }
0x27ed   :  { %6475 = vmatprep.subr.bf16.mxu0 %v6359_v3 }
0x27ef   :  { %6431 = vmatpush1.bf16.msra.mxu1 %v6322_v62  ;;  %v6368_v62 = vld [vmem:[#allocation4 + $0x210] sm:$0xff] }
0x27f0   :  { %6432 = vmatprep.subr.bf16.mxu1 %v6325_v43  ;;  %6476 = vmatpush1.bf16.msra.mxu0 %v6358_v22  ;;  %v6371_v43 = vld [vmem:[#allocation4 + $0x228] sm:$0xff] }
0x27f1   :  { %6477 = vmatprep.subr.bf16.mxu0 %v6361_v24 }
0x27f3   :  { %6433 = vmatpush1.bf16.msra.mxu1 %v6324_v53  ;;  %v6370_v53 = vld [vmem:[#allocation4 + $0x220] sm:$0xff] }
0x27f4   :  { %6434 = vmatprep.subr.bf16.mxu1 %v6327_v60  ;;  %6478 = vmatpush1.bf16.msra.mxu0 %v6360_v13  ;;  %v6373_v60 = vld [vmem:[#allocation4 + $0x238] sm:$0xff]  ;;  %v6372_v13 = vld [vmem:[#allocation4 + $0x230] sm:$0xff] }
0x27f5   :  { %6479 = vmatprep.subr.bf16.mxu0 %v6363_v61  ;;  %v6376_v61 = vld [vmem:[#allocation4 + $0x250] sm:$0xff] }
0x27f7   :  { %6435 = vmatpush1.bf16.msra.mxu1 %v6326_v40  ;;  %v6375_v40 = vld [vmem:[#allocation4 + $0x248] sm:$0xff] }
0x27f8   :  { %6436 = vmatprep.subr.bf16.mxu1 %v6329_v26  ;;  %6480 = vmatpush1.bf16.msra.mxu0 %v6362_v48  ;;  %v6374_v26 = vld [vmem:[#allocation4 + $0x240] sm:$0xff] }
0x27f9   :  { %6481 = vmatprep.subr.bf16.mxu0 %v6365_v45  ;;  %v6378_v48 = vld [vmem:[#allocation4 + $0x260] sm:$0xff]  ;;  %v6380_v45 = vld [vmem:[#allocation4 + $0x270] sm:$0xff] }
0x27fb   :  { %6437 = vmatpush1.bf16.msra.mxu1 %v6328_v33  ;;  %v6377_v33 = vld [vmem:[#allocation4 + $0x258] sm:$0xff] }
0x27fc   :  { %6438 = vmatprep.subr.bf16.mxu1 %v6331_v0  ;;  %6482 = vmatpush1.bf16.msra.mxu0 %v6364_v30  ;;  %v6379_v0 = vld [vmem:[#allocation4 + $0x268] sm:$0xff]  ;;  %v6382_v30 = vld [vmem:[#allocation4 + $0x280] sm:$0xff] }
0x27fd   :  { %6492 = vmatprep.subr.bf16.mxu0 %v6367_v63  ;;  %v6384_v63 = vld [vmem:[#allocation4 + $0x290] sm:$0xff] }
0x27ff   :  { %6439 = vmatpush1.bf16.msra.mxu1 %v6330_v41  ;;  %v6381_v41 = vld [vmem:[#allocation4 + $0x278] sm:$0xff] }
0x2800   :  { %6440 = vmatprep.subr.bf16.mxu1 %v6333_v42  ;;  %v6383_v42 = vld [vmem:[#allocation4 + $0x288] sm:$0xff] }
0x2803   :  { %6441 = vmatpush1.bf16.msra.mxu1 %v6332_v47  ;;  %v6385_v47 = vld [vmem:[#allocation4 + $0x298] sm:$0xff] }
0x2891   :  { %v6189_v7 = vpop.f32.mrb[72].mxu1  ;;  %v6230_v8 = vpop.f32.mrb[56].mxu0 }
0x2892   :  { %v6190_v9 = vadd.f32 %v6189_v7, %v6122_v32  ;;  %v6231_v10 = vadd.f32 %v6230_v8, %v6130_v51  ;;  %v6191_v59 = vpop.f32.mrb[73].mxu1  ;;  %v6232_v11 = vpop.f32.mrb[57].mxu0  ;;  %v6388_v32 = vld [vmem:[#allocation4 + $0x2b0] sm:$0xff]  ;;  %v6137_v51 = vsub.s32 4, %v9048_v18  ;;  %v6393_v8 = vld [vmem:[#allocation4 + $0x2d8] sm:$0xff] }
0x2893   :  { %v6192_v44 = vadd.f32 %v6191_v59, %v6126_v39  ;;  %v6233_v12 = vadd.f32 %v6232_v11, %v6134_v57  ;;  %v6193_v29 = vpop.f32.mrb[74].mxu1  ;;  %v6234_v25 = vpop.f32.mrb[58].mxu0  ;;  %v6391_v39 = vld [vmem:[#allocation4 + $0x2c8] sm:$0xff]  ;;  %v6390_v57 = vld [vmem:[#allocation4 + $0x2c0] sm:$0xff] }
0x2894   :  { %vm6278_vm2 = vcmp.gt.f32.partialorder %v6190_v9, 0.0  ;;  %v6284_v14 = vmul.f32 0.2, %v6190_v9  ;;  %vm6280_vm9 = vcmp.gt.f32.partialorder %v6231_v10, 0.0  ;;  %v6286_v50 = vmul.f32 0.2, %v6231_v10 }
0x2895   :  { %vm6279_vm11 = vcmp.gt.f32.partialorder %v6192_v44, 0.0  ;;  %v6285_v4 = vmul.f32 0.2, %v6192_v44  ;;  %vm6281_vm15 = vcmp.gt.f32.partialorder %v6233_v12, 0.0  ;;  %v6287_v31 = vmul.f32 0.2, %v6233_v12 }
0x2896   :  { %v6290_v55 = vsel %vm6278_vm2, %v6190_v9, %v6284_v14  ;;  %v6292_v58 = vsel %vm6280_vm9, %v6231_v10, %v6286_v50  ;;  %v6194_v54 = vpop.f32.mrb[75].mxu1  ;;  %v6235_v38 = vpop.f32.mrb[59].mxu0  ;;  %v6138_v7 = vrot.slane %v9055_v35, %v6137_v51  ;;  %v6392_v9 = vld [vmem:[#allocation4 + $0x2d0] sm:$0xff]  ;;  %v6395_v59 = vld [vmem:[#allocation4 + $0x2e8] sm:$0xff]  ;;  %v6394_v11 = vld [vmem:[#allocation4 + $0x2e0] sm:$0xff] }
0x2897   :  { %v6291_v1 = vsel %vm6279_vm11, %v6192_v44, %v6285_v4  ;;  %v6293_v15 = vsel %vm6281_vm15, %v6233_v12, %v6287_v31  ;;  %v6296_v16 = vpack.c.bf16 %v6290_v55, %v6290_v55  ;;  %v6298_v17 = vpack.c.bf16 %v6292_v58, %v6292_v58  ;;  %v6397_v12 = vld [vmem:[#allocation4 + $0x2f8] sm:$0xff]  ;;  %v6396_v29 = vld [vmem:[#allocation4 + $0x2f0] sm:$0xff] }
0x2898   :  { %v6297_v28 = vpack.c.bf16 %v6291_v1, %v6291_v1  ;;  %v6299_v56 = vpack.c.bf16 %v6293_v15, %v6293_v15 }
0x2899   :  { %v9069_v36 = vpop.f32.mrb[76].mxu1 }
0x289a   :  { %v6273_v19 = vpop.f32.mrb[77].mxu1  ;;  %6442 = vmatprep.mubr.bf16.mxu1 %v6297_v28  ;;  %6483 = vmatprep.mubr.bf16.mxu0 %v6299_v56  ;;  %v6272_v10 = vadd.f32 %v9069_v36, %v6138_v7 }
0x289b   :  { %v6274_v5 = vadd.f32 %v6273_v19, %v6142_v34  ;;  %v6275_v20 = vpop.f32.mrb[78].mxu1  ;;  %6443 = vmatmul.mubr.bf16.vlgmr.msra.gmra.mrb[80].mxu1 %v6296_v16  ;;  %6484 = vmatmul.mubr.bf16.vlgmr.msra.gmra.mrb[60].mxu0 %v6298_v17 }
0x289c   :  { %6493 = vmatpush1.bf16.msra.mxu0 %v6366_v27  ;;  %v6276_v21 = vpop.f32.mrb[79].mxu1  ;;  %v6288_v44 = vmul.f32 0.2, %v6272_v10  ;;  %vm6282_vm1 = vcmp.gt.f32.partialorder %v6272_v10, 0.0 }
0x289d   :  { %vm6283_vm0 = vcmp.gt.f32.partialorder %v6274_v5, 0.0  ;;  %v6289_v3 = vmul.f32 0.2, %v6274_v5  ;;  %6494 = vmatprep.subr.bf16.mxu0 %v6369_v49 }
0x289e   :  { %v6294_v25 = vsel %vm6282_vm1, %v6272_v10, %v6288_v44 }
0x289f   :  { %v6295_v22 = vsel %vm6283_vm0, %v6274_v5, %v6289_v3  ;;  %v6300_v52 = vpack.c.bf16 %v6294_v25, %v6294_v25 }
0x28a0   :  { %6495 = vmatpush1.bf16.msra.mxu0 %v6368_v62  ;;  %v6301_v24 = vpack.c.bf16 %v6295_v22, %v6295_v22 }
0x28a1   :  { %6496 = vmatprep.subr.bf16.mxu0 %v6371_v43 }
0x28a2   :  { %6524 = vmatprep.mubr.bf16.mxu0 %v6301_v24 }
0x28a4   :  { %6497 = vmatpush1.bf16.msra.mxu0 %v6370_v53 }
0x28a5   :  { %6498 = vmatprep.subr.bf16.mxu0 %v6373_v60 }
0x28a8   :  { %6499 = vmatpush1.bf16.msra.mxu0 %v6372_v13 }
0x28a9   :  { %6500 = vmatprep.subr.bf16.mxu0 %v6375_v40 }
0x28ac   :  { %6501 = vmatpush1.bf16.msra.mxu0 %v6374_v26 }
0x28ad   :  { %6502 = vmatprep.subr.bf16.mxu0 %v6377_v33 }
0x28b0   :  { %6503 = vmatpush1.bf16.msra.mxu0 %v6376_v61 }
0x28b1   :  { %6504 = vmatprep.subr.bf16.mxu0 %v6379_v0 }
0x28b4   :  { %6505 = vmatpush1.bf16.msra.mxu0 %v6378_v48 }
0x28b5   :  { %6506 = vmatprep.subr.bf16.mxu0 %v6381_v41 }
0x28b8   :  { %6507 = vmatpush1.bf16.msra.mxu0 %v6380_v45 }
0x28b9   :  { %6508 = vmatprep.subr.bf16.mxu0 %v6383_v42 }
0x28bc   :  { %6509 = vmatpush1.bf16.msra.mxu0 %v6382_v30 }
0x28bd   :  { %6510 = vmatprep.subr.bf16.mxu0 %v6385_v47 }
0x28c0   :  { %6511 = vmatpush1.bf16.msra.mxu0 %v6384_v63 }
0x28c1   :  { %6512 = vmatprep.subr.bf16.mxu0 %v6387_v2 }
0x28c4   :  { %6513 = vmatpush1.bf16.msra.mxu0 %v6386_v23 }
0x28c5   :  { %6514 = vmatprep.subr.bf16.mxu0 %v6389_v6 }
0x28c8   :  { %6515 = vmatpush1.bf16.msra.mxu0 %v6388_v32 }
0x28c9   :  { %6516 = vmatprep.subr.bf16.mxu0 %v6391_v39 }
0x28cc   :  { %6517 = vmatpush1.bf16.msra.mxu0 %v6390_v57 }
0x28cd   :  { %6518 = vmatprep.subr.bf16.mxu0 %v6393_v8 }
0x28d0   :  { %6519 = vmatpush1.bf16.msra.mxu0 %v6392_v9 }
0x28d1   :  { %6520 = vmatprep.subr.bf16.mxu0 %v6395_v59 }
0x28d4   :  { %6521 = vmatpush1.bf16.msra.mxu0 %v6394_v11 }
0x28d5   :  { %6522 = vmatprep.subr.bf16.mxu0 %v6397_v12 }
0x28d8   :  { %6523 = vmatpush1.bf16.msra.mxu0 %v6396_v29 }
0x28db   :  { %6525 = vmatmul.mubr.bf16.vlgmr.msra.gmra.mrb[60].mxu0 %v6300_v52 }
0x28dc   :  { %7676 = shalt.err (!%p7673_p4)
}
0x28dd   :  { %s7677_s22 = scalar_lea.hbm %s9116_s17, 128 }
0x28de   :  { %p7678_p5 = scmp.ne.s32.totalorder %s9116_s17, %s7677_s22  ;;  %p7681_p6 = scmp.lt.u32.totalorder %s7677_s22, %s9116_s17 }
0x28e0   :  { %p7683_p7 = pnand %p7681_p6, %p7678_p5 }
0x28e2   :  { %7686 = shalt.err (!%p7683_p7)
}
0x28e3   :  { %6546 = dma.vmem_to_hbm [thread:$0]  %s6544_s6, 128, %s9116_s17, [#allocation7]   ;;  %v6398_v31 = vld [vmem:[%s9114_s15] sm:$0x3] }
0x28e4   :  { %v6403_v55 = vrot.slane %v6398_v31, %v6121_v37  ;;  %v6407_v58 = vrot.slane %v6398_v31, %v6125_v46 }
0x296e   :  { %v6444_v35 = vpop.f32.mrb[80].mxu1 }
0x296f   :  { %v6446_v14 = vpop.f32.mrb[81].mxu1  ;;  %v6445_v54 = vadd.f32 %v6444_v35, %v6403_v55 }
0x2970   :  { %v6448_v50 = vpop.f32.mrb[82].mxu1  ;;  %v6447_v38 = vadd.f32 %v6446_v14, %v6407_v58 }
0x2971   :  { %v6449_v4 = vpop.f32.mrb[83].mxu1 }
0x29ae   :  { %v6526_v34 = vpop.f32.mrb[60].mxu0 }
0x29af   :  { %v7592_v1 = vadd.f32 %v6526_v34, %v6445_v54  ;;  %v6528_v15 = vpop.f32.mrb[61].mxu0 }
0x29b0   :  { %v7594_v28 = vadd.f32 %v6528_v15, %v6447_v38  ;;  %v6530_v56 = vpop.f32.mrb[62].mxu0 }
0x29b1   :  { %6533 = vst [vmem:[%s9115_s16] sm:$0xff] %v7592_v1  ;;  %v6531_v16 = vpop.f32.mrb[63].mxu0 }
0x29b2   :  { %6534 = vst [vmem:[%s9115_s16 + $0x8] sm:$0xff] %v7594_v28 }
0x29b3   :  { %7691 = dma.done.wait [#allocation7], 128  }
0x29b4   :  { %7692 = vsyncadd [#allocation7], 4294967168 }
0x29b5   :  { %6552 = vsyncpa [#allocation7], 1 }
0x29b6   :  { %6553 = vsyncmov [#allocation5] }
0x29b9   :  { %s6554_s28 = vpop.sfrf %6553 }
0x29ba   :  { %p6711_p8 = scmp.ne.s32.totalorder %s6554_s28, 0 }
0x29bc   :  { %6558 = shalt.err (%p6711_p8)  }
0x29bd   :  { %6560 = vsyncmov [#allocation5 + $0x1] }
0x29c0   :  { %s6561_s29 = vpop.sfrf %6560 }
0x29c1   :  { %p6712_p9 = scmp.ne.s32.totalorder %s6561_s29, 0 }
0x29c3   :  { %6565 = shalt.err (%p6712_p9)  }

</bundles_post_ra>
